<compile_context>
chip_gen: v7x
topology: tpu7x:2x2x1
jax: 0.10.0
libtpu: 0.0.40
codegen_flags: <defaults>
</compile_context>

<pallas_src>
import jax
import jax.numpy as jnp
from jax import lax
from jax.experimental import pallas as pl
from jax.experimental.pallas import tpu as pltpu

NEG_SLOPE = 0.01  # nn.LeakyReLU() default negative_slope


def conv_block_kernel(xpad_ref, w1_ref, s1_ref, b1_ref, w2_ref, s2_ref, b2_ref,
                      o_ref, p1_ref, y1_ref, p2_ref):
    """Fused ConvBlock for one (batch image, output row-band).

    xpad_ref : (1, H+4, W+4, Cin)   whole padded image of batch n (fetched once per n,
                                    reused across all row-band steps since its block index
                                    does not depend on the row axis).
    w1_ref   : (9*Cin,  Cmid)       conv1 weight, contraction order (kh, kw, ci).
    s1/b1    : (1, Cmid)            folded BN1 scale / bias (conv1 bias included).
    w2_ref   : (9*Cmid, Cout)       conv2 weight.
    s2/b2    : (1, Cout)            folded BN2 scale / bias.
    o_ref    : (1, TH, W*Cout)      lane-dense output row-band.
    p1_ref   : (TH+2, W+2, 9*Cin)   VMEM scratch: stage-1 im2col slab.
    y1_ref   : (TH+2, W+2, Cmid)    VMEM scratch: stage-1 activation (with 1-pixel halo).
    p2_ref   : (TH,   W,   9*Cmid)  VMEM scratch: stage-2 im2col slab.
    """
    TH = o_ref.shape[1]
    Cout = s2_ref.shape[-1]
    W = o_ref.shape[2] // Cout
    Cin = xpad_ref.shape[-1]
    Cmid = s1_ref.shape[-1]
    R1, C1 = TH + 2, W + 2                      # stage-1 spatial extent (incl. halo)

    h = pl.program_id(1)
    H_total = pl.num_programs(1) * TH
    row0 = h * TH
    if TH % 8 == 0:
        row0 = pl.multiple_of(row0, 8)

    # ---------- stage 1: Conv1 (single K=9*Cin matmul) + BN1 + LeakyReLU ----------
    # Build the im2col slab with 9 tap copies into VMEM scratch (no per-tap matmul).
    for kh in range(3):
        for kw in range(3):
            t = kh * 3 + kw
            piece = xpad_ref[0, pl.ds(row0 + kh, R1), kw:kw + C1, :]     # (R1, C1, Cin)
            p1_ref[:, :, t * Cin:(t + 1) * Cin] = piece.astype(p1_ref.dtype)

    y1 = jnp.dot(p1_ref[...].reshape(R1 * C1, 9 * Cin), w1_ref[...],
                 preferred_element_type=jnp.float32)                     # (R1*C1, Cmid)
    y1 = y1 * s1_ref[...] + b1_ref[...]                                  # BN1 (eval) affine
    y1 = jnp.where(y1 > 0, y1, NEG_SLOPE * y1)                           # LeakyReLU
    # TODO(synk): nn.Dropout between the stages is the eval-mode identity here.

    # Zero the halo rows/cols that fall OUTSIDE the image: conv2's zero-padding must see
    # zeros there, not conv1 outputs computed beyond the image border.
    y1 = y1.reshape(R1, C1, Cmid)
    r_id = lax.broadcasted_iota(jnp.int32, (R1, C1, 1), 0)
    c_id = lax.broadcasted_iota(jnp.int32, (R1, C1, 1), 1)
    g_row = r_id + (h * TH - 1)                                          # global row of y1
    valid = (g_row >= 0) & (g_row < H_total) & (c_id >= 1) & (c_id <= W)
    y1 = jnp.where(valid, y1, 0.0)
    y1_ref[...] = y1.astype(y1_ref.dtype)

    # ---------- stage 2: Conv2 (single K=9*Cmid matmul) + BN2 + LeakyReLU ----------
    for kh in range(3):
        for kw in range(3):
            t = kh * 3 + kw
            p2_ref[:, :, t * Cmid:(t + 1) * Cmid] = y1_ref[kh:kh + TH, kw:kw + W, :]

    y2 = jnp.dot(p2_ref[...].reshape(TH * W, 9 * Cmid), w2_ref[...],
                 preferred_element_type=jnp.float32)                     # (TH*W, Cout)
    y2 = y2 * s2_ref[...] + b2_ref[...]
    y2 = jnp.where(y2 > 0, y2, NEG_SLOPE * y2)

    # Lane-dense store: the output block is a (TH, W*Cout) slab.
    if Cout % 128 == 0:
        # Lane-aligned minor-dim merge is a cheap, supported reshape.
        o_ref[...] = y2.reshape(1, TH, W * Cout).astype(o_ref.dtype)
    else:
        # Small Cout (demo): assemble the slab with W static column-strip stores; the
        # HBM<->VMEM DMA of the output block is still dense (8,128) tiles.
        y2 = y2.reshape(TH, W, Cout)
        for c in range(W):
            o_ref[0, :, c * Cout:(c + 1) * Cout] = y2[:, c, :].astype(o_ref.dtype)


def fold_bn(conv_b, gamma, beta, running_mean, running_var, eps=1e-5):
    """Fold conv bias + BatchNorm2d (eval mode) into a per-channel scale/bias."""
    scale = gamma / jnp.sqrt(running_var + eps)
    bias = beta + scale * (conv_b - running_mean)
    return scale.reshape(1, -1), bias.reshape(1, -1)


def _w_to_matmul(w_torch):
    """(Cout, Cin, 3, 3) -> (9*Cin, Cout), contraction order (kh, kw, ci)."""
    co, ci = w_torch.shape[0], w_torch.shape[1]
    return jnp.transpose(w_torch, (2, 3, 1, 0)).reshape(9 * ci, co)


def _pick_row_tile(H, max_rows=64):
    """Largest divisor of H that is a multiple of 8 and <= max_rows; else the full H."""
    best = H
    for th in range(8, min(H, max_rows) + 1, 8):
        if H % th == 0:
            best = th
    return best


def conv_block_forward(x_nchw, params, dropout_p=0.0, *, tile_rows=None,
                       use_bf16_matmul=False):
    """ConvBlock.forward (eval mode). Input/output are NCHW like PyTorch."""
    # TODO(synk): training-mode Dropout (stochastic) and training-mode BN batch statistics
    # are not implemented; eval-mode semantics (identity dropout, folded running stats).
    del dropout_p

    N, Cin, H, W = x_nchw.shape
    Cmid = params["w1"].shape[0]
    Cout = params["w2"].shape[0]

    # TODO(synk): in an NHWC end-to-end model these boundary transposes and the single
    # input pad would be dropped / folded into neighbouring kernels (in-kernel halo DMA).
    x = jnp.transpose(x_nchw, (0, 2, 3, 1))                    # NCHW -> NHWC
    xpad = jnp.pad(x, ((0, 0), (2, 2), (2, 2), (0, 0)))        # halo=2 for two fused 3x3s

    cdtype = jnp.bfloat16 if use_bf16_matmul else x.dtype      # bf16 recommended on v6e/v7x
    w1 = _w_to_matmul(params["w1"]).astype(cdtype)             # (9*Cin,  Cmid)
    w2 = _w_to_matmul(params["w2"]).astype(cdtype)             # (9*Cmid, Cout)
    s1, b1 = fold_bn(params["b1"], params["g1"], params["be1"], params["rm1"], params["rv1"])
    s2, b2 = fold_bn(params["b2"], params["g2"], params["be2"], params["rm2"], params["rv2"])

    TH = tile_rows if tile_rows is not None else _pick_row_tile(H)
    assert H % TH == 0 and (TH % 8 == 0 or TH == H), (H, TH)
    grid = (N, H // TH)

    out = pl.pallas_call(
        conv_block_kernel,
        out_shape=jax.ShapeDtypeStruct((N, H, W * Cout), x.dtype),
        grid_spec=pltpu.PrefetchScalarGridSpec(
            num_scalar_prefetch=0,
            grid=grid,
            in_specs=[
                # Whole padded image per batch: block index ignores the row axis, so it is
                # DMA'd once per image and reused across all row-band steps (pipelined
                # against the previous image's compute).
                pl.BlockSpec((1, H + 4, W + 4, Cin), lambda n, h: (n, 0, 0, 0)),
                pl.BlockSpec((9 * Cin, Cmid), lambda n, h: (0, 0)),
                pl.BlockSpec((1, Cmid), lambda n, h: (0, 0)),
                pl.BlockSpec((1, Cmid), lambda n, h: (0, 0)),
                pl.BlockSpec((9 * Cmid, Cout), lambda n, h: (0, 0)),
                pl.BlockSpec((1, Cout), lambda n, h: (0, 0)),
                pl.BlockSpec((1, Cout), lambda n, h: (0, 0)),
            ],
            out_specs=pl.BlockSpec((1, TH, W * Cout), lambda n, h: (n, h, 0)),
            scratch_shapes=[
                pltpu.VMEM((TH + 2, W + 2, 9 * Cin), cdtype),   # stage-1 im2col slab
                pltpu.VMEM((TH + 2, W + 2, Cmid), cdtype),      # stage-1 activation (+halo)
                pltpu.VMEM((TH, W, 9 * Cmid), cdtype),          # stage-2 im2col slab
            ],
        ),
        compiler_params=pltpu.CompilerParams(
            dimension_semantics=("parallel", "parallel"),       # megacore split on v7x
            vmem_limit_bytes=64 * 1024 * 1024,
        ),
    )(xpad, w1, s1, b1, w2, s2, b2)

    out = out.reshape(N, H, W, Cout)          # free: splits the packed minor dim
    return jnp.transpose(out, (0, 3, 1, 2))   # NHWC -> NCHW


def init_conv_block_params(key, in_channels, out_channels):
    """Deterministic parameter init matching nn.Conv2d / nn.BatchNorm2d shapes."""
    ks = jax.random.split(key, 6)
    p = {}
    p["w1"] = 0.1 * jax.random.normal(ks[0], (out_channels, in_channels, 3, 3), jnp.float32)
    p["b1"] = 0.1 * jax.random.normal(ks[1], (out_channels,), jnp.float32)
    p["g1"] = 1.0 + 0.1 * jax.random.normal(ks[2], (out_channels,), jnp.float32)
    p["be1"] = 0.1 * jax.random.normal(ks[3], (out_channels,), jnp.float32)
    p["rm1"] = jnp.zeros((out_channels,), jnp.float32)
    p["rv1"] = jnp.ones((out_channels,), jnp.float32)
    p["w2"] = 0.1 * jax.random.normal(ks[4], (out_channels, out_channels, 3, 3), jnp.float32)
    p["b2"] = 0.1 * jax.random.normal(ks[5], (out_channels,), jnp.float32)
    p["g2"] = jnp.ones((out_channels,), jnp.float32)
    p["be2"] = jnp.zeros((out_channels,), jnp.float32)
    p["rm2"] = jnp.zeros((out_channels,), jnp.float32)
    p["rv2"] = jnp.ones((out_channels,), jnp.float32)
    return p


def _reference_forward(x_nchw, params, eps=1e-5):
    """Pure-JAX eval-mode reference (PyTorch semantics) for a correctness check."""
    def stage(x, w, b, g, be, rm, rv):
        y = lax.conv_general_dilated(
            x, w, window_strides=(1, 1), padding=((1, 1), (1, 1)),
            dimension_numbers=("NCHW", "OIHW", "NCHW"),
            precision=lax.Precision.HIGHEST)
        y = y + b[None, :, None, None]
        y = (y - rm[None, :, None, None]) / jnp.sqrt(rv[None, :, None, None] + eps)
        y = g[None, :, None, None] * y + be[None, :, None, None]
        return jnp.where(y > 0, y, NEG_SLOPE * y)

    y = stage(x_nchw, params["w1"], params["b1"], params["g1"], params["be1"],
              params["rm1"], params["rv1"])
    y = stage(y, params["w2"], params["b2"], params["g2"], params["be2"],
              params["rm2"], params["rv2"])
    return y


if __name__ == "__main__":
    key = jax.random.PRNGKey(0)
    k_x, k_p = jax.random.split(key)

    N, Cin, Cout, H, W = 2, 4, 8, 16, 16
    x = jax.random.normal(k_x, (N, Cin, H, W), jnp.float32)
    params = init_conv_block_params(k_p, Cin, Cout)

    # tile_rows=8 -> grid (2, 2): exercises the row-band halo logic across tiles.
    out = conv_block_forward(x, params, dropout_p=0.5, tile_rows=8)
    out = jax.block_until_ready(out)

    assert out.shape == (N, Cout, H, W), out.shape
    assert bool(jnp.all(jnp.isfinite(out)))

    ref = _reference_forward(x, params)
    max_diff = float(jnp.max(jnp.abs(out - ref)))
    assert max_diff < 1e-2, f"mismatch vs reference: {max_diff}"

    print("KERNEL_OK")
</pallas_src>

<mosaic_0001>
module attributes {stable_mosaic.version = 11 : i64} {
  func.func @conv_block_kernel(%arg0: i32, %arg1: i32, %arg2: memref<1x20x20x4xf32, #tpu.memory_space<vmem>>, %arg3: memref<36x8xf32, #tpu.memory_space<vmem>>, %arg4: memref<1x8xf32, #tpu.memory_space<vmem>>, %arg5: memref<1x8xf32, #tpu.memory_space<vmem>>, %arg6: memref<72x8xf32, #tpu.memory_space<vmem>>, %arg7: memref<1x8xf32, #tpu.memory_space<vmem>>, %arg8: memref<1x8xf32, #tpu.memory_space<vmem>>, %arg9: memref<1x8x128xf32, #tpu.memory_space<vmem>>, %arg10: memref<10x18x36xf32, #tpu.memory_space<vmem>>, %arg11: memref<10x18x8xf32, #tpu.memory_space<vmem>>, %arg12: memref<8x16x72xf32, #tpu.memory_space<vmem>>) attributes {dimension_semantics = [#tpu.dimension_semantics<parallel>, #tpu.dimension_semantics<parallel>], iteration_bounds = array<i64: 2, 2>, scalar_prefetch = 0 : i64, scratch_operands = 3 : i64, tpu.core_type = #tpu.core_type<tc>, window_params = [{transform_indices = @transform_0, window_bounds = array<i64: 1, 20, 20, 4>}, {pipeline_mode = #tpu.pipeline_mode<synchronous>, transform_indices = @transform_1, window_bounds = array<i64: 36, 8>}, {pipeline_mode = #tpu.pipeline_mode<synchronous>, transform_indices = @transform_2, window_bounds = array<i64: 1, 8>}, {pipeline_mode = #tpu.pipeline_mode<synchronous>, transform_indices = @transform_3, window_bounds = array<i64: 1, 8>}, {pipeline_mode = #tpu.pipeline_mode<synchronous>, transform_indices = @transform_4, window_bounds = array<i64: 72, 8>}, {pipeline_mode = #tpu.pipeline_mode<synchronous>, transform_indices = @transform_5, window_bounds = array<i64: 1, 8>}, {pipeline_mode = #tpu.pipeline_mode<synchronous>, transform_indices = @transform_6, window_bounds = array<i64: 1, 8>}, {transform_indices = @transform_7, window_bounds = array<i64: 1, 8, 128>}]} {
    %c8_i32 = arith.constant 8 : i32
    %0 = arith.muli %arg1, %c8_i32 : i32
    %1 = tpu.assume_multiple %0, 8 : i32
    %c0_i32 = arith.constant 0 : i32
    %2 = arith.addi %1, %c0_i32 : i32
    %c0 = arith.constant 0 : index
    %3 = arith.index_cast %2 : i32 to index
    %c0_0 = arith.constant 0 : index
    %c0_1 = arith.constant 0 : index
    %4 = vector.load %arg2[%c0, %3, %c0_0, %c0_1] : memref<1x20x20x4xf32, #tpu.memory_space<vmem>>, vector<1x10x18x4xf32>
    %5 = vector.shape_cast %4 : vector<1x10x18x4xf32> to vector<10x18x4xf32>
    %c0_2 = arith.constant 0 : index
    %c0_3 = arith.constant 0 : index
    %c0_4 = arith.constant 0 : index
    %6 = vector.load %arg10[%c0_2, %c0_3, %c0_4] : memref<10x18x36xf32, #tpu.memory_space<vmem>>, vector<10x18x4xf32>
    tpu.vector_store %arg10[%c0_2, %c0_3, %c0_4], %5 {strides = array<i32>} : memref<10x18x36xf32, #tpu.memory_space<vmem>>, vector<10x18x4xf32>,
    %c0_i32_5 = arith.constant 0 : i32
    %7 = arith.addi %1, %c0_i32_5 : i32
    %c0_6 = arith.constant 0 : index
    %8 = arith.index_cast %7 : i32 to index
    %c1 = arith.constant 1 : index
    %c0_7 = arith.constant 0 : index
    %9 = vector.load %arg2[%c0_6, %8, %c1, %c0_7] : memref<1x20x20x4xf32, #tpu.memory_space<vmem>>, vector<1x10x18x4xf32>
    %10 = vector.shape_cast %9 : vector<1x10x18x4xf32> to vector<10x18x4xf32>
    %c0_8 = arith.constant 0 : index
    %c0_9 = arith.constant 0 : index
    %c4 = arith.constant 4 : index
    %11 = vector.load %arg10[%c0_8, %c0_9, %c4] : memref<10x18x36xf32, #tpu.memory_space<vmem>>, vector<10x18x4xf32>
    tpu.vector_store %arg10[%c0_8, %c0_9, %c4], %10 {strides = array<i32>} : memref<10x18x36xf32, #tpu.memory_space<vmem>>, vector<10x18x4xf32>,
    %c0_i32_10 = arith.constant 0 : i32
    %12 = arith.addi %1, %c0_i32_10 : i32
    %c0_11 = arith.constant 0 : index
    %13 = arith.index_cast %12 : i32 to index
    %c2 = arith.constant 2 : index
    %c0_12 = arith.constant 0 : index
    %14 = vector.load %arg2[%c0_11, %13, %c2, %c0_12] : memref<1x20x20x4xf32, #tpu.memory_space<vmem>>, vector<1x10x18x4xf32>
    %15 = vector.shape_cast %14 : vector<1x10x18x4xf32> to vector<10x18x4xf32>
    %c0_13 = arith.constant 0 : index
    %c0_14 = arith.constant 0 : index
    %c8 = arith.constant 8 : index
    %16 = vector.load %arg10[%c0_13, %c0_14, %c8] : memref<10x18x36xf32, #tpu.memory_space<vmem>>, vector<10x18x4xf32>
    tpu.vector_store %arg10[%c0_13, %c0_14, %c8], %15 {strides = array<i32>} : memref<10x18x36xf32, #tpu.memory_space<vmem>>, vector<10x18x4xf32>,
    %c1_i32 = arith.constant 1 : i32
    %17 = arith.addi %1, %c1_i32 : i32
    %c0_15 = arith.constant 0 : index
    %18 = arith.index_cast %17 : i32 to index
    %c0_16 = arith.constant 0 : index
    %c0_17 = arith.constant 0 : index
    %19 = vector.load %arg2[%c0_15, %18, %c0_16, %c0_17] : memref<1x20x20x4xf32, #tpu.memory_space<vmem>>, vector<1x10x18x4xf32>
    %20 = vector.shape_cast %19 : vector<1x10x18x4xf32> to vector<10x18x4xf32>
    %c0_18 = arith.constant 0 : index
    %c0_19 = arith.constant 0 : index
    %c12 = arith.constant 12 : index
    %21 = vector.load %arg10[%c0_18, %c0_19, %c12] : memref<10x18x36xf32, #tpu.memory_space<vmem>>, vector<10x18x4xf32>
    tpu.vector_store %arg10[%c0_18, %c0_19, %c12], %20 {strides = array<i32>} : memref<10x18x36xf32, #tpu.memory_space<vmem>>, vector<10x18x4xf32>,
    %c1_i32_20 = arith.constant 1 : i32
    %22 = arith.addi %1, %c1_i32_20 : i32
    %c0_21 = arith.constant 0 : index
    %23 = arith.index_cast %22 : i32 to index
    %c1_22 = arith.constant 1 : index
    %c0_23 = arith.constant 0 : index
    %24 = vector.load %arg2[%c0_21, %23, %c1_22, %c0_23] : memref<1x20x20x4xf32, #tpu.memory_space<vmem>>, vector<1x10x18x4xf32>
    %25 = vector.shape_cast %24 : vector<1x10x18x4xf32> to vector<10x18x4xf32>
    %c0_24 = arith.constant 0 : index
    %c0_25 = arith.constant 0 : index
    %c16 = arith.constant 16 : index
    %26 = vector.load %arg10[%c0_24, %c0_25, %c16] : memref<10x18x36xf32, #tpu.memory_space<vmem>>, vector<10x18x4xf32>
    tpu.vector_store %arg10[%c0_24, %c0_25, %c16], %25 {strides = array<i32>} : memref<10x18x36xf32, #tpu.memory_space<vmem>>, vector<10x18x4xf32>,
    %c1_i32_26 = arith.constant 1 : i32
    %27 = arith.addi %1, %c1_i32_26 : i32
    %c0_27 = arith.constant 0 : index
    %28 = arith.index_cast %27 : i32 to index
    %c2_28 = arith.constant 2 : index
    %c0_29 = arith.constant 0 : index
    %29 = vector.load %arg2[%c0_27, %28, %c2_28, %c0_29] : memref<1x20x20x4xf32, #tpu.memory_space<vmem>>, vector<1x10x18x4xf32>
    %30 = vector.shape_cast %29 : vector<1x10x18x4xf32> to vector<10x18x4xf32>
    %c0_30 = arith.constant 0 : index
    %c0_31 = arith.constant 0 : index
    %c20 = arith.constant 20 : index
    %31 = vector.load %arg10[%c0_30, %c0_31, %c20] : memref<10x18x36xf32, #tpu.memory_space<vmem>>, vector<10x18x4xf32>
    tpu.vector_store %arg10[%c0_30, %c0_31, %c20], %30 {strides = array<i32>} : memref<10x18x36xf32, #tpu.memory_space<vmem>>, vector<10x18x4xf32>,
    %c2_i32 = arith.constant 2 : i32
    %32 = arith.addi %1, %c2_i32 : i32
    %c0_32 = arith.constant 0 : index
    %33 = arith.index_cast %32 : i32 to index
    %c0_33 = arith.constant 0 : index
    %c0_34 = arith.constant 0 : index
    %34 = vector.load %arg2[%c0_32, %33, %c0_33, %c0_34] : memref<1x20x20x4xf32, #tpu.memory_space<vmem>>, vector<1x10x18x4xf32>
    %35 = vector.shape_cast %34 : vector<1x10x18x4xf32> to vector<10x18x4xf32>
    %c0_35 = arith.constant 0 : index
    %c0_36 = arith.constant 0 : index
    %c24 = arith.constant 24 : index
    %36 = vector.load %arg10[%c0_35, %c0_36, %c24] : memref<10x18x36xf32, #tpu.memory_space<vmem>>, vector<10x18x4xf32>
    tpu.vector_store %arg10[%c0_35, %c0_36, %c24], %35 {strides = array<i32>} : memref<10x18x36xf32, #tpu.memory_space<vmem>>, vector<10x18x4xf32>,
    %c2_i32_37 = arith.constant 2 : i32
    %37 = arith.addi %1, %c2_i32_37 : i32
    %c0_38 = arith.constant 0 : index
    %38 = arith.index_cast %37 : i32 to index
    %c1_39 = arith.constant 1 : index
    %c0_40 = arith.constant 0 : index
    %39 = vector.load %arg2[%c0_38, %38, %c1_39, %c0_40] : memref<1x20x20x4xf32, #tpu.memory_space<vmem>>, vector<1x10x18x4xf32>
    %40 = vector.shape_cast %39 : vector<1x10x18x4xf32> to vector<10x18x4xf32>
    %c0_41 = arith.constant 0 : index
    %c0_42 = arith.constant 0 : index
    %c28 = arith.constant 28 : index
    %41 = vector.load %arg10[%c0_41, %c0_42, %c28] : memref<10x18x36xf32, #tpu.memory_space<vmem>>, vector<10x18x4xf32>
    tpu.vector_store %arg10[%c0_41, %c0_42, %c28], %40 {strides = array<i32>} : memref<10x18x36xf32, #tpu.memory_space<vmem>>, vector<10x18x4xf32>,
    %c2_i32_43 = arith.constant 2 : i32
    %42 = arith.addi %1, %c2_i32_43 : i32
    %c0_44 = arith.constant 0 : index
    %43 = arith.index_cast %42 : i32 to index
    %c2_45 = arith.constant 2 : index
    %c0_46 = arith.constant 0 : index
    %44 = vector.load %arg2[%c0_44, %43, %c2_45, %c0_46] : memref<1x20x20x4xf32, #tpu.memory_space<vmem>>, vector<1x10x18x4xf32>
    %45 = vector.shape_cast %44 : vector<1x10x18x4xf32> to vector<10x18x4xf32>
    %c0_47 = arith.constant 0 : index
    %c0_48 = arith.constant 0 : index
    %c32 = arith.constant 32 : index
    %46 = vector.load %arg10[%c0_47, %c0_48, %c32] : memref<10x18x36xf32, #tpu.memory_space<vmem>>, vector<10x18x4xf32>
    tpu.vector_store %arg10[%c0_47, %c0_48, %c32], %45 {strides = array<i32>} : memref<10x18x36xf32, #tpu.memory_space<vmem>>, vector<10x18x4xf32>,
    %c0_49 = arith.constant 0 : index
    %c0_50 = arith.constant 0 : index
    %c0_51 = arith.constant 0 : index
    %47 = vector.load %arg10[%c0_49, %c0_50, %c0_51] : memref<10x18x36xf32, #tpu.memory_space<vmem>>, vector<10x18x36xf32>
    %48 = vector.shape_cast %47 : vector<10x18x36xf32> to vector<180x36xf32>
    %c0_52 = arith.constant 0 : index
    %c0_53 = arith.constant 0 : index
    %49 = vector.load %arg3[%c0_52, %c0_53] : memref<36x8xf32, #tpu.memory_space<vmem>>, vector<36x8xf32>
    %cst = arith.constant dense<0.000000e+00> : vector<180x8xf32>
    %50 = tpu.matmul %48, %49, %cst {dimension_numbers = #tpu.dot_dimension_numbers<[1], [0], [0], [1], [0, 0, 1, 1], [], []>} : vector<180x36xf32>, vector<36x8xf32>, vector<180x8xf32> -> vector<180x8xf32>
    %c0_54 = arith.constant 0 : index
    %c0_55 = arith.constant 0 : index
    %51 = vector.load %arg4[%c0_54, %c0_55] : memref<1x8xf32, #tpu.memory_space<vmem>>, vector<1x8xf32>
    %52 = vector.broadcast %51 : vector<1x8xf32> to vector<180x8xf32>
    %53 = arith.mulf %50, %52 : vector<180x8xf32>
    %c0_56 = arith.constant 0 : index
    %c0_57 = arith.constant 0 : index
    %54 = vector.load %arg5[%c0_56, %c0_57] : memref<1x8xf32, #tpu.memory_space<vmem>>, vector<1x8xf32>
    %55 = vector.broadcast %54 : vector<1x8xf32> to vector<180x8xf32>
    %56 = arith.addf %53, %55 : vector<180x8xf32>
    %cst_58 = arith.constant 0.000000e+00 : f32
    %57 = vector.broadcast %cst_58 : f32 to vector<180x8xf32>
    %58 = arith.cmpf ogt, %56, %57 : vector<180x8xf32>
    %cst_59 = arith.constant 0.00999999977 : f32
    %59 = vector.broadcast %cst_59 : f32 to vector<180x8xf32>
    %60 = arith.mulf %59, %56 : vector<180x8xf32>
    %61 = arith.select %58, %56, %60 : vector<180x8xi1>, vector<180x8xf32>
    %62 = vector.shape_cast %61 : vector<180x8xf32> to vector<10x18x8xf32>
    %63 = tpu.iota {dimensions = array<i32: 0>} : vector<10x18x1xi32>
    %64 = tpu.iota {dimensions = array<i32: 1>} : vector<10x18x1xi32>
    %c8_i32_60 = arith.constant 8 : i32
    %65 = arith.muli %arg1, %c8_i32_60 : i32
    %c1_i32_61 = arith.constant 1 : i32
    %66 = arith.subi %65, %c1_i32_61 : i32
    %67 = vector.broadcast %66 : i32 to vector<10x18x1xi32>
    %68 = arith.addi %63, %67 : vector<10x18x1xi32>
    %c0_i32_62 = arith.constant 0 : i32
    %69 = vector.broadcast %c0_i32_62 : i32 to vector<10x18x1xi32>
    %70 = arith.cmpi sge, %68, %69 : vector<10x18x1xi32>
    %c16_i32 = arith.constant 16 : i32
    %71 = vector.broadcast %c16_i32 : i32 to vector<10x18x1xi32>
    %72 = arith.cmpi slt, %68, %71 : vector<10x18x1xi32>
    %73 = arith.andi %70, %72 : vector<10x18x1xi1>
    %c1_i32_63 = arith.constant 1 : i32
    %74 = vector.broadcast %c1_i32_63 : i32 to vector<10x18x1xi32>
    %75 = arith.cmpi sge, %64, %74 : vector<10x18x1xi32>
    %76 = arith.andi %73, %75 : vector<10x18x1xi1>
    %c16_i32_64 = arith.constant 16 : i32
    %77 = vector.broadcast %c16_i32_64 : i32 to vector<10x18x1xi32>
    %78 = arith.cmpi sle, %64, %77 : vector<10x18x1xi32>
    %79 = arith.andi %76, %78 : vector<10x18x1xi1>
    %cst_65 = arith.constant 0.000000e+00 : f32
    %80 = vector.shape_cast %79 : vector<10x18x1xi1> to vector<10x18x1xi1>
    %81 = vector.broadcast %80 : vector<10x18x1xi1> to vector<10x18x8xi1>
    %82 = vector.broadcast %cst_65 : f32 to vector<10x18x8xf32>
    %83 = arith.select %81, %62, %82 : vector<10x18x8xi1>, vector<10x18x8xf32>
    %c0_66 = arith.constant 0 : index
    %c0_67 = arith.constant 0 : index
    %c0_68 = arith.constant 0 : index
    %84 = vector.load %arg11[%c0_66, %c0_67, %c0_68] : memref<10x18x8xf32, #tpu.memory_space<vmem>>, vector<10x18x8xf32>
    tpu.vector_store %arg11[%c0_66, %c0_67, %c0_68], %83 {strides = array<i32>} : memref<10x18x8xf32, #tpu.memory_space<vmem>>, vector<10x18x8xf32>,
    %c0_69 = arith.constant 0 : index
    %c0_70 = arith.constant 0 : index
    %c0_71 = arith.constant 0 : index
    %85 = vector.load %arg11[%c0_69, %c0_70, %c0_71] : memref<10x18x8xf32, #tpu.memory_space<vmem>>, vector<8x16x8xf32>
    %c0_72 = arith.constant 0 : index
    %c0_73 = arith.constant 0 : index
    %c0_74 = arith.constant 0 : index
    %86 = vector.load %arg12[%c0_72, %c0_73, %c0_74] : memref<8x16x72xf32, #tpu.memory_space<vmem>>, vector<8x16x8xf32>
    tpu.vector_store %arg12[%c0_72, %c0_73, %c0_74], %85 {strides = array<i32>} : memref<8x16x72xf32, #tpu.memory_space<vmem>>, vector<8x16x8xf32>,
    %c0_75 = arith.constant 0 : index
    %c1_76 = arith.constant 1 : index
    %c0_77 = arith.constant 0 : index
    %87 = vector.load %arg11[%c0_75, %c1_76, %c0_77] : memref<10x18x8xf32, #tpu.memory_space<vmem>>, vector<8x16x8xf32>
    %c0_78 = arith.constant 0 : index
    %c0_79 = arith.constant 0 : index
    %c8_80 = arith.constant 8 : index
    %88 = vector.load %arg12[%c0_78, %c0_79, %c8_80] : memref<8x16x72xf32, #tpu.memory_space<vmem>>, vector<8x16x8xf32>
    tpu.vector_store %arg12[%c0_78, %c0_79, %c8_80], %87 {strides = array<i32>} : memref<8x16x72xf32, #tpu.memory_space<vmem>>, vector<8x16x8xf32>,
    %c0_81 = arith.constant 0 : index
    %c2_82 = arith.constant 2 : index
    %c0_83 = arith.constant 0 : index
    %89 = vector.load %arg11[%c0_81, %c2_82, %c0_83] : memref<10x18x8xf32, #tpu.memory_space<vmem>>, vector<8x16x8xf32>
    %c0_84 = arith.constant 0 : index
    %c0_85 = arith.constant 0 : index
    %c16_86 = arith.constant 16 : index
    %90 = vector.load %arg12[%c0_84, %c0_85, %c16_86] : memref<8x16x72xf32, #tpu.memory_space<vmem>>, vector<8x16x8xf32>
    tpu.vector_store %arg12[%c0_84, %c0_85, %c16_86], %89 {strides = array<i32>} : memref<8x16x72xf32, #tpu.memory_space<vmem>>, vector<8x16x8xf32>,
    %c1_87 = arith.constant 1 : index
    %c0_88 = arith.constant 0 : index
    %c0_89 = arith.constant 0 : index
    %91 = vector.load %arg11[%c1_87, %c0_88, %c0_89] : memref<10x18x8xf32, #tpu.memory_space<vmem>>, vector<8x16x8xf32>
    %c0_90 = arith.constant 0 : index
    %c0_91 = arith.constant 0 : index
    %c24_92 = arith.constant 24 : index
    %92 = vector.load %arg12[%c0_90, %c0_91, %c24_92] : memref<8x16x72xf32, #tpu.memory_space<vmem>>, vector<8x16x8xf32>
    tpu.vector_store %arg12[%c0_90, %c0_91, %c24_92], %91 {strides = array<i32>} : memref<8x16x72xf32, #tpu.memory_space<vmem>>, vector<8x16x8xf32>,
    %c1_93 = arith.constant 1 : index
    %c1_94 = arith.constant 1 : index
    %c0_95 = arith.constant 0 : index
    %93 = vector.load %arg11[%c1_93, %c1_94, %c0_95] : memref<10x18x8xf32, #tpu.memory_space<vmem>>, vector<8x16x8xf32>
    %c0_96 = arith.constant 0 : index
    %c0_97 = arith.constant 0 : index
    %c32_98 = arith.constant 32 : index
    %94 = vector.load %arg12[%c0_96, %c0_97, %c32_98] : memref<8x16x72xf32, #tpu.memory_space<vmem>>, vector<8x16x8xf32>
    tpu.vector_store %arg12[%c0_96, %c0_97, %c32_98], %93 {strides = array<i32>} : memref<8x16x72xf32, #tpu.memory_space<vmem>>, vector<8x16x8xf32>,
    %c1_99 = arith.constant 1 : index
    %c2_100 = arith.constant 2 : index
    %c0_101 = arith.constant 0 : index
    %95 = vector.load %arg11[%c1_99, %c2_100, %c0_101] : memref<10x18x8xf32, #tpu.memory_space<vmem>>, vector<8x16x8xf32>
    %c0_102 = arith.constant 0 : index
    %c0_103 = arith.constant 0 : index
    %c40 = arith.constant 40 : index
    %96 = vector.load %arg12[%c0_102, %c0_103, %c40] : memref<8x16x72xf32, #tpu.memory_space<vmem>>, vector<8x16x8xf32>
    tpu.vector_store %arg12[%c0_102, %c0_103, %c40], %95 {strides = array<i32>} : memref<8x16x72xf32, #tpu.memory_space<vmem>>, vector<8x16x8xf32>,
    %c2_104 = arith.constant 2 : index
    %c0_105 = arith.constant 0 : index
    %c0_106 = arith.constant 0 : index
    %97 = vector.load %arg11[%c2_104, %c0_105, %c0_106] : memref<10x18x8xf32, #tpu.memory_space<vmem>>, vector<8x16x8xf32>
    %c0_107 = arith.constant 0 : index
    %c0_108 = arith.constant 0 : index
    %c48 = arith.constant 48 : index
    %98 = vector.load %arg12[%c0_107, %c0_108, %c48] : memref<8x16x72xf32, #tpu.memory_space<vmem>>, vector<8x16x8xf32>
    tpu.vector_store %arg12[%c0_107, %c0_108, %c48], %97 {strides = array<i32>} : memref<8x16x72xf32, #tpu.memory_space<vmem>>, vector<8x16x8xf32>,
    %c2_109 = arith.constant 2 : index
    %c1_110 = arith.constant 1 : index
    %c0_111 = arith.constant 0 : index
    %99 = vector.load %arg11[%c2_109, %c1_110, %c0_111] : memref<10x18x8xf32, #tpu.memory_space<vmem>>, vector<8x16x8xf32>
    %c0_112 = arith.constant 0 : index
    %c0_113 = arith.constant 0 : index
    %c56 = arith.constant 56 : index
    %100 = vector.load %arg12[%c0_112, %c0_113, %c56] : memref<8x16x72xf32, #tpu.memory_space<vmem>>, vector<8x16x8xf32>
    tpu.vector_store %arg12[%c0_112, %c0_113, %c56], %99 {strides = array<i32>} : memref<8x16x72xf32, #tpu.memory_space<vmem>>, vector<8x16x8xf32>,
    %c2_114 = arith.constant 2 : index
    %c2_115 = arith.constant 2 : index
    %c0_116 = arith.constant 0 : index
    %101 = vector.load %arg11[%c2_114, %c2_115, %c0_116] : memref<10x18x8xf32, #tpu.memory_space<vmem>>, vector<8x16x8xf32>
    %c0_117 = arith.constant 0 : index
    %c0_118 = arith.constant 0 : index
    %c64 = arith.constant 64 : index
    %102 = vector.load %arg12[%c0_117, %c0_118, %c64] : memref<8x16x72xf32, #tpu.memory_space<vmem>>, vector<8x16x8xf32>
    tpu.vector_store %arg12[%c0_117, %c0_118, %c64], %101 {strides = array<i32>} : memref<8x16x72xf32, #tpu.memory_space<vmem>>, vector<8x16x8xf32>,
    %c0_119 = arith.constant 0 : index
    %c0_120 = arith.constant 0 : index
    %c0_121 = arith.constant 0 : index
    %103 = vector.load %arg12[%c0_119, %c0_120, %c0_121] : memref<8x16x72xf32, #tpu.memory_space<vmem>>, vector<8x16x72xf32>
    %104 = vector.shape_cast %103 : vector<8x16x72xf32> to vector<128x72xf32>
    %c0_122 = arith.constant 0 : index
    %c0_123 = arith.constant 0 : index
    %105 = vector.load %arg6[%c0_122, %c0_123] : memref<72x8xf32, #tpu.memory_space<vmem>>, vector<72x8xf32>
    %cst_124 = arith.constant dense<0.000000e+00> : vector<128x8xf32>
    %106 = tpu.matmul %104, %105, %cst_124 {dimension_numbers = #tpu.dot_dimension_numbers<[1], [0], [0], [1], [0, 0, 1, 1], [], []>} : vector<128x72xf32>, vector<72x8xf32>, vector<128x8xf32> -> vector<128x8xf32>
    %c0_125 = arith.constant 0 : index
    %c0_126 = arith.constant 0 : index
    %107 = vector.load %arg7[%c0_125, %c0_126] : memref<1x8xf32, #tpu.memory_space<vmem>>, vector<1x8xf32>
    %108 = vector.broadcast %107 : vector<1x8xf32> to vector<128x8xf32>
    %109 = arith.mulf %106, %108 : vector<128x8xf32>
    %c0_127 = arith.constant 0 : index
    %c0_128 = arith.constant 0 : index
    %110 = vector.load %arg8[%c0_127, %c0_128] : memref<1x8xf32, #tpu.memory_space<vmem>>, vector<1x8xf32>
    %111 = vector.broadcast %110 : vector<1x8xf32> to vector<128x8xf32>
    %112 = arith.addf %109, %111 : vector<128x8xf32>
    %cst_129 = arith.constant 0.000000e+00 : f32
    %113 = vector.broadcast %cst_129 : f32 to vector<128x8xf32>
    %114 = arith.cmpf ogt, %112, %113 : vector<128x8xf32>
    %cst_130 = arith.constant 0.00999999977 : f32
    %115 = vector.broadcast %cst_130 : f32 to vector<128x8xf32>
    %116 = arith.mulf %115, %112 : vector<128x8xf32>
    %117 = arith.select %114, %112, %116 : vector<128x8xi1>, vector<128x8xf32>
    %118 = vector.shape_cast %117 : vector<128x8xf32> to vector<8x16x8xf32>
    %119 = vector.extract_strided_slice %118 {offsets = [0, 0, 0], sizes = [8, 1, 8], strides = [1, 1, 1]} : vector<8x16x8xf32> to vector<8x1x8xf32>
    %120 = vector.shape_cast %119 : vector<8x1x8xf32> to vector<8x8xf32>
    %c0_131 = arith.constant 0 : index
    %c0_132 = arith.constant 0 : index
    %c0_133 = arith.constant 0 : index
    %121 = vector.load %arg9[%c0_131, %c0_132, %c0_133] : memref<1x8x128xf32, #tpu.memory_space<vmem>>, vector<1x8x8xf32>
    %122 = vector.shape_cast %121 : vector<1x8x8xf32> to vector<8x8xf32>
    %123 = vector.shape_cast %120 : vector<8x8xf32> to vector<1x8x8xf32>
    tpu.vector_store %arg9[%c0_131, %c0_132, %c0_133], %123 {strides = array<i32>} : memref<1x8x128xf32, #tpu.memory_space<vmem>>, vector<1x8x8xf32>,
    %124 = vector.extract_strided_slice %118 {offsets = [0, 1, 0], sizes = [8, 1, 8], strides = [1, 1, 1]} : vector<8x16x8xf32> to vector<8x1x8xf32>
    %125 = vector.shape_cast %124 : vector<8x1x8xf32> to vector<8x8xf32>
    %c0_134 = arith.constant 0 : index
    %c0_135 = arith.constant 0 : index
    %c8_136 = arith.constant 8 : index
    %126 = vector.load %arg9[%c0_134, %c0_135, %c8_136] : memref<1x8x128xf32, #tpu.memory_space<vmem>>, vector<1x8x8xf32>
    %127 = vector.shape_cast %126 : vector<1x8x8xf32> to vector<8x8xf32>
    %128 = vector.shape_cast %125 : vector<8x8xf32> to vector<1x8x8xf32>
    tpu.vector_store %arg9[%c0_134, %c0_135, %c8_136], %128 {strides = array<i32>} : memref<1x8x128xf32, #tpu.memory_space<vmem>>, vector<1x8x8xf32>,
    %129 = vector.extract_strided_slice %118 {offsets = [0, 2, 0], sizes = [8, 1, 8], strides = [1, 1, 1]} : vector<8x16x8xf32> to vector<8x1x8xf32>
    %130 = vector.shape_cast %129 : vector<8x1x8xf32> to vector<8x8xf32>
    %c0_137 = arith.constant 0 : index
    %c0_138 = arith.constant 0 : index
    %c16_139 = arith.constant 16 : index
    %131 = vector.load %arg9[%c0_137, %c0_138, %c16_139] : memref<1x8x128xf32, #tpu.memory_space<vmem>>, vector<1x8x8xf32>
    %132 = vector.shape_cast %131 : vector<1x8x8xf32> to vector<8x8xf32>
    %133 = vector.shape_cast %130 : vector<8x8xf32> to vector<1x8x8xf32>
    tpu.vector_store %arg9[%c0_137, %c0_138, %c16_139], %133 {strides = array<i32>} : memref<1x8x128xf32, #tpu.memory_space<vmem>>, vector<1x8x8xf32>,
    %134 = vector.extract_strided_slice %118 {offsets = [0, 3, 0], sizes = [8, 1, 8], strides = [1, 1, 1]} : vector<8x16x8xf32> to vector<8x1x8xf32>
    %135 = vector.shape_cast %134 : vector<8x1x8xf32> to vector<8x8xf32>
    %c0_140 = arith.constant 0 : index
    %c0_141 = arith.constant 0 : index
    %c24_142 = arith.constant 24 : index
    %136 = vector.load %arg9[%c0_140, %c0_141, %c24_142] : memref<1x8x128xf32, #tpu.memory_space<vmem>>, vector<1x8x8xf32>
    %137 = vector.shape_cast %136 : vector<1x8x8xf32> to vector<8x8xf32>
    %138 = vector.shape_cast %135 : vector<8x8xf32> to vector<1x8x8xf32>
    tpu.vector_store %arg9[%c0_140, %c0_141, %c24_142], %138 {strides = array<i32>} : memref<1x8x128xf32, #tpu.memory_space<vmem>>, vector<1x8x8xf32>,
    %139 = vector.extract_strided_slice %118 {offsets = [0, 4, 0], sizes = [8, 1, 8], strides = [1, 1, 1]} : vector<8x16x8xf32> to vector<8x1x8xf32>
    %140 = vector.shape_cast %139 : vector<8x1x8xf32> to vector<8x8xf32>
    %c0_143 = arith.constant 0 : index
    %c0_144 = arith.constant 0 : index
    %c32_145 = arith.constant 32 : index
    %141 = vector.load %arg9[%c0_143, %c0_144, %c32_145] : memref<1x8x128xf32, #tpu.memory_space<vmem>>, vector<1x8x8xf32>
    %142 = vector.shape_cast %141 : vector<1x8x8xf32> to vector<8x8xf32>
    %143 = vector.shape_cast %140 : vector<8x8xf32> to vector<1x8x8xf32>
    tpu.vector_store %arg9[%c0_143, %c0_144, %c32_145], %143 {strides = array<i32>} : memref<1x8x128xf32, #tpu.memory_space<vmem>>, vector<1x8x8xf32>,
    %144 = vector.extract_strided_slice %118 {offsets = [0, 5, 0], sizes = [8, 1, 8], strides = [1, 1, 1]} : vector<8x16x8xf32> to vector<8x1x8xf32>
    %145 = vector.shape_cast %144 : vector<8x1x8xf32> to vector<8x8xf32>
    %c0_146 = arith.constant 0 : index
    %c0_147 = arith.constant 0 : index
    %c40_148 = arith.constant 40 : index
    %146 = vector.load %arg9[%c0_146, %c0_147, %c40_148] : memref<1x8x128xf32, #tpu.memory_space<vmem>>, vector<1x8x8xf32>
    %147 = vector.shape_cast %146 : vector<1x8x8xf32> to vector<8x8xf32>
    %148 = vector.shape_cast %145 : vector<8x8xf32> to vector<1x8x8xf32>
    tpu.vector_store %arg9[%c0_146, %c0_147, %c40_148], %148 {strides = array<i32>} : memref<1x8x128xf32, #tpu.memory_space<vmem>>, vector<1x8x8xf32>,
    %149 = vector.extract_strided_slice %118 {offsets = [0, 6, 0], sizes = [8, 1, 8], strides = [1, 1, 1]} : vector<8x16x8xf32> to vector<8x1x8xf32>
    %150 = vector.shape_cast %149 : vector<8x1x8xf32> to vector<8x8xf32>
    %c0_149 = arith.constant 0 : index
    %c0_150 = arith.constant 0 : index
    %c48_151 = arith.constant 48 : index
    %151 = vector.load %arg9[%c0_149, %c0_150, %c48_151] : memref<1x8x128xf32, #tpu.memory_space<vmem>>, vector<1x8x8xf32>
    %152 = vector.shape_cast %151 : vector<1x8x8xf32> to vector<8x8xf32>
    %153 = vector.shape_cast %150 : vector<8x8xf32> to vector<1x8x8xf32>
    tpu.vector_store %arg9[%c0_149, %c0_150, %c48_151], %153 {strides = array<i32>} : memref<1x8x128xf32, #tpu.memory_space<vmem>>, vector<1x8x8xf32>,
    %154 = vector.extract_strided_slice %118 {offsets = [0, 7, 0], sizes = [8, 1, 8], strides = [1, 1, 1]} : vector<8x16x8xf32> to vector<8x1x8xf32>
    %155 = vector.shape_cast %154 : vector<8x1x8xf32> to vector<8x8xf32>
    %c0_152 = arith.constant 0 : index
    %c0_153 = arith.constant 0 : index
    %c56_154 = arith.constant 56 : index
    %156 = vector.load %arg9[%c0_152, %c0_153, %c56_154] : memref<1x8x128xf32, #tpu.memory_space<vmem>>, vector<1x8x8xf32>
    %157 = vector.shape_cast %156 : vector<1x8x8xf32> to vector<8x8xf32>
    %158 = vector.shape_cast %155 : vector<8x8xf32> to vector<1x8x8xf32>
    tpu.vector_store %arg9[%c0_152, %c0_153, %c56_154], %158 {strides = array<i32>} : memref<1x8x128xf32, #tpu.memory_space<vmem>>, vector<1x8x8xf32>,
    %159 = vector.extract_strided_slice %118 {offsets = [0, 8, 0], sizes = [8, 1, 8], strides = [1, 1, 1]} : vector<8x16x8xf32> to vector<8x1x8xf32>
    %160 = vector.shape_cast %159 : vector<8x1x8xf32> to vector<8x8xf32>
    %c0_155 = arith.constant 0 : index
    %c0_156 = arith.constant 0 : index
    %c64_157 = arith.constant 64 : index
    %161 = vector.load %arg9[%c0_155, %c0_156, %c64_157] : memref<1x8x128xf32, #tpu.memory_space<vmem>>, vector<1x8x8xf32>
    %162 = vector.shape_cast %161 : vector<1x8x8xf32> to vector<8x8xf32>
    %163 = vector.shape_cast %160 : vector<8x8xf32> to vector<1x8x8xf32>
    tpu.vector_store %arg9[%c0_155, %c0_156, %c64_157], %163 {strides = array<i32>} : memref<1x8x128xf32, #tpu.memory_space<vmem>>, vector<1x8x8xf32>,
    %164 = vector.extract_strided_slice %118 {offsets = [0, 9, 0], sizes = [8, 1, 8], strides = [1, 1, 1]} : vector<8x16x8xf32> to vector<8x1x8xf32>
    %165 = vector.shape_cast %164 : vector<8x1x8xf32> to vector<8x8xf32>
    %c0_158 = arith.constant 0 : index
    %c0_159 = arith.constant 0 : index
    %c72 = arith.constant 72 : index
    %166 = vector.load %arg9[%c0_158, %c0_159, %c72] : memref<1x8x128xf32, #tpu.memory_space<vmem>>, vector<1x8x8xf32>
    %167 = vector.shape_cast %166 : vector<1x8x8xf32> to vector<8x8xf32>
    %168 = vector.shape_cast %165 : vector<8x8xf32> to vector<1x8x8xf32>
    tpu.vector_store %arg9[%c0_158, %c0_159, %c72], %168 {strides = array<i32>} : memref<1x8x128xf32, #tpu.memory_space<vmem>>, vector<1x8x8xf32>,
    %169 = vector.extract_strided_slice %118 {offsets = [0, 10, 0], sizes = [8, 1, 8], strides = [1, 1, 1]} : vector<8x16x8xf32> to vector<8x1x8xf32>
    %170 = vector.shape_cast %169 : vector<8x1x8xf32> to vector<8x8xf32>
    %c0_160 = arith.constant 0 : index
    %c0_161 = arith.constant 0 : index
    %c80 = arith.constant 80 : index
    %171 = vector.load %arg9[%c0_160, %c0_161, %c80] : memref<1x8x128xf32, #tpu.memory_space<vmem>>, vector<1x8x8xf32>
    %172 = vector.shape_cast %171 : vector<1x8x8xf32> to vector<8x8xf32>
    %173 = vector.shape_cast %170 : vector<8x8xf32> to vector<1x8x8xf32>
    tpu.vector_store %arg9[%c0_160, %c0_161, %c80], %173 {strides = array<i32>} : memref<1x8x128xf32, #tpu.memory_space<vmem>>, vector<1x8x8xf32>,
    %174 = vector.extract_strided_slice %118 {offsets = [0, 11, 0], sizes = [8, 1, 8], strides = [1, 1, 1]} : vector<8x16x8xf32> to vector<8x1x8xf32>
    %175 = vector.shape_cast %174 : vector<8x1x8xf32> to vector<8x8xf32>
    %c0_162 = arith.constant 0 : index
    %c0_163 = arith.constant 0 : index
    %c88 = arith.constant 88 : index
    %176 = vector.load %arg9[%c0_162, %c0_163, %c88] : memref<1x8x128xf32, #tpu.memory_space<vmem>>, vector<1x8x8xf32>
    %177 = vector.shape_cast %176 : vector<1x8x8xf32> to vector<8x8xf32>
    %178 = vector.shape_cast %175 : vector<8x8xf32> to vector<1x8x8xf32>
    tpu.vector_store %arg9[%c0_162, %c0_163, %c88], %178 {strides = array<i32>} : memref<1x8x128xf32, #tpu.memory_space<vmem>>, vector<1x8x8xf32>,
    %179 = vector.extract_strided_slice %118 {offsets = [0, 12, 0], sizes = [8, 1, 8], strides = [1, 1, 1]} : vector<8x16x8xf32> to vector<8x1x8xf32>
    %180 = vector.shape_cast %179 : vector<8x1x8xf32> to vector<8x8xf32>
    %c0_164 = arith.constant 0 : index
    %c0_165 = arith.constant 0 : index
    %c96 = arith.constant 96 : index
    %181 = vector.load %arg9[%c0_164, %c0_165, %c96] : memref<1x8x128xf32, #tpu.memory_space<vmem>>, vector<1x8x8xf32>
    %182 = vector.shape_cast %181 : vector<1x8x8xf32> to vector<8x8xf32>
    %183 = vector.shape_cast %180 : vector<8x8xf32> to vector<1x8x8xf32>
    tpu.vector_store %arg9[%c0_164, %c0_165, %c96], %183 {strides = array<i32>} : memref<1x8x128xf32, #tpu.memory_space<vmem>>, vector<1x8x8xf32>,
    %184 = vector.extract_strided_slice %118 {offsets = [0, 13, 0], sizes = [8, 1, 8], strides = [1, 1, 1]} : vector<8x16x8xf32> to vector<8x1x8xf32>
    %185 = vector.shape_cast %184 : vector<8x1x8xf32> to vector<8x8xf32>
    %c0_166 = arith.constant 0 : index
    %c0_167 = arith.constant 0 : index
    %c104 = arith.constant 104 : index
    %186 = vector.load %arg9[%c0_166, %c0_167, %c104] : memref<1x8x128xf32, #tpu.memory_space<vmem>>, vector<1x8x8xf32>
    %187 = vector.shape_cast %186 : vector<1x8x8xf32> to vector<8x8xf32>
    %188 = vector.shape_cast %185 : vector<8x8xf32> to vector<1x8x8xf32>
    tpu.vector_store %arg9[%c0_166, %c0_167, %c104], %188 {strides = array<i32>} : memref<1x8x128xf32, #tpu.memory_space<vmem>>, vector<1x8x8xf32>,
    %189 = vector.extract_strided_slice %118 {offsets = [0, 14, 0], sizes = [8, 1, 8], strides = [1, 1, 1]} : vector<8x16x8xf32> to vector<8x1x8xf32>
    %190 = vector.shape_cast %189 : vector<8x1x8xf32> to vector<8x8xf32>
    %c0_168 = arith.constant 0 : index
    %c0_169 = arith.constant 0 : index
    %c112 = arith.constant 112 : index
    %191 = vector.load %arg9[%c0_168, %c0_169, %c112] : memref<1x8x128xf32, #tpu.memory_space<vmem>>, vector<1x8x8xf32>
    %192 = vector.shape_cast %191 : vector<1x8x8xf32> to vector<8x8xf32>
    %193 = vector.shape_cast %190 : vector<8x8xf32> to vector<1x8x8xf32>
    tpu.vector_store %arg9[%c0_168, %c0_169, %c112], %193 {strides = array<i32>} : memref<1x8x128xf32, #tpu.memory_space<vmem>>, vector<1x8x8xf32>,
    %194 = vector.extract_strided_slice %118 {offsets = [0, 15, 0], sizes = [8, 1, 8], strides = [1, 1, 1]} : vector<8x16x8xf32> to vector<8x1x8xf32>
    %195 = vector.shape_cast %194 : vector<8x1x8xf32> to vector<8x8xf32>
    %c0_170 = arith.constant 0 : index
    %c0_171 = arith.constant 0 : index
    %c120 = arith.constant 120 : index
    %196 = vector.load %arg9[%c0_170, %c0_171, %c120] : memref<1x8x128xf32, #tpu.memory_space<vmem>>, vector<1x8x8xf32>
    %197 = vector.shape_cast %196 : vector<1x8x8xf32> to vector<8x8xf32>
    %198 = vector.shape_cast %195 : vector<8x8xf32> to vector<1x8x8xf32>
    tpu.vector_store %arg9[%c0_170, %c0_171, %c120], %198 {strides = array<i32>} : memref<1x8x128xf32, #tpu.memory_space<vmem>>, vector<1x8x8xf32>,
    return
  }
  func.func @transform_0(%arg0: i32, %arg1: i32) -> (i32, i32, i32, i32) {
    %c0_i32 = arith.constant 0 : i32
    %c0_i32_0 = arith.constant 0 : i32
    %c0_i32_1 = arith.constant 0 : i32
    %c0_i32_2 = arith.constant 0 : i32
    return %arg0, %c0_i32, %c0_i32_0, %c0_i32_1 : i32, i32, i32, i32
  }
  func.func @transform_1(%arg0: i32, %arg1: i32) -> (i32, i32) {
    %c0_i32 = arith.constant 0 : i32
    %c0_i32_0 = arith.constant 0 : i32
    %c0_i32_1 = arith.constant 0 : i32
    return %c0_i32, %c0_i32_0 : i32, i32
  }
  func.func @transform_2(%arg0: i32, %arg1: i32) -> (i32, i32) {
    %c0_i32 = arith.constant 0 : i32
    %c0_i32_0 = arith.constant 0 : i32
    %c0_i32_1 = arith.constant 0 : i32
    return %c0_i32, %c0_i32_0 : i32, i32
  }
  func.func @transform_3(%arg0: i32, %arg1: i32) -> (i32, i32) {
    %c0_i32 = arith.constant 0 : i32
    %c0_i32_0 = arith.constant 0 : i32
    %c0_i32_1 = arith.constant 0 : i32
    return %c0_i32, %c0_i32_0 : i32, i32
  }
  func.func @transform_4(%arg0: i32, %arg1: i32) -> (i32, i32) {
    %c0_i32 = arith.constant 0 : i32
    %c0_i32_0 = arith.constant 0 : i32
    %c0_i32_1 = arith.constant 0 : i32
    return %c0_i32, %c0_i32_0 : i32, i32
  }
  func.func @transform_5(%arg0: i32, %arg1: i32) -> (i32, i32) {
    %c0_i32 = arith.constant 0 : i32
    %c0_i32_0 = arith.constant 0 : i32
    %c0_i32_1 = arith.constant 0 : i32
    return %c0_i32, %c0_i32_0 : i32, i32
  }
  func.func @transform_6(%arg0: i32, %arg1: i32) -> (i32, i32) {
    %c0_i32 = arith.constant 0 : i32
    %c0_i32_0 = arith.constant 0 : i32
    %c0_i32_1 = arith.constant 0 : i32
    return %c0_i32, %c0_i32_0 : i32, i32
  }
  func.func @transform_7(%arg0: i32, %arg1: i32) -> (i32, i32, i32) {
    %c0_i32 = arith.constant 0 : i32
    %c0_i32_0 = arith.constant 0 : i32
    return %arg0, %arg1, %c0_i32 : i32, i32, i32
  }
}

</mosaic_0001>

<bundles_post_ra>
// kernel: tpu_custom_call.1
= control target key start
LH: loop header
LB: loop body
LE: loop exit
PB: predicated region body
PF: predicated region fallthrough
CT: control target
= control target key end

     0   :  { %s9476_s0 = inlined_call_operand.hbm [shape: f32[2,20,20,4], index: 0, kind: input, shape index: {}]   ;;  %s9477_s1 = inlined_call_operand.hbm [shape: f32[36,8], index: 1, kind: input, shape index: {}]   ;;  %s9478_s2 = inlined_call_operand.hbm [shape: f32[1,8], index: 2, kind: input, shape index: {}]   ;;  %s9479_s3 = inlined_call_operand.hbm [shape: f32[1,8], index: 3, kind: input, shape index: {}]   ;;  %s9480_s4 = inlined_call_operand.hbm [shape: f32[72,8], index: 4, kind: input, shape index: {}]   ;;  %s9481_s5 = inlined_call_operand.hbm [shape: f32[1,8], index: 5, kind: input, shape index: {}]   ;;  %s9482_s6 = inlined_call_operand.hbm [shape: f32[1,8], index: 6, kind: input, shape index: {}]   ;;  %s9483_s7 = inlined_call_operand.hbm [shape: f32[2,16,128], index: 7, kind: output, shape index: {}]  }
   0x1   :  { %9515 = sst [smem:[#allocation28_spill]] %s9476_s0 }
   0x2   :  { %9516 = sst [smem:[#allocation29_spill]] %s9477_s1 }
   0x3   :  { %9517 = sst [smem:[#allocation30_spill]] %s9478_s2 }
   0x4   :  { %9518 = sst [smem:[#allocation31_spill]] %s9479_s3 }
   0x5   :  { %9519 = sst [smem:[#allocation32_spill]] %s9480_s4 }
   0x6   :  { %9520 = sst [smem:[#allocation33_spill]] %s9483_s7 }
   0x7   :  { %12 = vsyncpa [#allocation6], 0 }
   0x8   :  { %14 = vsyncpa [#allocation6 + $0x1], 0 }
   0x9   :  { %15 = vsyncpa [#allocation9], 0 }
   0xa   :  { %16 = vsyncpa [#allocation12], 0 }
   0xb   :  { %17 = vsyncpa [#allocation15], 0 }
   0xc   :  { %18 = vsyncpa [#allocation7], 0 }
   0xd   :  { %20 = vsyncpa [#allocation7 + $0x1], 0  ;;  %s6864_s24 = smov 0   ;;  %s6866_s25 = smov 0  }
   0xe   :  { %s6868_s26 = smov 0   ;;  %s6870_s27 = smov 0  }
   0xf   :  { %s6872_s28 = smov 0   ;;  %s6874_s29 = smov 0  }
  0x10   :  { %s6876_s30 = smov 0   ;;  %s6878_s8 = smov 0  }
  0x11   :  { %s6880_s9 = smov 0   ;;  %s6882_s10 = smov 0  }
  0x12   :  { %s6884_s11 = smov 0  }
  0x13 LB: > { %9521 = sst [smem:[#allocation23_spill]] %s6749_s24  ;;  %s5782_s12 = sadd.s32 4294967295, %s6789_s11   ;;  %s6789_s11 = sphi %s6884_s11, %s26_s11   ;;  %s6785_s10 = sphi %s6882_s10, %s9699_s10   ;;  %s6781_s9 = sphi %s6880_s9, %s9698_s9   ;;  %s6777_s8 = sphi %s6878_s8, %s9697_s8   ;;  %s6773_s30 = sphi %s6876_s30, %s9696_s30   ;;  %s6769_s29 = sphi %s6874_s29, %s9695_s29   ;;  %s6765_s28 = sphi %s6872_s28, %s9694_s28   ;;  %s6761_s27 = sphi %s6870_s27, %s9693_s27   ;;  %s6757_s26 = sphi %s6868_s26, %s9692_s26   ;;  %s6753_s25 = sphi %s6866_s25, %s9691_s25   ;;  %s6749_s24 = sphi %s6864_s24, %s9690_s24  }
  0x14   : > { %9522 = sst [smem:[#allocation24_spill]] %s6773_s30  ;;  %p5784_p0 = scmp.ge.s32.totalorder %s6789_s11, 1 }
  0x15   : > { %9523 = sst [smem:[#allocation25_spill]] %s6777_s8  ;;  %p6921_p1 = scmp.eq.s32.totalorder %s5782_s12, 0 }
  0x16   : > { %p6925_p2 = scmp.eq.s32.totalorder %s5782_s12, 3  ;;  %p223_p3 = scmp.lt.s32.totalorder %s6789_s11, 5 }
  0x17   : > { %s9524_s13 = scalar_select %p6921_p1, 1, 0 }
  0x18   : > { %s9525_s14 = scalar_select %p6925_p2, 1, 0 }
  0x19   : > { %p6930_p4 = pnand %p5784_p0, %p223_p3  ;;  %s6791_s16 = smov [#allocation8]  }
  0x1a   : > { %9526 = sst [smem:[#allocation26_spill]] %s9525_s14  ;;  %s235_s17 = sshll.u32 %s6791_s16, 4  ;;  %s6934_s17 = int_to_ptr.vmem [resolvable:$true] %s235_s17 }
  0x1b   : > { %s9527_s15 = scalar_select %p6930_p4, 1, 0 }
  0x1c   : > { %p6280_p5 = pneg %p6930_p4  ;;  %s6792_s19 = smov [#allocation11]  }
  0x1d   : > { %9528 = sst [smem:[#allocation27_spill]] %s9527_s15  ;;  %s260_s20 = sshll.u32 %s6792_s19, 4  ;;  %s6944_s20 = int_to_ptr.vmem [resolvable:$true] %s260_s20 }
  0x1e   : > { %p6940_p6 = pnand %p6280_p5, %p6921_p1  ;;  %s6793_s21 = smov [#allocation14]  }
  0x1f   : > { %s284_s22 = sshll.u32 %s6793_s21, 4  ;;  %s9530_s1 = sld [smem:[#allocation29_spill]]  ;;  %s6946_s22 = int_to_ptr.vmem [resolvable:$true] %s284_s22 }
  0x20   : > { %p6956_p8 = pneg %p6940_p6 }
  0x25   : > { %s6457_s16 = scalar_lea.hbm %s9530_s1, 640 }
  0x26   : > { %p6458_p7 = scmp.ne.s32.totalorder %s9530_s1, %s6457_s16  ;;  %p6464_p11 = scmp.lt.u32.totalorder %s6457_s16, %s9530_s1 }
  0x28   : > { %p6460_p9 = pnand %p6956_p8, %p6458_p7 }
  0x2a   : > { %p6461_p10 = pneg %p6460_p9 }
  0x2c   : > { %p6466_p12 = pnand %p6464_p11, %p6461_p10 }
  0x2e   : > { %6469 = shalt.err (!%p6466_p12)
}
  0x2f   : > { %s6470_s7 = scalar_lea.vmem %s6934_s17, 640  ;;  %p6478_p5 = scmp.lt.s32.totalorder %s6934_s17, %s6934_s17 }
  0x30   : > { %p6471_p13 = scmp.ne.s32.totalorder %s6934_s17, %s6470_s7  ;;  %p6479_p4 = scmp.lt.s32.totalorder %s6470_s7, %s6470_s7 }
  0x32   : > { %p6473_p0 = pnand %p6471_p13, %p6956_p8  ;;  %p6480_p7 = por %p6479_p4, %p6478_p5 }
  0x34   : > { %p6474_p3 = pneg %p6473_p0 }
  0x36   : > { %p6481_p9 = pnand %p6480_p7, %p6474_p3 }
  0x38   : > { %6484 = shalt.err (!%p6481_p9)
}
  0x39   : > { %s9492_s8 = smov 128   ;;  %s9493_s23 = smov 8  }
  0x3a   : > { %6283 = dma.hbm_to_vmem [thread:$0]  (!%p6940_p6), %s9530_s1, 640, %s6934_s17, [#allocation9], %s9492_s8, %s9492_s8, %s9493_s23  }
  0x3b   : > { %s9532_s3 = sld [smem:[#allocation31_spill]] }
  0x41   : > { %s6485_s7 = scalar_lea.hbm %s9532_s3, 16 }
  0x42   : > { %p6486_p4 = scmp.ne.s32.totalorder %s9532_s3, %s6485_s7  ;;  %p6492_p12 = scmp.lt.u32.totalorder %s6485_s7, %s9532_s3 }
  0x44   : > { %p6488_p10 = pnand %p6486_p4, %p6956_p8 }
  0x46   : > { %p6489_p11 = pneg %p6488_p10 }
  0x48   : > { %p6494_p13 = pnand %p6492_p12, %p6489_p11 }
  0x4a   : > { %6497 = shalt.err (!%p6494_p13)
}
  0x4b   : > { %s6498_s17 = scalar_lea.vmem %s6944_s20, 16  ;;  %s6505_s0 = scalar_lea.vmem %s6944_s20, 32 }
  0x4c   : > { %p6499_p0 = scmp.ne.s32.totalorder %s6944_s20, %s6498_s17  ;;  %p6506_p7 = scmp.lt.s32.totalorder %s6944_s20, %s6944_s20 }
  0x4d   : > { %p6507_p9 = scmp.lt.s32.totalorder %s6505_s0, %s6498_s17 }
  0x4e   : > { %p6501_p3 = pnand %p6499_p0, %p6956_p8 }
  0x4f   : > { %p6508_p4 = por %p6507_p9, %p6506_p7 }
  0x50   : > { %p6502_p5 = pneg %p6501_p3 }
  0x52   : > { %p6509_p10 = pnand %p6508_p4, %p6502_p5 }
  0x54   : > { %6512 = shalt.err (!%p6509_p10)
}
  0x55   : > { %6289 = dma.hbm_to_vmem [thread:$0]  (!%p6940_p6), %s9532_s3, 16, %s6944_s20, [#allocation12]  }
  0x56   : > { %s6513_s16 = scalar_lea.hbm %s9481_s5, 16 }
  0x57   : > { %p6514_p11 = scmp.ne.s32.totalorder %s9481_s5, %s6513_s16  ;;  %p6520_p0 = scmp.lt.u32.totalorder %s6513_s16, %s9481_s5 }
  0x59   : > { %p6516_p12 = pnand %p6514_p11, %p6956_p8 }
  0x5b   : > { %p6517_p13 = pneg %p6516_p12 }
  0x5d   : > { %p6522_p3 = pnand %p6520_p0, %p6517_p13 }
  0x5f   : > { %6525 = shalt.err (!%p6522_p3)
}
  0x60   : > { %s6526_s20 = scalar_lea.vmem %s6946_s22, 16  ;;  %s6533_s0 = scalar_lea.vmem %s6946_s22, 32 }
  0x61   : > { %p6527_p5 = scmp.ne.s32.totalorder %s6946_s22, %s6526_s20  ;;  %p6534_p4 = scmp.lt.s32.totalorder %s6946_s22, %s6946_s22 }
  0x62   : > { %p6535_p10 = scmp.lt.s32.totalorder %s6533_s0, %s6526_s20 }
  0x63   : > { %p6529_p7 = pnand %p6527_p5, %p6956_p8 }
  0x64   : > { %p6536_p11 = por %p6535_p10, %p6534_p4 }
  0x65   : > { %p6530_p9 = pneg %p6529_p7 }
  0x67   : > { %p6537_p12 = pnand %p6536_p11, %p6530_p9 }
  0x69   : > { %6540 = shalt.err (!%p6537_p12)
}
  0x6a   : > { %6295 = dma.hbm_to_vmem [thread:$0]  (!%p6940_p6), %s9481_s5, 16, %s6946_s22, [#allocation15]  }
  0x6b   : > { %s6796_s15 = smov [#allocation10]   ;;  %s6797_s16 = smov [#allocation13]  }
  0x6c   : > { %s249_s12 = sshll.u32 %s6796_s15, 4  ;;  %s270_s19 = sshll.u32 %s6797_s16, 4  ;;  %s250_s12 = int_to_ptr.vmem [resolvable:$true] %s249_s12  ;;  %s7028_s19 = int_to_ptr.vmem [resolvable:$true] %s270_s19 }
  0x6d   : > { %s9533_s2 = sld [smem:[#allocation30_spill]] }
  0x73   : > { %s6541_s17 = scalar_lea.hbm %s9533_s2, 16 }
  0x74   : > { %p6542_p13 = scmp.ne.s32.totalorder %s9533_s2, %s6541_s17  ;;  %p6548_p5 = scmp.lt.u32.totalorder %s6541_s17, %s9533_s2 }
  0x76   : > { %p6544_p0 = pnand %p6542_p13, %p6956_p8 }
  0x78   : > { %p6545_p3 = pneg %p6544_p0 }
  0x7a   : > { %p6550_p7 = pnand %p6548_p5, %p6545_p3 }
  0x7c   : > { %6553 = shalt.err (!%p6550_p7)
}
  0x7d   : > { %s6554_s14 = scalar_lea.vmem %s250_s12, 16  ;;  %s6561_s15 = scalar_lea.vmem %s250_s12, 32 }
  0x7e   : > { %p6555_p9 = scmp.ne.s32.totalorder %s250_s12, %s6554_s14  ;;  %p6562_p11 = scmp.lt.s32.totalorder %s250_s12, %s250_s12 }
  0x7f   : > { %p6563_p12 = scmp.lt.s32.totalorder %s6561_s15, %s6554_s14 }
  0x80   : > { %p6557_p4 = pnand %p6555_p9, %p6956_p8 }
  0x81   : > { %p6564_p2 = por %p6563_p12, %p6562_p11 }
  0x82   : > { %p6558_p10 = pneg %p6557_p4 }
  0x84   : > { %p6565_p1 = pnand %p6564_p2, %p6558_p10 }
  0x86   : > { %6568 = shalt.err (!%p6565_p1)
}
  0x87   : > { %6286 = dma.hbm_to_vmem [thread:$0]  (!%p6940_p6), %s9533_s2, 16, %s250_s12, [#allocation9]  }
  0x88   : > { %s9534_s4 = sld [smem:[#allocation32_spill]] }
  0x8e   : > { %s6569_s20 = scalar_lea.hbm %s9534_s4, 1152 }
  0x8f   : > { %p6570_p13 = scmp.ne.s32.totalorder %s9534_s4, %s6569_s20  ;;  %p6576_p1 = scmp.lt.u32.totalorder %s6569_s20, %s9534_s4 }
  0x91   : > { %p6572_p0 = pnand %p6570_p13, %p6956_p8 }
  0x93   : > { %p6573_p3 = pneg %p6572_p0 }
  0x95   : > { %p6578_p2 = pnand %p6576_p1, %p6573_p3 }
  0x97   : > { %6581 = shalt.err (!%p6578_p2)
}
  0x98   : > { %s6582_s12 = scalar_lea.vmem %s7028_s19, 1152  ;;  %p6590_p4 = scmp.lt.s32.totalorder %s7028_s19, %s7028_s19 }
  0x99   : > { %p6583_p5 = scmp.ne.s32.totalorder %s7028_s19, %s6582_s12  ;;  %p6591_p10 = scmp.lt.s32.totalorder %s6582_s12, %s6582_s12 }
  0x9b   : > { %p6585_p7 = pnand %p6583_p5, %p6956_p8  ;;  %p6592_p11 = por %p6591_p10, %p6590_p4 }
  0x9d   : > { %p6586_p9 = pneg %p6585_p7 }
  0x9f   : > { %p6593_p12 = pnand %p6592_p11, %p6586_p9 }
  0xa1   : > { %6596 = shalt.err (!%p6593_p12)
}
  0xa2   : > { %6292 = dma.hbm_to_vmem [thread:$0]  (!%p6940_p6), %s9534_s4, 1152, %s7028_s19, [#allocation12], %s9492_s8, %s9492_s8, %s9493_s23  }
  0xa3   : > { %s6798_s21 = smov [#allocation16]   ;;  %s6597_s0 = scalar_lea.hbm %s9482_s6, 16 }
  0xa4   : > { %s295_s7 = sshll.u32 %s6798_s21, 4  ;;  %p6598_p13 = scmp.ne.s32.totalorder %s9482_s6, %s6597_s0  ;;  %s296_s7 = int_to_ptr.vmem [resolvable:$true] %s295_s7 }
  0xa5   : > { %p6604_p1 = scmp.lt.u32.totalorder %s6597_s0, %s9482_s6 }
  0xa6   : > { %p6600_p0 = pnand %p6598_p13, %p6956_p8 }
  0xa8   : > { %p6601_p3 = pneg %p6600_p0 }
  0xaa   : > { %p6606_p2 = pnand %p6604_p1, %p6601_p3 }
  0xac   : > { %6609 = shalt.err (!%p6606_p2)
}
  0xad   : > { %s6610_s19 = scalar_lea.vmem %s296_s7, 16  ;;  %s6617_s15 = scalar_lea.vmem %s296_s7, 32 }
  0xae   : > { %p6611_p5 = scmp.ne.s32.totalorder %s296_s7, %s6610_s19  ;;  %p6618_p4 = scmp.lt.s32.totalorder %s296_s7, %s296_s7 }
  0xaf   : > { %p6619_p10 = scmp.lt.s32.totalorder %s6617_s15, %s6610_s19 }
  0xb0   : > { %p6613_p7 = pnand %p6611_p5, %p6956_p8 }
  0xb1   : > { %p6620_p11 = por %p6619_p10, %p6618_p4 }
  0xb2   : > { %p6614_p9 = pneg %p6613_p7 }
  0xb4   : > { %p6621_p12 = pnand %p6620_p11, %p6614_p9 }
  0xb6   : > { %6624 = shalt.err (!%p6621_p12)
}
  0xb7   : > { %6298 = dma.hbm_to_vmem [thread:$0]  (!%p6940_p6), %s9482_s6, 16, %s296_s7, [#allocation15]  }
  0xb8   : > { %s5783_s30 = sadd.s32 4294967294, %s6789_s11   ;;  %s35_s18 = sadd.s32 1, %s6781_s9 }
  0xb9   : > { %s9535_s17 = sld [smem:[#allocation23_spill]]  ;;  %s38_s20 = sadd.s32 1, %s6785_s10 }
  0xba   : > { %p36_p8 = scmp.ge.s32.totalorder %s35_s18, 2  ;;  %s45_s0 = sadd.s32 1, %s6769_s29 }
  0xbb   : > { %p52_p13 = scmp.ne.s32.totalorder %s6769_s29, %s6765_s28  ;;  %p53_p0 = scmp.eq.s32.totalorder %s6789_s11, 0 }
  0xbc   : > { %s9701_s18 = smov (%p36_p8, %s35_s18), 0  ;;  %s9536_s24 = sld [smem:[#allocation26_spill]] }
  0xbd   : > { %s9703_s20 = smov (!%p36_p8, %s38_s20), %s6785_s10  ;;  %p7102_p3 = por %p53_p0, %p52_p13 }
  0xbe   : > { %p58_p6 = scmp.ne.s32.totalorder %s6765_s28, %s6761_s27  ;;  %p40_p1 = scmp.ge.s32.totalorder %s9703_s20, 2 }
  0xbf   : > { %s195_s22 = ssub.s32 %s6781_s9, %s9701_s18  ;;  %p9538_p2 = scmp.ne.s32.totalorder %s9524_s13, 0 }
  0xc0   : > { %s199_s12 = sadd.s32 1, %s6757_s26  ;;  %s9705_s20 = smov (%p40_p1, %s9703_s20), 0 }
  0xc1   : > { %p7112_p5 = por %p9538_p2, %p58_p6  ;;  %p209_p7 = scmp.ne.s32.totalorder %s6757_s26, %s6753_s25 }
  0xc2   : > { %p215_p9 = scmp.ne.s32.totalorder %s6753_s25, %s9535_s17  ;;  %s42_s19 = ssub.s32 %s6785_s10, %s9705_s20 }
  0xc3   : > { %p216_p4 = scmp.eq.s32.totalorder %s5783_s30, 3  ;;  %p43_p10 = scmp.eq.s32.totalorder %s42_s19, 0 }
  0xc4   : > { %s196_s27 = sor.u32 %s195_s22, %s42_s19  ;;  %p9540_p12 = scmp.ne.s32.totalorder %s9536_s24, 0 }
  0xc5   : > { %p197_p11 = scmp.eq.s32.totalorder %s196_s27, 0  ;;  %p7137_p13 = por %p216_p4, %p215_p9 }
  0xc6   : > { %p7127_p8 = por %p9540_p12, %p209_p7  ;;  %p6313_p0 = scmp.lt.s32.totalorder %s6789_s11, 4 }
  0xc7   : > { %s7132_s16 = scalar_select %p43_p10, %s6769_s29, %s45_s0  }
  0xc8   : > { %s9541_s15 = scalar_select %p7127_p8, 1, 0 }
  0xc9   : > { %s7135_s21 = scalar_select %p197_p11, %s6757_s26, %s199_s12  }
  0xca   : > { %s9542_s8 = scalar_select %p7137_p13, 1, 0 }
  0xcb   : > { %s306_s17 = sand.u32 1, %s6769_s29   ;;  %s6250_s23 = smul.u32 7680, %s6785_s10 }
  0xcc   : > { %s6249_s30 = smul.u32 480, %s306_s17  ;;  %p7146_p6 = pnand %p6313_p0, %p7102_p3 }
  0xcd   : > { %s9544_s27 = sld [smem:[#allocation28_spill]]  ;;  %s7157_s7 = scalar_lea.sflag [#allocation6], %s306_s17 }
  0xce   : > { %s310_s12 = scalar_lea.vmem [#allocation5], %s6249_s30  ;;  %p6627_p1 = pneg %p7146_p6 }
  0xcf   : > { %s317_s2 = sshll.u32 %s310_s12, 4  ;;  %s7155_s2 = int_to_ptr.vmem [resolvable:$true] %s317_s2 }
  0xd3   : > { %s9545_s1 = smov %s9544_s27  ;;  %s7153_s0 = scalar_lea.hbm %s9544_s27, %s6250_s23 }
  0xd4   : > { %s6625_s3 = scalar_lea.hbm %s7153_s0, 7680  ;;  %s6630_s19 = scalar_lea.hbm %s9545_s1, 15360 }
  0xd5   : > { %p6626_p3 = scmp.ne.s32.totalorder %s7153_s0, %s6625_s3  ;;  %p6631_p9 = scmp.lt.u32.totalorder %s7153_s0, %s9545_s1 }
  0xd6   : > { %p6632_p4 = scmp.lt.u32.totalorder %s6630_s19, %s6625_s3  ;;  %p6634_p11 = scmp.lt.u32.totalorder %s6625_s3, %s7153_s0 }
  0xd7   : > { %p6628_p2 = pnand %p6627_p1, %p6626_p3 }
  0xd8   : > { %p6633_p10 = por %p6632_p4, %p6631_p9 }
  0xd9   : > { %p6629_p7 = pneg %p6628_p2 }
  0xda   : > { %p6635_p12 = por %p6634_p11, %p6633_p10 }
  0xdc   : > { %p6636_p0 = pnand %p6635_p12, %p6629_p7 }
  0xde   : > { %6639 = shalt.err (!%p6636_p0)
}
  0xdf   : > { %s6640_s17 = scalar_lea.vmem %s7155_s2, 7680  ;;  %s6799_s30 = smov [#allocation5]  }
  0xe0   : > { %p6641_p3 = scmp.ne.s32.totalorder %s7155_s2, %s6640_s17  ;;  %s6645_s12 = sshll.u32 %s6799_s30, 4  ;;  %s6646_s12 = int_to_ptr.vmem [resolvable:$false] %s6645_s12 }
  0xe1   : > { %s6647_s4 = scalar_lea.vmem %s6646_s12, 15360  ;;  %p6648_p8 = scmp.lt.s32.totalorder %s7155_s2, %s6646_s12 }
  0xe2   : > { %p6643_p2 = pnand %p6641_p3, %p6627_p1  ;;  %p6649_p9 = scmp.lt.s32.totalorder %s6647_s4, %s6640_s17 }
  0xe4   : > { %p6644_p13 = pneg %p6643_p2  ;;  %p6650_p4 = por %p6649_p9, %p6648_p8 }
  0xe6   : > { %p6651_p10 = pnand %p6650_p4, %p6644_p13 }
  0xe8   : > { %6654 = shalt.err (!%p6651_p10)
}
  0xe9   : > { %s9546_s3 = smov 8   ;;  %s9547_s23 = smov 128  }
  0xea   : > { %6302 = dma.hbm_to_vmem [thread:$0]  (!%p7146_p6), %s7153_s0, 7680, %s7155_s2, %s7157_s7, %s9547_s23, %s9547_s23, %s9546_s3  }
  0xeb   : > { %s9548_s24 = sld [smem:[#allocation27_spill]] }
  0xf1   : > { %p9549_p1 = scmp.ne.s32.totalorder %s9548_s24, 0 }
  0xf2   : > { %s331_s19 = sand.u32 (!%p9549_p1), 1, %s6765_s28  }
  0xf3   : > { %329 = sbr.rel (%p9549_p1) target bundleno = 1674 (0x68a), region = 48  ;;  %s332_s17 = scalar_lea.sflag (!%p9549_p1), [#allocation6], %s331_s19 }
  0xf4   : > { %s6251_s27 = smul.u32 (!%p9549_p1), 480, %s331_s19 }
  0xf6   : > { %s335_s30 = scalar_lea.vmem (!%p9549_p1), [#allocation5], %s6251_s27 }
  0xfa   : > { %6728 = dma.done.wait (%p7112_p5), %s332_s17, 7680  }
  0xfb   : > { %6730 = vsyncadd (%p7112_p5), %s332_s17, 4294959616  ;;  %p9550_p8 = scmp.ne.s32.totalorder %s9524_s13, 0 }
  0xfd   : > { %6732 = dma.done.wait (%p9550_p8), [#allocation9], 656  }
  0xfe   : > { %6734 = vsyncadd (%p9550_p8), [#allocation9], 4294966640 }
  0xff   : > { %6736 = dma.done.wait (%p9550_p8), [#allocation12], 1168  }
 0x100   : > { %6738 = vsyncadd (%p9550_p8), [#allocation12], 4294966128 }
 0x101   : > { %6740 = dma.done.wait (%p9550_p8), [#allocation15], 32  }
 0x102   : > { %6742 = vsyncadd (%p9550_p8), [#allocation15], 4294967264  ;;  %s9551_s2 = sld [smem:[#allocation24_spill]]  ;;  %s6800_s0 = smov 4   ;;  %vm9498_vm0 = vcmask 31744   ;;  %vm9497_vm1 = vcmask 25600  }
 0x103   : > { %s6801_s13 = smov 8   ;;  %s6802_s7 = smov 16   ;;  %v2387_v43 = vld [vmem:[#allocation8] sm:$0xff]  ;;  %v2388_v44 = vld [vmem:[#allocation8 + $0x8] sm:$0xff]  ;;  %v6808_v46 = vmov 0.0|0.0   ;;  %v2389_v47 = vld [vmem:[#allocation8 + $0x10] sm:$0xff] }
 0x104   : > { %s6803_s12 = smov 12   ;;  %s6804_s4 = smov 20   ;;  %v6222_v45 = vpack.c.bf16 %v2388_v44, %v2387_v43  ;;  %6221 = vmatprep.subr.bf16.mxu0 %v6808_v46  ;;  %6243 = vmatprep.subr.bf16.mxu1 %v6808_v46  ;;  %v2390_v48 = vld [vmem:[#allocation8 + $0x18] sm:$0xff]  ;;  %v2391_v51 = vld [vmem:[#allocation8 + $0x20] sm:$0xf]  ;;  %vm2821_vm2 = vcmask 1043456  }
 0x105   : > { %s6805_s3 = smov 24   ;;  %s6806_s23 = smov 28   ;;  %v6225_v49 = vpack.c.bf16 %v2390_v48, %v2389_v47  ;;  %v6809_v52 = vmov 0.0   ;;  %vm6810_vm3 = vmmov 0   ;;  %vm9495_vm4 = vcmask 58400  }
 0x106   : > { %s6807_s24 = smov 32   ;;  %6223 = vmatpush3.bf16.msra.mxu0 %v6222_v45  ;;  %6246 = vmatpush3.bf16.msra.mxu1 %v6222_v45  ;;  %vm9496_vm5 = vcmask 64544   ;;  %vm787_vm6 = vcmask 97344   ;;  %vm9509_vm7 = vcmask 130144   ;;  %vm9508_vm8 = vcmask 162944   ;;  %s6812_s17 = smov 40  }
 0x107   : > { %6224 = vmatprep.subr.bf16.mxu0 %v6808_v46  ;;  %6244 = vmatprep.subr.bf16.mxu1 %v6808_v46  ;;  %vm1336_vm9 = vcmask 195744   ;;  %vm1521_vm10 = vcmask 228544   ;;  %vm1703_vm11 = vcmask 261344   ;;  %vm9506_vm12 = vcmask 294144   ;;  %p9687_p13 = scmp.ne.s32.totalorder %s9541_s15, 0 }
 0x108   : > { %s5802_s14 = smul.u32 192, %s9551_s2  ;;  %6110 = vmatprep.mubr.msk.f32.mxu0 %vm6810_vm3, %v6809_v52  ;;  %6158 = vmatprep.mubr.msk.f32.mxu1 %vm6810_vm3, %v6809_v52  ;;  %vm9505_vm13 = vcmask 91200   ;;  %vm2774_vm14 = vcmask 293888   ;;  %vm9501_vm15 = vcmask 124000   ;;  %s5801_s19 = sshll.u32 %s9551_s2, 3 }
 0x109   : > { %s6023_s27 = sadd.s32 4294967295, %s5801_s19  ;;  %s6820_s19 = smov 72  }
 0x10a   : > { %s7208_s22 = scalar_lea.vmem %s335_s30, %s5802_s14 [#allocation5]  ;;  %6226 = vmatpush3.bf16.msra.mxu0 %v6225_v49  ;;  %6247 = vmatpush3.bf16.msra.mxu1 %v6225_v49  ;;  %s6813_s30 = smov 48  }
 0x10b   : > { %v457_v0 = vld [vmem:[%s7208_s22 + $0x11] sm:$0x3]  ;;  %v455_v1 = vld [vmem:[%s7208_s22 + $0x1] sm:$0xff]  ;;  %v7215_v2 = vld [vmem:[%s7208_s22 + $0x19] sm:$0xff]  ;;  %6108 = vmatprep.subr.mxu0 %v6809_v52  ;;  %6245 = vmatprep.subr.mxu1 %v6809_v52  ;;  %s9514_s14 = smov 56  }
 0x10c   : > { %519 = vrot.lane.b32.xlu1 %v457_v0, %s6800_s0  ;;  %515 = vrot.lane.b32.xlu0 %v455_v1, %s6800_s0  ;;  %v456_v3 = vld [vmem:[%s7208_s22 + $0x9] sm:$0xff]  ;;  %v7223_v5 = vld [vmem:[%s7208_s22 + $0x21] sm:$0xff] }
 0x10d   : > { %v460_v4 = vld [vmem:[%s7208_s22 + $0x29] sm:$0x3]  ;;  %v7226_v6 = vld [vmem:[%s7208_s22 + $0x18] sm:$0xff]  ;;  %v7229_v7 = vld [vmem:[%s7208_s22 + $0x20] sm:$0xff] }
 0x10e   : > { %v7232_v8 = vld [vmem:[%s7208_s22 + $0x30] sm:$0xff]  ;;  %428 = vst.msk [vmem:[#allocation2 + $0x18] sm:$0xff] %vm9498_vm0, %v7226_v6  ;;  %429 = vst.msk [vmem:[#allocation2 + $0x20] sm:$0xff] %vm9498_vm0, %v7229_v7  ;;  %v7244_v9 = vld [vmem:[%s7208_s22 + $0x39] sm:$0xff]  ;;  %6109 = vmatpush3.msk.msra.mxu0 %vm2821_vm2, %v2391_v51  ;;  %6248 = vmatpush3.msk.msra.mxu1 %vm2821_vm2, %v2391_v51  ;;  %vm9500_vm2 = vcmask 156800  }
 0x10f   : > { %431 = vst.msk [vmem:[#allocation2 + $0x30] sm:$0xff] %vm9498_vm0, %v7232_v8  ;;  %v7247_v10 = vld [vmem:[%s7208_s22 + $0x31] sm:$0xff]  ;;  %v7253_v12 = vld [vmem:[%s7208_s22 + $0x48] sm:$0xff]  ;;  %v463_v15 = vld [vmem:[%s7208_s22 + $0x41] sm:$0x3] }
 0x110   : > { %521 = vrot.lane.b32.xlu1 %v7215_v2, %s6800_s0  ;;  %517 = vrot.lane.b32.xlu0 %v456_v3, %s6800_s0  ;;  %v7250_v11 = vld [vmem:[%s7208_s22 + $0x38] sm:$0xff]  ;;  %434 = vst.msk [vmem:[#allocation2 + $0x48] sm:$0xff] %vm9498_vm0, %v7253_v12  ;;  %v7264_v13 = vld [vmem:[%s7208_s22 + $0x50] sm:$0xff] }
 0x111   : > { %432 = vst.msk [vmem:[#allocation2 + $0x38] sm:$0xff] %vm9498_vm0, %v7250_v11  ;;  %v7267_v14 = vld [vmem:[%s7208_s22 + $0x49] sm:$0xff]  ;;  %435 = vst.msk [vmem:[#allocation2 + $0x50] sm:$0xff] %vm9498_vm0, %v7264_v13  ;;  %v393_v17 = vld [vmem:[%s7208_s22] sm:$0xff] }
 0x112   : > { %v395_v16 = vld [vmem:[%s7208_s22 + $0x10] sm:$0x3]  ;;  %v394_v18 = vld [vmem:[%s7208_s22 + $0x8] sm:$0xff]  ;;  %424 = vst.msk [vmem:[#allocation2] sm:$0xff] %vm9498_vm0, %v393_v17  ;;  %v7279_v19 = vld [vmem:[%s7208_s22 + $0x60] sm:$0xff] }
 0x113   : > { %427 = vst.msk [vmem:[#allocation2 + $0x10] sm:$0x3] %vm9497_vm1, %v395_v16  ;;  %v398_v20 = vld [vmem:[%s7208_s22 + $0x28] sm:$0x3]  ;;  %v401_v21 = vld [vmem:[%s7208_s22 + $0x40] sm:$0x3] }
 0x114   : > { %525 = vrot.lane.b32.xlu1 %v460_v4, %s6800_s0  ;;  %523 = vrot.lane.b32.xlu0 %v7223_v5, %s6800_s0  ;;  %425 = vst.msk [vmem:[#allocation2 + $0x8] sm:$0xff] %vm9498_vm0, %v394_v18  ;;  %437 = vst.msk [vmem:[#allocation2 + $0x60] sm:$0xff] %vm9498_vm0, %v7279_v19  ;;  %v466_v22 = vld [vmem:[%s7208_s22 + $0x59] sm:$0x3]  ;;  %v7291_v23 = vld [vmem:[%s7208_s22 + $0x51] sm:$0xff] }
 0x115   : > { %430 = vst.msk [vmem:[#allocation2 + $0x28] sm:$0x3] %vm9497_vm1, %v398_v20  ;;  %433 = vst.msk [vmem:[#allocation2 + $0x40] sm:$0x3] %vm9497_vm1, %v401_v21  ;;  %v404_v24 = vld [vmem:[%s7208_s22 + $0x58] sm:$0x3] }
 0x116   : > { %436 = vst.msk [vmem:[#allocation2 + $0x58] sm:$0x3] %vm9497_vm1, %v404_v24  ;;  %v7297_v25 = vld [vmem:[%s7208_s22 + $0x68] sm:$0xff]  ;;  %v7302_v26 = vld [vmem:[%s7208_s22 + $0x78] sm:$0xff]  ;;  %v407_v27 = vld [vmem:[%s7208_s22 + $0x70] sm:$0x3] }
 0x117   : > { %438 = vst.msk [vmem:[#allocation2 + $0x68] sm:$0xff] %vm9498_vm0, %v7297_v25  ;;  %v410_v28 = vld [vmem:[%s7208_s22 + $0x88] sm:$0x3]  ;;  %440 = vst.msk [vmem:[#allocation2 + $0x78] sm:$0xff] %vm9498_vm0, %v7302_v26  ;;  %v7314_v29 = vld [vmem:[%s7208_s22 + $0x80] sm:$0xff] }
 0x118   : > { %529 = vrot.lane.b32.xlu1 %v7244_v9, %s6800_s0  ;;  %527 = vrot.lane.b32.xlu0 %v7247_v10, %s6800_s0  ;;  %439 = vst.msk [vmem:[#allocation2 + $0x70] sm:$0x3] %vm9497_vm1, %v407_v27  ;;  %442 = vst.msk [vmem:[#allocation2 + $0x88] sm:$0x3] %vm9497_vm1, %v410_v28  ;;  %v7317_v30 = vld [vmem:[%s7208_s22 + $0x69] sm:$0xff]  ;;  %v7320_v31 = vld [vmem:[%s7208_s22 + $0x61] sm:$0xff] }
 0x119   : > { %441 = vst.msk [vmem:[#allocation2 + $0x80] sm:$0xff] %vm9498_vm0, %v7314_v29  ;;  %v7325_v32 = vld [vmem:[%s7208_s22 + $0x90] sm:$0xff]  ;;  %v7334_v33 = vld [vmem:[%s7208_s22 + $0x79] sm:$0xff]  ;;  %v472_v35 = vld [vmem:[%s7208_s22 + $0x89] sm:$0x3]  ;;  %vm9503_vm1 = vcmask 255200  }
 0x11a   : > { %443 = vst.msk [vmem:[#allocation2 + $0x90] sm:$0xff] %vm9498_vm0, %v7325_v32  ;;  %v469_v34 = vld [vmem:[%s7208_s22 + $0x71] sm:$0x3]  ;;  %v7342_v36 = vld [vmem:[%s7208_s22 + $0x81] sm:$0xff]  ;;  %v5837_v55 = vld [vmem:[%s7208_s22 + $0x29] sm:$0x3] }
 0x11b   : > { %v637_v37 = vld [vmem:[%s7208_s22 + $0x2] sm:$0xff]  ;;  %v7349_v38 = vld [vmem:[%s7208_s22 + $0x91] sm:$0xff]  ;;  %v5865_v40 = vld [vmem:[%s7208_s22 + $0x1a] sm:$0xff] }
 0x11c   : > { %533 = vrot.lane.b32.xlu1 %v7267_v14, %s6800_s0  ;;  %531 = vrot.lane.b32.xlu0 %v463_v15, %s6800_s0  ;;  %v638_v39 = vld [vmem:[%s7208_s22 + $0xa] sm:$0xff]  ;;  %v5866_v41 = vld [vmem:[%s7208_s22 + $0x22] sm:$0xff] }
 0x11d   : > { %v5957_v42 = vld [vmem:[%s7208_s22 + $0x32] sm:$0xff]  ;;  %v5958_v50 = vld [vmem:[%s7208_s22 + $0x3a] sm:$0xff]  ;;  %v5807_v54 = vld [vmem:[%s7208_s22 + $0x28] sm:$0x3] }
 0x11e   : > { %v639_v53 = vld [vmem:[%s7208_s22 + $0x12] sm:$0x3]  ;;  %v7406_v56 = vld [vmem:[%s7208_s22 + $0x4a] sm:$0xff]  ;;  %v5899_v58 = vld [vmem:[%s7208_s22 + $0x40] sm:$0x3] }
 0x11f   : > { %v5867_v57 = vld [vmem:[%s7208_s22 + $0x2a] sm:$0x3]  ;;  %v5929_v59 = vld [vmem:[%s7208_s22 + $0x41] sm:$0x3]  ;;  %v7431_v61 = vld [vmem:[%s7208_s22 + $0x52] sm:$0xff] }
 0x120   : > { %537 = vrot.lane.b32.xlu1 %v466_v22, %s6800_s0  ;;  %535 = vrot.lane.b32.xlu0 %v7291_v23, %s6800_s0  ;;  %v5959_v60 = vld [vmem:[%s7208_s22 + $0x42] sm:$0x3]  ;;  %v642_v62 = vld [vmem:[%s7208_s22 + $0x2a] sm:$0x3] }
 0x121   : > { %v5810_v1 = vld [vmem:[%s7208_s22 + $0x40] sm:$0x3]  ;;  %v7446_v4 = vld [vmem:[%s7208_s22 + $0xa8] sm:$0xff]  ;;  %v5902_v15 = vld [vmem:[%s7208_s22 + $0x58] sm:$0x3] }
 0x122   : > { %446 = vst.msk [vmem:[#allocation2 + $0xa8] sm:$0xff] %vm9498_vm0, %v7446_v4  ;;  %v5932_v18 = vld [vmem:[%s7208_s22 + $0x59] sm:$0x3]  ;;  %v7498_v24 = vld [vmem:[%s7208_s22 + $0x6a] sm:$0xff] }
 0x123   : > { %v5962_v27 = vld [vmem:[%s7208_s22 + $0x5a] sm:$0x3] }
 0x124   : > { %541 = vrot.lane.b32.xlu1 %v7317_v30, %s6800_s0  ;;  %539 = vrot.lane.b32.xlu0 %v7320_v31, %s6800_s0  ;;  %v5843_v45 = vld [vmem:[%s7208_s22 + $0x59] sm:$0x3] }
 0x125   : > { %v5873_v47 = vld [vmem:[%s7208_s22 + $0x5a] sm:$0x3] }
 0x128   : > { %545 = vrot.lane.b32.xlu1 %v7334_v33, %s6800_s0  ;;  %543 = vrot.lane.b32.xlu0 %v469_v34, %s6800_s0 }
 0x12c   : > { %549 = vrot.lane.b32.xlu1 %v472_v35, %s6800_s0  ;;  %547 = vrot.lane.b32.xlu0 %v7342_v36, %s6800_s0  ;;  %v645_v35 = vld [vmem:[%s7208_s22 + $0x42] sm:$0x3] }
 0x130   : > { %697 = vrot.lane.b32.xlu1 %v637_v37, %s6801_s13  ;;  %551 = vrot.lane.b32.xlu0 %v7349_v38, %s6800_s0 }
 0x134   : > { %1064 = vrot.lane.b32.xlu1 %v7215_v2, %s6802_s7  ;;  %882 = vrot.lane.b32.xlu0 %v7226_v6, %s6803_s12 }
 0x138   : > { %699 = vrot.lane.b32.xlu1 %v638_v39, %s6801_s13  ;;  %1246 = vrot.lane.b32.xlu0 %v5865_v40, %s6804_s4 }
 0x13c   : > { %884 = vrot.lane.b32.xlu1 %v7229_v7, %s6803_s12  ;;  %1431 = vrot.lane.b32.xlu0 %v7232_v8, %s6805_s3  ;;  %v5840_v7 = vld [vmem:[%s7208_s22 + $0x41] sm:$0x3] }
 0x140   : > { %1066 = vrot.lane.b32.xlu1 %v7223_v5, %s6802_s7  ;;  %1613 = vrot.lane.b32.xlu0 %v7247_v10, %s6806_s23 }
 0x144   : > { %1248 = vrot.lane.b32.xlu1 %v5866_v41, %s6804_s4  ;;  %1795 = vrot.lane.b32.xlu0 %v5957_v42, %s6807_s24 }
 0x148   : > { %1615 = vrot.lane.b32.xlu1 %v7244_v9, %s6806_s23  ;;  %1433 = vrot.lane.b32.xlu0 %v7250_v11, %s6805_s3 }
 0x14c   : > { %1797 = vrot.lane.b32.xlu1 %v5958_v50, %s6807_s24  ;;  %703 = vrot.lane.b32.xlu0 %v5865_v40, %s6801_s13  ;;  %v7510_v40 = vld [vmem:[%s7208_s22 + $0xb0] sm:$0xff] }
 0x14d   : > { %447 = vst.msk [vmem:[#allocation2 + $0xb0] sm:$0xff] %vm9498_vm0, %v7510_v40 }
 0x150   : > { %1070 = vrot.lane.b32.xlu1 %v7247_v10, %s6802_s7  ;;  %888 = vrot.lane.b32.xlu0 %v7232_v8, %s6803_s12  ;;  %v7463_v10 = vld [vmem:[%s7208_s22 + $0xc0] sm:$0xff] }
 0x151   : > { %449 = vst.msk [vmem:[#allocation2 + $0xc0] sm:$0xff] %vm9498_vm0, %v7463_v10  ;;  %vm9502_vm0 = vcmask 288000  }
 0x154   : > { %701 = vrot.lane.b32.xlu1 %v639_v53, %s6801_s13  ;;  %1252 = vrot.lane.b32.xlu0 %v5957_v42, %s6804_s4  ;;  %v1981_v53 = vlaneseq }
 0x158   : > { %1437 = vrot.lane.b32.xlu1 %v7253_v12, %s6805_s3  ;;  %705 = vrot.lane.b32.xlu0 %v5866_v41, %s6801_s13  ;;  %v5813_v41 = vld [vmem:[%s7208_s22 + $0x58] sm:$0x3] }
 0x15c   : > { %890 = vrot.lane.b32.xlu1 %v7250_v11, %s6803_s12  ;;  %886 = vrot.lane.b32.xlu0 %v5807_v54, %s6803_s12  ;;  %v5870_v11 = vld [vmem:[%s7208_s22 + $0x42] sm:$0x3] }
 0x160   : > { %1068 = vrot.lane.b32.xlu1 %v5837_v55, %s6802_s7  ;;  %1619 = vrot.lane.b32.xlu0 %v7267_v14, %s6806_s23 }
 0x164   : > { %1801 = vrot.lane.b32.xlu1 %v7406_v56, %s6807_s24  ;;  %1072 = vrot.lane.b32.xlu0 %v7244_v9, %s6802_s7 }
 0x168   : > { %1254 = vrot.lane.b32.xlu1 %v5958_v50, %s6804_s4  ;;  %1250 = vrot.lane.b32.xlu0 %v5867_v57, %s6804_s4  ;;  %v7543_v57 = vshrl.u32 %v1981_v53, 7 }
 0x16c   : > { %1435 = vrot.lane.b32.xlu1 %v5899_v58, %s6805_s3  ;;  %709 = vrot.lane.b32.xlu0 %v5957_v42, %s6801_s13  ;;  %v7550_v58 = vld [vmem:[%s7208_s22 + $0x7a] sm:$0xff] }
 0x170   : > { %894 = vrot.lane.b32.xlu1 %v7253_v12, %s6803_s12  ;;  %1439 = vrot.lane.b32.xlu0 %v7264_v13, %s6805_s3  ;;  %v7472_v12 = vld [vmem:[%s7208_s22 + $0x62] sm:$0xff] }
 0x174   : > { %1621 = vrot.lane.b32.xlu1 %v7291_v23, %s6806_s23  ;;  %1617 = vrot.lane.b32.xlu0 %v5929_v59, %s6806_s23 }
 0x178   : > { %1799 = vrot.lane.b32.xlu1 %v5959_v60, %s6807_s24  ;;  %1076 = vrot.lane.b32.xlu0 %v7267_v14, %s6802_s7 }
 0x17c   : > { %1258 = vrot.lane.b32.xlu1 %v7406_v56, %s6804_s4  ;;  %1803 = vrot.lane.b32.xlu0 %v7431_v61, %s6807_s24 }
 0x17e   : > { %v520_v63 = vpop.permute.xlu1 %519  ;;  %v516_v0 = vpop.permute.xlu0 %515 }
 0x17f   : > { %609 = vst.msk [vmem:[#allocation2 + $0x10] sm:$0x3] %vm9495_vm4, %v520_v63 }
 0x180   : > { %606 = vst.msk [vmem:[#allocation2] sm:$0xff] %vm9496_vm5, %v516_v0  ;;  %711 = vrot.lane.b32.xlu1 %v5958_v50, %s6801_s13  ;;  %707 = vrot.lane.b32.xlu0 %v642_v62, %s6801_s13  ;;  %v6811_v50 = vmov 1983009808  }
 0x181   : > { %v1979_v51 = vunpack.c.l.s4 %v6811_v50 }
 0x182   : > { %v522_v2 = vpop.permute.xlu1 %521  ;;  %v518_v3 = vpop.permute.xlu0 %517 }
 0x183   : > { %610 = vst.msk [vmem:[#allocation2 + $0x18] sm:$0xff] %vm9496_vm5, %v522_v2  ;;  %607 = vst.msk [vmem:[#allocation2 + $0x8] sm:$0xff] %vm9496_vm5, %v518_v3 }
 0x184   : > { %892 = vrot.lane.b32.xlu1 %v5810_v1, %s6803_s12  ;;  %1443 = vrot.lane.b32.xlu0 %v7279_v19, %s6805_s3 }
 0x186   : > { %v526_v5 = vpop.permute.xlu1 %525  ;;  %v524_v6 = vpop.permute.xlu0 %523 }
 0x187   : > { %612 = vst.msk [vmem:[#allocation2 + $0x28] sm:$0x3] %vm9495_vm4, %v526_v5 }
 0x188   : > { %611 = vst.msk [vmem:[#allocation2 + $0x20] sm:$0xff] %vm9496_vm5, %v524_v6  ;;  %1625 = vrot.lane.b32.xlu1 %v7320_v31, %s6806_s23  ;;  %896 = vrot.lane.b32.xlu0 %v7264_v13, %s6803_s12 }
 0x18a   : > { %v530_v8 = vpop.permute.xlu1 %529  ;;  %v528_v9 = vpop.permute.xlu0 %527 }
 0x18b   : > { %614 = vst.msk [vmem:[#allocation2 + $0x38] sm:$0xff] %vm9496_vm5, %v530_v8  ;;  %613 = vst.msk [vmem:[#allocation2 + $0x30] sm:$0xff] %vm9496_vm5, %v528_v9 }
 0x18c   : > { %1078 = vrot.lane.b32.xlu1 %v7291_v23, %s6802_s7  ;;  %1074 = vrot.lane.b32.xlu0 %v5840_v7, %s6802_s7 }
 0x18e   : > { %v534_v13 = vpop.permute.xlu1 %533  ;;  %v532_v14 = vpop.permute.xlu0 %531 }
 0x18f   : > { %616 = vst.msk [vmem:[#allocation2 + $0x48] sm:$0xff] %vm9496_vm5, %v534_v13 }
 0x190   : > { %615 = vst.msk [vmem:[#allocation2 + $0x40] sm:$0x3] %vm9495_vm4, %v532_v14  ;;  %1256 = vrot.lane.b32.xlu1 %v5870_v11, %s6804_s4  ;;  %1807 = vrot.lane.b32.xlu0 %v7472_v12, %s6807_s24  ;;  %v5965_v11 = vld [vmem:[%s7208_s22 + $0x72] sm:$0x3] }
 0x192   : > { %v538_v16 = vpop.permute.xlu1 %537  ;;  %v536_v17 = vpop.permute.xlu0 %535 }
 0x193   : > { %618 = vst.msk [vmem:[#allocation2 + $0x58] sm:$0x3] %vm9495_vm4, %v538_v16 }
 0x194   : > { %617 = vst.msk [vmem:[#allocation2 + $0x50] sm:$0xff] %vm9496_vm5, %v536_v17  ;;  %1441 = vrot.lane.b32.xlu1 %v5902_v15, %s6805_s3  ;;  %1260 = vrot.lane.b32.xlu0 %v7431_v61, %s6804_s4 }
 0x196   : > { %v542_v20 = vpop.permute.xlu1 %541  ;;  %v540_v21 = vpop.permute.xlu0 %539 }
 0x197   : > { %620 = vst.msk [vmem:[#allocation2 + $0x68] sm:$0xff] %vm9496_vm5, %v542_v20  ;;  %619 = vst.msk [vmem:[#allocation2 + $0x60] sm:$0xff] %vm9496_vm5, %v540_v21 }
 0x198   : > { %1623 = vrot.lane.b32.xlu1 %v5932_v18, %s6806_s23  ;;  %1445 = vrot.lane.b32.xlu0 %v7297_v25, %s6805_s3 }
 0x19a   : > { %v546_v22 = vpop.permute.xlu1 %545  ;;  %v544_v23 = vpop.permute.xlu0 %543 }
 0x19b   : > { %622 = vst.msk [vmem:[#allocation2 + $0x78] sm:$0xff] %vm9496_vm5, %v546_v22 }
 0x19c   : > { %621 = vst.msk [vmem:[#allocation2 + $0x70] sm:$0x3] %vm9495_vm4, %v544_v23  ;;  %715 = vrot.lane.b32.xlu1 %v7406_v56, %s6801_s13  ;;  %1627 = vrot.lane.b32.xlu0 %v7317_v30, %s6806_s23  ;;  %v1980_v56 = vunpack.c.0.s8 %v1979_v51  ;;  %v5876_v51 = vld [vmem:[%s7208_s22 + $0x72] sm:$0x3] }
 0x19e   : > { %v550_v28 = vpop.permute.xlu1 %549  ;;  %v548_v34 = vpop.permute.xlu0 %547 }
 0x19f   : > { %624 = vst.msk [vmem:[#allocation2 + $0x88] sm:$0x3] %vm9495_vm4, %v550_v28  ;;  %vm9499_vm4 = vcmask 189600  }
 0x1a0   : > { %623 = vst.msk [vmem:[#allocation2 + $0x80] sm:$0xff] %vm9496_vm5, %v548_v34  ;;  %1809 = vrot.lane.b32.xlu1 %v7498_v24, %s6807_s24  ;;  %1805 = vrot.lane.b32.xlu0 %v5962_v27, %s6807_s24 }
 0x1a2   : > { %v698_v37 = vpop.permute.xlu1 %697  ;;  %v552_v39 = vpop.permute.xlu0 %551 }
 0x1a3   : > { %788 = vst.msk [vmem:[#allocation2] sm:$0xff] %vm787_vm6, %v698_v37 }
 0x1a4   : > { %625 = vst.msk [vmem:[#allocation2 + $0x90] sm:$0xff] %vm9496_vm5, %v552_v39  ;;  %713 = vrot.lane.b32.xlu1 %v645_v35, %s6801_s13  ;;  %900 = vrot.lane.b32.xlu0 %v7279_v19, %s6803_s12  ;;  %vm9504_vm5 = vcmask 222400  }
 0x1a6   : > { %v1065_v42 = vpop.permute.xlu1 %1064  ;;  %v883_v43 = vpop.permute.xlu0 %882 }
 0x1a7   : > { %973 = vst.msk [vmem:[#allocation2] sm:$0xff] %vm9509_vm7, %v883_v43 }
 0x1a8   : > { %898 = vrot.lane.b32.xlu1 %v5813_v41, %s6803_s12  ;;  %1082 = vrot.lane.b32.xlu0 %v7320_v31, %s6802_s7  ;;  %1155 = vst.msk [vmem:[#allocation2] sm:$0xff] %vm9508_vm8, %v1065_v42 }
 0x1aa   : > { %v700_v19 = vpop.permute.xlu1 %699  ;;  %v1247_v44 = vpop.permute.xlu0 %1246 }
 0x1ab   : > { %789 = vst.msk [vmem:[#allocation2 + $0x8] sm:$0xff] %vm787_vm6, %v700_v19 }
 0x1ac   : > { %1337 = vst.msk [vmem:[#allocation2] sm:$0xff] %vm1336_vm9, %v1247_v44  ;;  %717 = vrot.lane.b32.xlu1 %v7431_v61, %s6801_s13  ;;  %1264 = vrot.lane.b32.xlu0 %v7472_v12, %s6804_s4  ;;  %v7555_v61 = vsub.s32 %v1980_v56, %v7543_v57  ;;  %v7639_v56 = vld [vmem:[%s7208_s22 + $0x92] sm:$0xff] }
 0x1ae   : > { %v885_v46 = vpop.permute.xlu1 %884  ;;  %v1432_v31 = vpop.permute.xlu0 %1431 }
 0x1af   : > { %974 = vst.msk [vmem:[#allocation2 + $0x8] sm:$0xff] %vm9509_vm7, %v885_v46 }
 0x1b0   : > { %1522 = vst.msk [vmem:[#allocation2] sm:$0xff] %vm1521_vm10, %v1432_v31  ;;  %1449 = vrot.lane.b32.xlu1 %v7302_v26, %s6805_s3  ;;  %1080 = vrot.lane.b32.xlu0 %v5843_v45, %s6802_s7  ;;  %v5816_v45 = vld [vmem:[%s7208_s22 + $0x70] sm:$0x3] }
 0x1b2   : > { %v1067_v48 = vpop.permute.xlu1 %1066  ;;  %v1614_v49 = vpop.permute.xlu0 %1613 }
 0x1b3   : > { %1156 = vst.msk [vmem:[#allocation2 + $0x8] sm:$0xff] %vm9508_vm8, %v1067_v48 }
 0x1b4   : > { %1704 = vst.msk [vmem:[#allocation2] sm:$0xff] %vm1703_vm11, %v1614_v49  ;;  %1262 = vrot.lane.b32.xlu1 %v5873_v47, %s6804_s4  ;;  %902 = vrot.lane.b32.xlu0 %v7297_v25, %s6803_s12  ;;  %v5905_v25 = vld [vmem:[%s7208_s22 + $0x70] sm:$0x3] }
 0x1b5   : > { %v5846_v47 = vld [vmem:[%s7208_s22 + $0x71] sm:$0x3] }
 0x1b6   : > { %v1249_v54 = vpop.permute.xlu1 %1248  ;;  %v1796_v55 = vpop.permute.xlu0 %1795 }
 0x1b7   : > { %1338 = vst.msk [vmem:[#allocation2 + $0x8] sm:$0xff] %vm1336_vm9, %v1249_v54 }
 0x1b8   : > { %1886 = vst.msk [vmem:[#allocation2] sm:$0xff] %vm9506_vm12, %v1796_v55  ;;  %1084 = vrot.lane.b32.xlu1 %v7317_v30, %s6802_s7  ;;  %1631 = vrot.lane.b32.xlu0 %v7334_v33, %s6806_s23  ;;  %v5935_v30 = vld [vmem:[%s7208_s22 + $0x71] sm:$0x3] }
 0x1ba   : > { %v1616_v59 = vpop.permute.xlu1 %1615  ;;  %v1434_v60 = vpop.permute.xlu0 %1433 }
 0x1bb   : > { %1523 = vst.msk [vmem:[#allocation2 + $0x8] sm:$0xff] %vm1521_vm10, %v1434_v60 }
 0x1bc   : > { %1705 = vst.msk [vmem:[#allocation2 + $0x8] sm:$0xff] %vm1703_vm11, %v1616_v59  ;;  %1813 = vrot.lane.b32.xlu1 %v7550_v58, %s6807_s24  ;;  %1447 = vrot.lane.b32.xlu0 %v5905_v25, %s6805_s3 }
 0x1be   : > { %v1798_v62 = vpop.permute.xlu1 %1797  ;;  %v704_v63 = vpop.permute.xlu0 %703 }
 0x1bf   : > { %v1917_v0 = vld [vmem:[#allocation2] sm:$0xff]  ;;  %1887 = vst.msk [vmem:[#allocation2 + $0x8] sm:$0xff] %vm9506_vm12, %v1798_v62 }
 0x1c0   : > { %792 = vst.msk [vmem:[#allocation2 + $0x18] sm:$0xff] %vm787_vm6, %v704_v63  ;;  %v1977_v1 = vcombine.high %v1917_v0, %v1917_v0  ;;  %v1984_v2 = vrot.slane %v1917_v0, %v7555_v61  ;;  %1629 = vrot.lane.b32.xlu1 %v5935_v30, %s6806_s23  ;;  %1266 = vrot.lane.b32.xlu0 %v7498_v24, %s6804_s4  ;;  %v5938_v30 = vld [vmem:[%s7208_s22 + $0x89] sm:$0x3] }
 0x1c2   : > { %v1991_v3 = vrot.slane %v1977_v1, %v7555_v61  ;;  %v1992_v5 = vcombine.high %v1984_v2, %v1984_v2  ;;  %v1071_v6 = vpop.permute.xlu1 %1070  ;;  %v889_v7 = vpop.permute.xlu0 %888 }
 0x1c3   : > { %977 = vst.msk [vmem:[#allocation2 + $0x18] sm:$0xff] %vm9509_vm7, %v889_v7 }
 0x1c4   : > { %v1993_v8 = vcombine.high %v1991_v3, %v1991_v3  ;;  %v2392_v9 = vcombine.low %v1984_v2, %v1992_v5  ;;  %1159 = vst.msk [vmem:[#allocation2 + $0x18] sm:$0xff] %vm9508_vm8, %v1071_v6  ;;  %1451 = vrot.lane.b32.xlu1 %v7314_v29, %s6805_s3  ;;  %721 = vrot.lane.b32.xlu0 %v7472_v12, %s6801_s13  ;;  %v648_v12 = vld [vmem:[%s7208_s22 + $0x5a] sm:$0x3] }
 0x1c5   : > { %v7658_v2 = vld [vmem:[%s7208_s22 + $0x99] sm:$0xff] }
 0x1c6   : > { %v2393_v13 = vcombine.low %v1991_v3, %v1993_v8  ;;  %v2400_v14 = vrot.slane %v2392_v9, %v7555_v61  ;;  %v702_v15 = vpop.permute.xlu1 %701  ;;  %v1253_v16 = vpop.permute.xlu0 %1252  ;;  %v1918_v17 = vld [vmem:[#allocation2 + $0x8] sm:$0xff]  ;;  %v7668_v9 = vld [vmem:[%s7208_s22 + $0x9a] sm:$0xff] }
 0x1c7   : > { %791 = vst.msk [vmem:[#allocation2 + $0x10] sm:$0x3] %vm9505_vm13, %v702_v15  ;;  %v1994_v20 = vcombine.high %v1918_v17, %v1918_v17  ;;  %v2001_v21 = vrot.slane %v1918_v17, %v7555_v61  ;;  %v5968_v3 = vld [vmem:[%s7208_s22 + $0x8a] sm:$0x3] }
 0x1c8   : > { %1341 = vst.msk [vmem:[#allocation2 + $0x18] sm:$0xff] %vm1336_vm9, %v1253_v16  ;;  %v2407_v18 = vrot.slane %v2393_v13, %v7555_v61  ;;  %906 = vrot.lane.b32.xlu1 %v7302_v26, %s6803_s12  ;;  %1811 = vrot.lane.b32.xlu0 %v5965_v11, %s6807_s24  ;;  %v7593_v26 = vld [vmem:[%s7208_s22 + $0x82] sm:$0xff] }
 0x1c9   : > { %v2008_v23 = vrot.slane %v1994_v20, %v7555_v61  ;;  %v2009_v27 = vcombine.high %v2001_v21, %v2001_v21 }
 0x1ca   : > { %v2408_v22 = vcombine.low %v2400_v14, %v2407_v18  ;;  %v1438_v28 = vpop.permute.xlu1 %1437  ;;  %v706_v34 = vpop.permute.xlu0 %705 }
 0x1cb   : > { %1526 = vst.msk [vmem:[#allocation2 + $0x18] sm:$0xff] %vm1521_vm10, %v1438_v28  ;;  %v2010_v35 = vcombine.high %v2008_v23, %v2008_v23  ;;  %v2409_v37 = vcombine.low %v2001_v21, %v2009_v27 }
 0x1cc   : > { %793 = vst.msk [vmem:[#allocation2 + $0x20] sm:$0xff] %vm787_vm6, %v706_v34  ;;  %6111 = vmatmul.mubr.msk.f32.vlgmr.msra.gmra.mrb[0].mxu0 %vm2774_vm14, %v2408_v22  ;;  %719 = vrot.lane.b32.xlu1 %v648_v12, %s6801_s13 }
 0x1cd   : > { %1633 = vrot.lane.b32.xlu0 %v7342_v36, %s6806_s23  ;;  %6113 = vmatprep.mubr.msk.f32.mxu0 %vm6810_vm3, %v6809_v52  ;;  %v2410_v39 = vcombine.low %v2008_v23, %v2010_v35  ;;  %v2417_v43 = vrot.slane %v2409_v37, %v7555_v61 }
 0x1ce   : > { %v891_v41 = vpop.permute.xlu1 %890  ;;  %v887_v42 = vpop.permute.xlu0 %886 }
 0x1cf   : > { %978 = vst.msk [vmem:[#allocation2 + $0x20] sm:$0xff] %vm9509_vm7, %v891_v41  ;;  %v2424_v19 = vrot.slane %v2410_v39, %v7555_v61 }
 0x1d0   : > { %976 = vst.msk [vmem:[#allocation2 + $0x10] sm:$0x3] %vm9501_vm15, %v887_v42  ;;  %1815 = vrot.lane.b32.xlu1 %v7593_v26, %s6807_s24 }
 0x1d1   : > { %1088 = vrot.lane.b32.xlu0 %v7334_v33, %s6802_s7  ;;  %v2425_v44 = vcombine.low %v2417_v43, %v2424_v19 }
 0x1d2   : > { %v1069_v46 = vpop.permute.xlu1 %1068  ;;  %v1620_v31 = vpop.permute.xlu0 %1619 }
 0x1d3   : > { %1158 = vst.msk [vmem:[#allocation2 + $0x10] sm:$0x3] %vm9500_vm2, %v1069_v46  ;;  %6114 = vmatmul.mubr.msk.f32.gmra.mrb[2].mxu0 %vm2774_vm14, %v2425_v44  ;;  %v7711_v46 = vld [vmem:[%s7208_s22 + $0xaa] sm:$0xff] }
 0x1d4   : > { %1708 = vst.msk [vmem:[#allocation2 + $0x18] sm:$0xff] %vm1703_vm11, %v1620_v31  ;;  %1270 = vrot.lane.b32.xlu1 %v7550_v58, %s6804_s4  ;;  %6116 = vmatprep.mubr.msk.f32.mxu0 %vm6810_vm3, %v6809_v52 }
 0x1d5   : > { %904 = vrot.lane.b32.xlu0 %v5816_v45, %s6803_s12 }
 0x1d6   : > { %v1802_v33 = vpop.permute.xlu1 %1801  ;;  %v1073_v48 = vpop.permute.xlu0 %1072 }
 0x1d7   : > { %1890 = vst.msk [vmem:[#allocation2 + $0x18] sm:$0xff] %vm9506_vm12, %v1802_v33 }
 0x1d8   : > { %1160 = vst.msk [vmem:[#allocation2 + $0x20] sm:$0xff] %vm9508_vm8, %v1073_v48  ;;  %1086 = vrot.lane.b32.xlu1 %v5846_v47, %s6802_s7 }
 0x1d9   : > { %723 = vrot.lane.b32.xlu0 %v7498_v24, %s6801_s13  ;;  %v5908_v24 = vld [vmem:[%s7208_s22 + $0x88] sm:$0x3] }
 0x1da   : > { %v1255_v49 = vpop.permute.xlu1 %1254  ;;  %v1251_v50 = vpop.permute.xlu0 %1250 }
 0x1db   : > { %1342 = vst.msk [vmem:[#allocation2 + $0x20] sm:$0xff] %vm1336_vm9, %v1255_v49 }
 0x1dc   : > { %1340 = vst.msk [vmem:[#allocation2 + $0x10] sm:$0x3] %vm9499_vm4, %v1251_v50  ;;  %908 = vrot.lane.b32.xlu1 %v7314_v29, %s6803_s12 }
 0x1dd   : > { %1455 = vrot.lane.b32.xlu0 %v7325_v32, %s6805_s3 }
 0x1de   : > { %v1436_v53 = vpop.permute.xlu1 %1435  ;;  %v710_v54 = vpop.permute.xlu0 %709  ;;  %v1920_v60 = vld [vmem:[#allocation2 + $0x18] sm:$0xff] }
 0x1df   : > { %1525 = vst.msk [vmem:[#allocation2 + $0x10] sm:$0x3] %vm9504_vm5, %v1436_v53  ;;  %v2018_v62 = vcombine.high %v1920_v60, %v1920_v60  ;;  %v2025_v63 = vrot.slane %v1920_v60, %v7555_v61  ;;  %v5849_v53 = vld [vmem:[%s7208_s22 + $0x89] sm:$0x3] }
 0x1e0   : > { %795 = vst.msk [vmem:[#allocation2 + $0x30] sm:$0xff] %vm787_vm6, %v710_v54  ;;  %1637 = vrot.lane.b32.xlu1 %v7349_v38, %s6806_s23 }
 0x1e1   : > { %1268 = vrot.lane.b32.xlu0 %v5876_v51, %s6804_s4  ;;  %v2032_v5 = vrot.slane %v2018_v62, %v7555_v61  ;;  %v2033_v6 = vcombine.high %v2025_v63, %v2025_v63  ;;  %v5879_v62 = vld [vmem:[%s7208_s22 + $0x8a] sm:$0x3] }
 0x1e2   : > { %v895_v55 = vpop.permute.xlu1 %894  ;;  %v1440_v29 = vpop.permute.xlu0 %1439 }
 0x1e3   : > { %980 = vst.msk [vmem:[#allocation2 + $0x30] sm:$0xff] %vm9509_vm7, %v895_v55  ;;  %v2427_v11 = vcombine.low %v2033_v6, %v2032_v5  ;;  %v2034_v23 = vcombine.high %v2032_v5, %v2032_v5  ;;  %v7760_v6 = vld [vmem:[%s7208_s22 + $0xc2] sm:$0xff] }
 0x1e4   : > { %1527 = vst.msk [vmem:[#allocation2 + $0x20] sm:$0xff] %vm1521_vm10, %v1440_v29  ;;  %1453 = vrot.lane.b32.xlu1 %v5908_v24, %s6805_s3 }
 0x1e5   : > { %1090 = vrot.lane.b32.xlu0 %v7342_v36, %s6802_s7  ;;  %v7648_v36 = vld [vmem:[%s7208_s22 + $0x98] sm:$0xff]  ;;  %v2441_v18 = vrot.slane %v2427_v11, %v7555_v61 }
 0x1e6   : > { %v1622_v25 = vpop.permute.xlu1 %1621  ;;  %v1618_v59 = vpop.permute.xlu0 %1617 }
 0x1e7   : > { %1709 = vst.msk [vmem:[#allocation2 + $0x20] sm:$0xff] %vm1703_vm11, %v1622_v25  ;;  %v7741_v25 = vld [vmem:[%s7208_s22 + $0xc1] sm:$0xff] }
 0x1e8   : > { %1707 = vst.msk [vmem:[#allocation2 + $0x10] sm:$0x3] %vm9503_vm1, %v1618_v59  ;;  %1272 = vrot.lane.b32.xlu1 %v7593_v26, %s6804_s4 }
 0x1e9   : > { %1819 = vrot.lane.b32.xlu0 %v7639_v56, %s6807_s24 }
 0x1ea   : > { %v1800_v0 = vpop.permute.xlu1 %1799  ;;  %v1077_v1 = vpop.permute.xlu0 %1076 }
 0x1eb   : > { %1889 = vst.msk [vmem:[#allocation2 + $0x10] sm:$0x3] %vm9502_vm0, %v1800_v0 }
 0x1ec   : > { %1162 = vst.msk [vmem:[#allocation2 + $0x30] sm:$0xff] %vm9508_vm8, %v1077_v1  ;;  %1457 = vrot.lane.b32.xlu1 %v7648_v36, %s6805_s3 }
 0x1ed   : > { %1635 = vrot.lane.b32.xlu0 %v5938_v30, %s6806_s23 }
 0x1ee   : > { %v1259_v7 = vpop.permute.xlu1 %1258  ;;  %v1804_v8 = vpop.permute.xlu0 %1803 }
 0x1ef   : > { %1344 = vst.msk [vmem:[#allocation2 + $0x30] sm:$0xff] %vm1336_vm9, %v1259_v7 }
 0x1f0   : > { %1891 = vst.msk [vmem:[#allocation2 + $0x20] sm:$0xff] %vm9506_vm12, %v1804_v8  ;;  %1639 = vrot.lane.b32.xlu1 %v7658_v2, %s6806_s23 }
 0x1f1   : > { %1817 = vrot.lane.b32.xlu0 %v5968_v3, %s6807_s24 }
 0x1f2   : > { %v712_v13 = vpop.permute.xlu1 %711  ;;  %v708_v14 = vpop.permute.xlu0 %707  ;;  %v5987_v15 = vld.sshfl [vmem:[#allocation2 + $0x10] sm:$0x3 pattern:$0x76325410] }
 0x1f3   : > { %796 = vst.msk [vmem:[#allocation2 + $0x38] sm:$0xff] %vm787_vm6, %v712_v13  ;;  %v2426_v16 = vcombine.low %v5987_v15, %v2025_v63  ;;  %v7752_v63 = vld [vmem:[%s7208_s22 + $0xb1] sm:$0xff] }
 0x1f4   : > { %794 = vst.msk [vmem:[#allocation2 + $0x28] sm:$0x3] %vm9505_vm13, %v708_v14  ;;  %1821 = vrot.lane.b32.xlu1 %v7668_v9, %s6807_s24 }
 0x1f5   : > { %727 = vrot.lane.b32.xlu0 %v7550_v58, %s6801_s13  ;;  %v2434_v17 = vrot.slane %v2426_v16, %v7555_v61  ;;  %v7687_v58 = vld [vmem:[%s7208_s22 + $0xa9] sm:$0xff] }
 0x1f6   : > { %v893_v20 = vpop.permute.xlu1 %892  ;;  %v1444_v21 = vpop.permute.xlu0 %1443 }
 0x1f7   : > { %v1921_v12 = vld [vmem:[#allocation2 + $0x20] sm:$0xff]  ;;  %979 = vst.msk [vmem:[#allocation2 + $0x28] sm:$0x3] %vm9501_vm15, %v893_v20  ;;  %v2442_v22 = vcombine.low %v2434_v17, %v2441_v18  ;;  %v7776_v20 = vld [vmem:[%s7208_s22 + $0xb2] sm:$0xff] }
 0x1f8   : > { %1529 = vst.msk [vmem:[#allocation2 + $0x30] sm:$0xff] %vm1521_vm10, %v1444_v21  ;;  %v2035_v27 = vcombine.high %v1921_v12, %v1921_v12  ;;  %v2042_v28 = vrot.slane %v1921_v12, %v7555_v61  ;;  %1094 = vrot.lane.b32.xlu1 %v7349_v38, %s6802_s7  ;;  %v651_v38 = vld [vmem:[%s7208_s22 + $0x72] sm:$0x3] }
 0x1f9   : > { %912 = vrot.lane.b32.xlu0 %v7325_v32, %s6803_s12  ;;  %6117 = vmatmul.mubr.msk.f32.gmra.mrb[4].mxu0 %vm2774_vm14, %v2442_v22 }
 0x1fa   : > { %v7690_v34 = vrot.slane %v2035_v27, %v7555_v61  ;;  %v2050_v35 = vcombine.high %v2042_v28, %v2042_v28  ;;  %v2443_v37 = vcombine.low %v2034_v23, %v2042_v28  ;;  %v1626_v39 = vpop.permute.xlu1 %1625  ;;  %v897_v41 = vpop.permute.xlu0 %896  ;;  %6119 = vmatprep.mubr.msk.f32.mxu0 %vm6810_vm3, %v6809_v52 }
 0x1fb   : > { %1711 = vst.msk [vmem:[#allocation2 + $0x30] sm:$0xff] %vm1703_vm11, %v1626_v39 }
 0x1fc   : > { %981 = vst.msk [vmem:[#allocation2 + $0x38] sm:$0xff] %vm9509_vm7, %v897_v41  ;;  %v2444_v32 = vcombine.low %v2050_v35, %v7690_v34  ;;  %1276 = vrot.lane.b32.xlu1 %v7639_v56, %s6804_s4  ;;  %v2451_v42 = vrot.slane %v2443_v37, %v7555_v61  ;;  %v2051_v7 = vcombine.high %v7690_v34, %v7690_v34  ;;  %v5911_v35 = vld [vmem:[%s7208_s22 + $0xa0] sm:$0x3] }
 0x1fd   : > { %557 = vrot.lane.b32.xlu0 %v7687_v58, %s6800_s0 }
 0x1fe   : > { %v2458_v43 = vrot.slane %v2444_v32, %v7555_v61  ;;  %v1079_v19 = vpop.permute.xlu1 %1078  ;;  %v1075_v44 = vpop.permute.xlu0 %1074 }
 0x1ff   : > { %1163 = vst.msk [vmem:[#allocation2 + $0x38] sm:$0xff] %vm9508_vm8, %v1079_v19  ;;  %v7810_v19 = vld [vmem:[%s7208_s22 + $0xc8] sm:$0xff] }
 0x200   : > { %1161 = vst.msk [vmem:[#allocation2 + $0x28] sm:$0x3] %vm9500_vm2, %v1075_v44  ;;  %v2459_v45 = vcombine.low %v2451_v42, %v2458_v43  ;;  %729 = vrot.lane.b32.xlu1 %v7593_v26, %s6801_s13  ;;  %v5819_v26 = vld [vmem:[%s7208_s22 + $0x88] sm:$0x3]  ;;  %v5941_v43 = vld [vmem:[%s7208_s22 + $0xa1] sm:$0x3] }
 0x201   : > { %725 = vrot.lane.b32.xlu0 %v651_v38, %s6801_s13 }
 0x202   : > { %6120 = vmatmul.mubr.msk.f32.gmra.mrb[6].mxu0 %vm2774_vm14, %v2459_v45  ;;  %v1257_v31 = vpop.permute.xlu1 %1256  ;;  %v1808_v47 = vpop.permute.xlu0 %1807 }
 0x203   : > { %6122 = vmatprep.mubr.msk.f32.mxu0 %vm6810_vm3, %v6809_v52  ;;  %1343 = vst.msk [vmem:[#allocation2 + $0x28] sm:$0x3] %vm9499_vm4, %v1257_v31  ;;  %v7818_v31 = vld [vmem:[%s7208_s22 + $0xd9] sm:$0xff] }
 0x204   : > { %1893 = vst.msk [vmem:[#allocation2 + $0x30] sm:$0xff] %vm9506_vm12, %v1808_v47  ;;  %1461 = vrot.lane.b32.xlu1 %v7446_v4, %s6805_s3 }
 0x205   : > { %739 = vrot.lane.b32.xlu0 %v7711_v46, %s6801_s13 }
 0x206   : > { %v1442_v33 = vpop.permute.xlu1 %1441  ;;  %v1261_v48 = vpop.permute.xlu0 %1260 }
 0x207   : > { %1528 = vst.msk [vmem:[#allocation2 + $0x28] sm:$0x3] %vm9504_vm5, %v1442_v33  ;;  %v7829_v33 = vld [vmem:[%s7208_s22 + $0xc9] sm:$0xff] }
 0x208   : > { %1345 = vst.msk [vmem:[#allocation2 + $0x38] sm:$0xff] %vm1336_vm9, %v1261_v48  ;;  %914 = vrot.lane.b32.xlu1 %v7648_v36, %s6803_s12 }
 0x209   : > { %910 = vrot.lane.b32.xlu0 %v5819_v26, %s6803_s12  ;;  %v412_v26 = vld [vmem:[%s7208_s22 + $0x98] sm:$0xff] }
 0x20a   : > { %v1624_v49 = vpop.permute.xlu1 %1623  ;;  %v1446_v50 = vpop.permute.xlu0 %1445 }
 0x20b   : > { %1710 = vst.msk [vmem:[#allocation2 + $0x28] sm:$0x3] %vm9503_vm1, %v1624_v49  ;;  %v1923_v51 = vld [vmem:[#allocation2 + $0x30] sm:$0xff] }
 0x20c   : > { %1530 = vst.msk [vmem:[#allocation2 + $0x38] sm:$0xff] %vm1521_vm10, %v1446_v50  ;;  %1643 = vrot.lane.b32.xlu1 %v7687_v58, %s6806_s23  ;;  %v2066_v55 = vrot.slane %v1923_v51, %v7555_v61  ;;  %v2059_v29 = vcombine.high %v1923_v51, %v1923_v51  ;;  %v5971_v50 = vld [vmem:[%s7208_s22 + $0xa2] sm:$0x3] }
 0x20d   : > { %924 = vrot.lane.b32.xlu0 %v7463_v10, %s6803_s12 }
 0x20e   : > { %v716_v54 = vpop.permute.xlu1 %715  ;;  %v1628_v24 = vpop.permute.xlu0 %1627  ;;  %v2074_v36 = vcombine.high %v2066_v55, %v2066_v55  ;;  %v2073_v30 = vrot.slane %v2059_v29, %v7555_v61 }
 0x20f   : > { %798 = vst.msk [vmem:[#allocation2 + $0x48] sm:$0xff] %vm787_vm6, %v716_v54 }
 0x210   : > { %1712 = vst.msk [vmem:[#allocation2 + $0x38] sm:$0xff] %vm1703_vm11, %v1628_v24  ;;  %1096 = vrot.lane.b32.xlu1 %v7658_v2, %s6802_s7  ;;  %v2461_v3 = vcombine.low %v2066_v55, %v2074_v36  ;;  %v2075_v5 = vcombine.high %v2073_v30, %v2073_v30  ;;  %v7846_v24 = vld [vmem:[%s7208_s22 + $0xda] sm:$0xff] }
 0x211   : > { %1092 = vrot.lane.b32.xlu0 %v5849_v53, %s6802_s7 }
 0x212   : > { %v1810_v59 = vpop.permute.xlu1 %1809  ;;  %v1806_v60 = vpop.permute.xlu0 %1805  ;;  %v2475_v16 = vrot.slane %v2461_v3, %v7555_v61  ;;  %v2477_v18 = vcombine.low %v2073_v30, %v2075_v5 }
 0x213   : > { %1894 = vst.msk [vmem:[#allocation2 + $0x38] sm:$0xff] %vm9506_vm12, %v1810_v59 }
 0x214   : > { %1892 = vst.msk [vmem:[#allocation2 + $0x28] sm:$0x3] %vm9502_vm0, %v1806_v60  ;;  %1825 = vrot.lane.b32.xlu1 %v7711_v46, %s6807_s24  ;;  %v2485_v34 = vrot.slane %v2477_v18, %v7555_v61 }
 0x215   : > { %1106 = vrot.lane.b32.xlu0 %v7741_v25, %s6802_s7 }
 0x216   : > { %v714_v0 = vpop.permute.xlu1 %713  ;;  %v901_v1 = vpop.permute.xlu0 %900 }
 0x217   : > { %797 = vst.msk [vmem:[#allocation2 + $0x40] sm:$0x3] %vm9505_vm13, %v714_v0 }
 0x218   : > { %983 = vst.msk [vmem:[#allocation2 + $0x48] sm:$0xff] %vm9509_vm7, %v901_v1  ;;  %1274 = vrot.lane.b32.xlu1 %v5879_v62, %s6804_s4  ;;  %v654_v62 = vld [vmem:[%s7208_s22 + $0x8a] sm:$0x3] }
 0x219   : > { %559 = vrot.lane.b32.xlu0 %v7752_v63, %s6800_s0 }
 0x21a   : > { %v899_v8 = vpop.permute.xlu1 %898  ;;  %v1083_v11 = vpop.permute.xlu0 %1082  ;;  %v7764_v14 = vld [vmem:[#allocation2 + $0x38] sm:$0xff] }
 0x21b   : > { %v5988_v13 = vld.sshfl [vmem:[#allocation2 + $0x28] sm:$0x3 pattern:$0x76325410]  ;;  %982 = vst.msk [vmem:[#allocation2 + $0x40] sm:$0x3] %vm9501_vm15, %v899_v8  ;;  %v2083_v17 = vrot.slane %v7764_v14, %v7555_v61  ;;  %v2076_v51 = vcombine.high %v7764_v14, %v7764_v14 }
 0x21c   : > { %1165 = vst.msk [vmem:[#allocation2 + $0x48] sm:$0xff] %vm9508_vm8, %v1083_v11  ;;  %v2460_v15 = vcombine.low %v2051_v7, %v5988_v13  ;;  %1288 = vrot.lane.b32.xlu1 %v7760_v6, %s6804_s4  ;;  %v416_v13 = vld [vmem:[%s7208_s22 + $0xb8] sm:$0x3] }
 0x21d   : > { %1278 = vrot.lane.b32.xlu0 %v7668_v9, %s6804_s4  ;;  %v2091_v12 = vcombine.high %v2083_v17, %v2083_v17 }
 0x21e   : > { %v2468_v21 = vrot.slane %v2460_v15, %v7555_v61  ;;  %v718_v22 = vpop.permute.xlu1 %717  ;;  %v1265_v23 = vpop.permute.xlu0 %1264 }
 0x21f   : > { %799 = vst.msk [vmem:[#allocation2 + $0x50] sm:$0xff] %vm787_vm6, %v718_v22  ;;  %v2478_v28 = vcombine.low %v2083_v17, %v2091_v12  ;;  %v7884_v12 = vld [vmem:[%s7208_s22 + $0xe0] sm:$0xff] }
 0x220   : > { %1347 = vst.msk [vmem:[#allocation2 + $0x48] sm:$0xff] %vm1336_vm9, %v1265_v23  ;;  %v2476_v27 = vcombine.low %v2468_v21, %v2475_v16  ;;  %741 = vrot.lane.b32.xlu1 %v7776_v20, %s6801_s13 }
 0x221   : > { %733 = vrot.lane.b32.xlu0 %v7639_v56, %s6801_s13  ;;  %v2492_v37 = vrot.slane %v2478_v28, %v7555_v61  ;;  %v7798_v56 = vld [vmem:[%s7208_s22 + $0xd8] sm:$0xff] }
 0x222   : > { %6123 = vmatmul.mubr.msk.f32.gmra.mrb[8].mxu0 %vm2774_vm14, %v2476_v27  ;;  %v1450_v39 = vpop.permute.xlu1 %1449  ;;  %v1081_v41 = vpop.permute.xlu0 %1080 }
 0x223   : > { %6125 = vmatprep.mubr.msk.f32.mxu0 %vm6810_vm3, %v6809_v52  ;;  %1532 = vst.msk [vmem:[#allocation2 + $0x48] sm:$0xff] %vm1521_vm10, %v1450_v39  ;;  %v2493_v32 = vcombine.low %v2485_v34, %v2492_v37  ;;  %v478_v37 = vld [vmem:[%s7208_s22 + $0xb9] sm:$0x3] }
 0x224   : > { %1164 = vst.msk [vmem:[#allocation2 + $0x40] sm:$0x3] %vm9500_vm2, %v1081_v41  ;;  %1463 = vrot.lane.b32.xlu1 %v7510_v40, %s6805_s3 }
 0x225   : > { %1459 = vrot.lane.b32.xlu0 %v5911_v35, %s6805_s3  ;;  %v5822_v35 = vld [vmem:[%s7208_s22 + $0xa0] sm:$0x3] }
 0x226   : > { %6126 = vmatmul.mubr.msk.f32.gmra.mrb[10].mxu0 %vm2774_vm14, %v2493_v32  ;;  %v1263_v38 = vpop.permute.xlu1 %1262  ;;  %v903_v42 = vpop.permute.xlu0 %902 }
 0x227   : > { %6128 = vmatprep.mubr.msk.f32.mxu0 %vm6810_vm3, %v6809_v52  ;;  %1346 = vst.msk [vmem:[#allocation2 + $0x40] sm:$0x3] %vm9499_vm4, %v1263_v38  ;;  %vm9552_vm4 = vcmask 31744  }
 0x228   : > { %984 = vst.msk [vmem:[#allocation2 + $0x50] sm:$0xff] %vm9509_vm7, %v903_v42  ;;  %918 = vrot.lane.b32.xlu1 %v7446_v4, %s6803_s12 }
 0x229   : > { %1473 = vrot.lane.b32.xlu0 %v7798_v56, %s6805_s3  ;;  %444 = vst.msk [vmem:[#allocation2 + $0x98] sm:$0xff] %vm9552_vm4, %v412_v26  ;;  %vm9553_vm4 = vcmask 25600  }
 0x22a   : > { %v1085_v44 = vpop.permute.xlu1 %1084  ;;  %v1632_v45 = vpop.permute.xlu0 %1631  ;;  %448 = vst.msk [vmem:[#allocation2 + $0xb8] sm:$0x3] %vm9553_vm4, %v416_v13  ;;  %vm9554_vm4 = vcmask 189600  }
 0x22b   : > { %1166 = vst.msk [vmem:[#allocation2 + $0x50] sm:$0xff] %vm9508_vm8, %v1085_v44 }
 0x22c   : > { %1714 = vst.msk [vmem:[#allocation2 + $0x48] sm:$0xff] %vm1703_vm11, %v1632_v45  ;;  %1641 = vrot.lane.b32.xlu1 %v5941_v43, %s6806_s23  ;;  %v7917_v45 = vld [vmem:[%s7208_s22 + $0xe1] sm:$0xff] }
 0x22d   : > { %926 = vrot.lane.b32.xlu0 %v7810_v19, %s6803_s12 }
 0x22e   : > { %v1814_v4 = vpop.permute.xlu1 %1813  ;;  %v1448_v47 = vpop.permute.xlu0 %1447 }
 0x22f   : > { %1896 = vst.msk [vmem:[#allocation2 + $0x48] sm:$0xff] %vm9506_vm12, %v1814_v4 }
 0x230   : > { %1531 = vst.msk [vmem:[#allocation2 + $0x40] sm:$0x3] %vm9504_vm5, %v1448_v47  ;;  %1655 = vrot.lane.b32.xlu1 %v7818_v31, %s6806_s23 }
 0x231   : > { %1645 = vrot.lane.b32.xlu0 %v7752_v63, %s6806_s23 }
 0x232   : > { %v1630_v48 = vpop.permute.xlu1 %1629  ;;  %v1267_v49 = vpop.permute.xlu0 %1266 }
 0x233   : > { %1713 = vst.msk [vmem:[#allocation2 + $0x40] sm:$0x3] %vm9503_vm1, %v1630_v48 }
 0x234   : > { %1348 = vst.msk [vmem:[#allocation2 + $0x50] sm:$0xff] %vm1336_vm9, %v1267_v49  ;;  %1108 = vrot.lane.b32.xlu1 %v7829_v33, %s6802_s7 }
 0x235   : > { %1100 = vrot.lane.b32.xlu0 %v7687_v58, %s6802_s7  ;;  %v2090_v58 = vrot.slane %v2076_v51, %v7555_v61 }
 0x236   : > { %v1452_v53 = vpop.permute.xlu1 %1451  ;;  %v722_v54 = vpop.permute.xlu0 %721  ;;  %v1926_v30 = vld [vmem:[#allocation2 + $0x48] sm:$0xff] }
 0x237   : > { %1533 = vst.msk [vmem:[#allocation2 + $0x50] sm:$0xff] %vm1521_vm10, %v1452_v53  ;;  %v2092_v59 = vcombine.high %v2090_v58, %v2090_v58  ;;  %v2107_v0 = vrot.slane %v1926_v30, %v7555_v61  ;;  %v2100_v11 = vcombine.high %v1926_v30, %v1926_v30  ;;  %v418_v53 = vld [vmem:[%s7208_s22 + $0xc8] sm:$0xff] }
 0x238   : > { %801 = vst.msk [vmem:[#allocation2 + $0x60] sm:$0xff] %vm787_vm6, %v722_v54  ;;  %1827 = vrot.lane.b32.xlu1 %v7776_v20, %s6807_s24 }
 0x239   : > { %1823 = vrot.lane.b32.xlu0 %v5971_v50, %s6807_s24  ;;  %v2494_v1 = vcombine.low %v2090_v58, %v2092_v59  ;;  %v2114_v18 = vrot.slane %v2100_v11, %v7555_v61  ;;  %v2115_v21 = vcombine.high %v2107_v0, %v2107_v0 }
 0x23a   : > { %v907_v55 = vpop.permute.xlu1 %906  ;;  %v1812_v29 = vpop.permute.xlu0 %1811 }
 0x23b   : > { %986 = vst.msk [vmem:[#allocation2 + $0x60] sm:$0xff] %vm9509_vm7, %v907_v55  ;;  %v2116_v28 = vcombine.high %v2114_v18, %v2114_v18 }
 0x23c   : > { %1895 = vst.msk [vmem:[#allocation2 + $0x40] sm:$0x3] %vm9502_vm0, %v1812_v29  ;;  %553 = vrot.lane.b32.xlu1 %v7658_v2, %s6800_s0  ;;  %v7863_v2 = vld [vmem:[%s7208_s22 + $0xca] sm:$0xff] }
 0x23d   : > { %1837 = vrot.lane.b32.xlu0 %v7846_v24, %s6807_s24 }
 0x23e   : > { %v720_v60 = vpop.permute.xlu1 %719 }
 0x23f   : > { %v1634_v36 = vpop.permute.xlu0 %1633  ;;  %800 = vst.msk [vmem:[#allocation2 + $0x58] sm:$0x3] %vm9505_vm13, %v720_v60 }
 0x240   : > { %1715 = vst.msk [vmem:[#allocation2 + $0x50] sm:$0xff] %vm1703_vm11, %v1634_v36  ;;  %1282 = vrot.lane.b32.xlu1 %v7711_v46, %s6804_s4  ;;  %v2502_v46 = vrot.slane %v2494_v1, %v7555_v61 }
 0x241   : > { %563 = vrot.lane.b32.xlu0 %v7741_v25, %s6800_s0 }
 0x242   : > { %v1816_v3 = vpop.permute.xlu1 %1815 }
 0x243   : > { %v1089_v5 = vpop.permute.xlu0 %1088  ;;  %v5989_v7 = vld.sshfl [vmem:[#allocation2 + $0x40] sm:$0x3 pattern:$0x76325410]  ;;  %1897 = vst.msk [vmem:[#allocation2 + $0x50] sm:$0xff] %vm9506_vm12, %v1816_v3 }
 0x244   : > { %1168 = vst.msk [vmem:[#allocation2 + $0x60] sm:$0xff] %vm9508_vm8, %v1089_v5  ;;  %v2495_v8 = vcombine.low %v5989_v7, %v2107_v0  ;;  %731 = vrot.lane.b32.xlu1 %v654_v62, %s6801_s13 }
 0x245   : > { %1290 = vrot.lane.b32.xlu0 %v7863_v2, %s6804_s4 }
 0x246   : > { %v2509_v14 = vrot.slane %v2495_v8, %v7555_v61  ;;  %v1271_v15 = vpop.permute.xlu1 %1270 }
 0x247   : > { %v905_v16 = vpop.permute.xlu0 %904  ;;  %1350 = vst.msk [vmem:[#allocation2 + $0x60] sm:$0xff] %vm1336_vm9, %v1271_v15 }
 0x248   : > { %985 = vst.msk [vmem:[#allocation2 + $0x58] sm:$0x3] %vm9501_vm15, %v905_v16  ;;  %v2510_v17 = vcombine.low %v2502_v46, %v2509_v14  ;;  %745 = vrot.lane.b32.xlu1 %v7760_v6, %s6801_s13 }
 0x249   : > { %735 = vrot.lane.b32.xlu0 %v7668_v9, %s6801_s13  ;;  %v2511_v9 = vcombine.low %v2115_v21, %v2114_v18 }
 0x24a   : > { %6129 = vmatmul.mubr.msk.f32.gmra.mrb[12].mxu0 %vm2774_vm14, %v2510_v17  ;;  %v1087_v22 = vpop.permute.xlu1 %1086  ;;  %v7888_v27 = vld [vmem:[#allocation2 + $0x50] sm:$0xff] }
 0x24b   : > { %v724_v23 = vpop.permute.xlu0 %723  ;;  %6131 = vmatprep.mubr.msk.f32.mxu0 %vm6810_vm3, %v6809_v52  ;;  %1167 = vst.msk [vmem:[#allocation2 + $0x58] sm:$0x3] %vm9500_vm2, %v1087_v22  ;;  %v7894_v34 = vrot.slane %v7888_v27, %v7555_v61  ;;  %v2519_v38 = vrot.slane %v2511_v9, %v7555_v61  ;;  %v2117_v51 = vcombine.high %v7888_v27, %v7888_v27  ;;  %v5914_v9 = vld [vmem:[%s7208_s22 + $0xb8] sm:$0x3] }
 0x24c   : > { %802 = vst.msk [vmem:[#allocation2 + $0x68] sm:$0xff] %vm787_vm6, %v724_v23  ;;  %1475 = vrot.lane.b32.xlu1 %v7884_v12, %s6805_s3 }
 0x24d   : > { %1467 = vrot.lane.b32.xlu0 %v7463_v10, %s6805_s3  ;;  %v2512_v39 = vcombine.low %v2116_v28, %v7894_v34  ;;  %v2131_v60 = vrot.slane %v2117_v51, %v7555_v61  ;;  %v2132_v36 = vcombine.high %v7894_v34, %v7894_v34  ;;  %v5944_v51 = vld [vmem:[%s7208_s22 + $0xb9] sm:$0x3] }
 0x24e   : > { %v909_v41 = vpop.permute.xlu1 %908 }
 0x24f   : > { %v1456_v32 = vpop.permute.xlu0 %1455  ;;  %987 = vst.msk [vmem:[#allocation2 + $0x68] sm:$0xff] %vm9509_vm7, %v909_v41  ;;  %v2526_v42 = vrot.slane %v2512_v39, %v7555_v61  ;;  %v2133_v5 = vcombine.high %v2131_v60, %v2131_v60  ;;  %v2528_v7 = vcombine.low %v2132_v36, %v2131_v60  ;;  %v8037_v60 = vld [vmem:[%s7208_s22 + $0xf2] sm:$0xff] }
 0x250   : > { %1535 = vst.msk [vmem:[#allocation2 + $0x60] sm:$0xff] %vm1521_vm10, %v1456_v32  ;;  %916 = vrot.lane.b32.xlu1 %v5822_v35, %s6803_s12  ;;  %v5858_v35 = vld [vmem:[%s7208_s22 + $0xd1] sm:$0x3] }
 0x251   : > { %561 = vrot.lane.b32.xlu0 %v478_v37, %s6800_s0  ;;  %v2527_v10 = vcombine.low %v2519_v38, %v2526_v42  ;;  %v2536_v16 = vrot.slane %v2528_v7, %v7555_v61 }
 0x252   : > { %v1638_v43 = vpop.permute.xlu1 %1637 }
 0x253   : > { %v1269_v44 = vpop.permute.xlu0 %1268  ;;  %1717 = vst.msk [vmem:[#allocation2 + $0x60] sm:$0xff] %vm1703_vm11, %v1638_v43  ;;  %6132 = vmatmul.mubr.msk.f32.gmra.mrb[14].mxu0 %vm2774_vm14, %v2527_v10  ;;  %v7992_v43 = vld [vmem:[%s7208_s22 + $0xf0] sm:$0xff] }
 0x254   : > { %1349 = vst.msk [vmem:[#allocation2 + $0x58] sm:$0x3] %vm9554_vm4, %v1269_v44  ;;  %930 = vrot.lane.b32.xlu1 %v7798_v56, %s6803_s12  ;;  %6134 = vmatprep.mubr.msk.f32.mxu0 %vm6810_vm3, %v6809_v52  ;;  %v5852_v56 = vld [vmem:[%s7208_s22 + $0xa1] sm:$0x3]  ;;  %vm9555_vm4 = vcmask 31744  }
 0x255   : > { %920 = vrot.lane.b32.xlu0 %v7510_v40, %s6803_s12  ;;  %v660_v40 = vld [vmem:[%s7208_s22 + $0xba] sm:$0x3]  ;;  %450 = vst.msk [vmem:[#allocation2 + $0xc8] sm:$0xff] %vm9555_vm4, %v418_v53  ;;  %vm9556_vm4 = vcmask 64544  }
 0x256   : > { %v1454_v4 = vpop.permute.xlu1 %1453 }
 0x257   : > { %v1091_v47 = vpop.permute.xlu0 %1090  ;;  %1534 = vst.msk [vmem:[#allocation2 + $0x58] sm:$0x3] %vm9504_vm5, %v1454_v4 }
 0x258   : > { %1169 = vst.msk [vmem:[#allocation2 + $0x68] sm:$0xff] %vm9508_vm8, %v1091_v47  ;;  %1657 = vrot.lane.b32.xlu1 %v7917_v45, %s6806_s23 }
 0x259   : > { %1649 = vrot.lane.b32.xlu0 %v7741_v25, %s6806_s23  ;;  %v7940_v25 = vld [vmem:[%s7208_s22 + $0xe2] sm:$0xff] }
 0x25a   : > { %v1273_v26 = vpop.permute.xlu1 %1272 }
 0x25b   : > { %v1820_v48 = vpop.permute.xlu0 %1819  ;;  %1351 = vst.msk [vmem:[#allocation2 + $0x68] sm:$0xff] %vm1336_vm9, %v1273_v26 }
 0x25c   : > { %1899 = vst.msk [vmem:[#allocation2 + $0x60] sm:$0xff] %vm9506_vm12, %v1820_v48  ;;  %1098 = vrot.lane.b32.xlu1 %v5852_v56, %s6802_s7  ;;  %v5888_v48 = vld [vmem:[%s7208_s22 + $0xd2] sm:$0x3] }
 0x25d   : > { %743 = vrot.lane.b32.xlu0 %v660_v40, %s6801_s13 }
 0x25e   : > { %v1458_v49 = vpop.permute.xlu1 %1457 }
 0x25f   : > { %v1636_v50 = vpop.permute.xlu0 %1635  ;;  %1536 = vst.msk [vmem:[#allocation2 + $0x68] sm:$0xff] %vm1521_vm10, %v1458_v49 }
 0x260   : > { %1716 = vst.msk [vmem:[#allocation2 + $0x58] sm:$0x3] %vm9503_vm1, %v1636_v50  ;;  %1112 = vrot.lane.b32.xlu1 %v7818_v31, %s6802_s7 }
 0x261   : > { %1102 = vrot.lane.b32.xlu0 %v7752_v63, %s6802_s7  ;;  %v5828_v63 = vld [vmem:[%s7208_s22 + $0xd0] sm:$0x3] }
 0x262   : > { %v1640_v54 = vpop.permute.xlu1 %1639 }
 0x263   : > { %v1818_v58 = vpop.permute.xlu0 %1817  ;;  %v1929_v55 = vld [vmem:[#allocation2 + $0x60] sm:$0xff]  ;;  %1718 = vst.msk [vmem:[#allocation2 + $0x68] sm:$0xff] %vm1703_vm11, %v1640_v54  ;;  %v8020_v54 = vld [vmem:[%s7208_s22 + $0xf1] sm:$0xff] }
 0x264   : > { %1898 = vst.msk [vmem:[#allocation2 + $0x58] sm:$0x3] %vm9502_vm0, %v1818_v58  ;;  %v2141_v29 = vcombine.high %v1929_v55, %v1929_v55  ;;  %v2148_v59 = vrot.slane %v1929_v55, %v7555_v61  ;;  %1839 = vrot.lane.b32.xlu1 %v7940_v25, %s6807_s24  ;;  %v5974_v55 = vld [vmem:[%s7208_s22 + $0xba] sm:$0x3] }
 0x265   : > { %1831 = vrot.lane.b32.xlu0 %v7760_v6, %s6807_s24  ;;  %v5882_v6 = vld [vmem:[%s7208_s22 + $0xa2] sm:$0x3] }
 0x266   : > { %v2155_v30 = vrot.slane %v2141_v29, %v7555_v61  ;;  %v2156_v62 = vcombine.high %v2148_v59, %v2148_v59  ;;  %v1822_v0 = vpop.permute.xlu1 %1821  ;;  %v5920_v29 = vld [vmem:[%s7208_s22 + $0xe8] sm:$0x3] }
 0x267   : > { %v728_v1 = vpop.permute.xlu0 %727  ;;  %1900 = vst.msk [vmem:[#allocation2 + $0x68] sm:$0xff] %vm9506_vm12, %v1822_v0 }
 0x268   : > { %804 = vst.msk [vmem:[#allocation2 + $0x78] sm:$0xff] %vm787_vm6, %v728_v1  ;;  %v2157_v3 = vcombine.high %v2155_v30, %v2155_v30  ;;  %928 = vrot.lane.b32.xlu1 %v5828_v63, %s6803_s12  ;;  %v2545_v8 = vcombine.low %v2148_v59, %v2156_v62  ;;  %v475_v62 = vld [vmem:[%s7208_s22 + $0xa1] sm:$0x3] }
 0x269   : > { %565 = vrot.lane.b32.xlu0 %v7829_v33, %s6800_s0 }
 0x26a   : > { %v2546_v11 = vcombine.low %v2155_v30, %v2157_v3  ;;  %v1095_v13 = vpop.permute.xlu1 %1094  ;;  %v2553_v18 = vrot.slane %v2545_v8, %v7555_v61  ;;  %v420_v3 = vld [vmem:[%s7208_s22 + $0xd8] sm:$0xff]  ;;  %v5980_v8 = vld [vmem:[%s7208_s22 + $0xea] sm:$0x3] }
 0x26b   : > { %v913_v46 = vpop.permute.xlu0 %912  ;;  %v5990_v14 = vld.sshfl [vmem:[#allocation2 + $0x58] sm:$0x3 pattern:$0x76325410] }
 0x26c   : > { %989 = vst.msk [vmem:[#allocation2 + $0x78] sm:$0xff] %vm9509_vm7, %v913_v46  ;;  %v2529_v15 = vcombine.low %v2133_v5, %v5990_v14  ;;  %1284 = vrot.lane.b32.xlu1 %v7776_v20, %s6804_s4  ;;  %v2560_v21 = vrot.slane %v2546_v11, %v7555_v61  ;;  %v8061_v11 = vld [vmem:[%s7208_s22 + $0xf8] sm:$0xff] }
 0x26d   : > { %1171 = vst.msk [vmem:[#allocation2 + $0x78] sm:$0xff] %vm9508_vm8, %v1095_v13  ;;  %1280 = vrot.lane.b32.xlu0 %v5882_v6, %s6804_s4  ;;  %v657_v6 = vld [vmem:[%s7208_s22 + $0xa2] sm:$0x3]  ;;  %v5825_v14 = vld [vmem:[%s7208_s22 + $0xb8] sm:$0x3] }
 0x26e   : > { %v2543_v17 = vrot.slane %v2529_v15, %v7555_v61  ;;  %v1277_v22 = vpop.permute.xlu1 %1276  ;;  %v1930_v27 = vld [vmem:[#allocation2 + $0x68] sm:$0xff]  ;;  %v2561_v37 = vcombine.low %v2553_v18, %v2560_v21 }
 0x26f   : > { %v558_v23 = vpop.permute.xlu0 %557  ;;  %1353 = vst.msk [vmem:[#allocation2 + $0x78] sm:$0xff] %vm1336_vm9, %v1277_v22  ;;  %v2158_v28 = vcombine.high %v1930_v27, %v1930_v27  ;;  %v2165_v34 = vrot.slane %v1930_v27, %v7555_v61  ;;  %v8077_v18 = vld [vmem:[#allocation10] ss:$0 sm:$0xff]  ;;  %v8081_v27 = vld [vmem:[#allocation11] ss:$0 sm:$0xff] }
 0x270   : > { %628 = vst.msk [vmem:[#allocation2 + $0xa8] sm:$0xff] %vm9556_vm4, %v558_v23  ;;  %v2544_v20 = vcombine.low %v2536_v16, %v2543_v17  ;;  %747 = vrot.lane.b32.xlu1 %v7863_v2, %s6801_s13  ;;  %vm9557_vm4 = vcmask 25600   ;;  %v8075_v17 = vld [vmem:[%s7208_s22 + $0xf9] sm:$0xff] }
 0x271   : > { %1294 = vrot.lane.b32.xlu0 %v7846_v24, %s6804_s4  ;;  %v2172_v39 = vrot.slane %v2158_v28, %v7555_v61  ;;  %v2173_v41 = vcombine.high %v2165_v34, %v2165_v34  ;;  %v8089_v28 = vld [vmem:[%s7208_s22 + $0xfa] sm:$0xff] }
 0x272   : > { %6135 = vmatmul.mubr.msk.f32.gmra.mrb[16].mxu0 %vm2774_vm14, %v2544_v20  ;;  %v730_v32 = vpop.permute.xlu1 %729 }
 0x273   : > { %v726_v38 = vpop.permute.xlu0 %725  ;;  %6137 = vmatprep.mubr.msk.f32.mxu0 %vm6810_vm3, %v6809_v52  ;;  %805 = vst.msk [vmem:[#allocation2 + $0x80] sm:$0xff] %vm787_vm6, %v730_v32  ;;  %v2174_v42 = vcombine.high %v2172_v39, %v2172_v39  ;;  %v2562_v10 = vcombine.low %v2165_v34, %v2173_v41  ;;  %v5855_v34 = vld [vmem:[%s7208_s22 + $0xb9] sm:$0x3] }
 0x274   : > { %803 = vst.msk [vmem:[#allocation2 + $0x70] sm:$0x3] %vm9505_vm13, %v726_v38  ;;  %1465 = vrot.lane.b32.xlu1 %v5914_v9, %s6805_s3  ;;  %v5885_v41 = vld [vmem:[%s7208_s22 + $0xba] sm:$0x3] }
 0x275   : > { %1110 = vrot.lane.b32.xlu0 %v5858_v35, %s6802_s7  ;;  %v2563_v44 = vcombine.low %v2172_v39, %v2174_v42  ;;  %v2570_v56 = vrot.slane %v2562_v10, %v7555_v61  ;;  %v421_v39 = vld [vmem:[%s7208_s22 + $0xe0] sm:$0xff] }
 0x276   : > { %6138 = vmatmul.mubr.msk.f32.gmra.mrb[18].mxu0 %vm2774_vm14, %v2561_v37  ;;  %v1462_v4 = vpop.permute.xlu1 %1461 }
 0x277   : > { %v740_v47 = vpop.permute.xlu0 %739  ;;  %6140 = vmatprep.mubr.msk.f32.mxu0 %vm6810_vm3, %v6809_v52  ;;  %1538 = vst.msk [vmem:[#allocation2 + $0x78] sm:$0xff] %vm1521_vm10, %v1462_v4  ;;  %v2577_v40 = vrot.slane %v2563_v44, %v7555_v61 }
 0x278   : > { %810 = vst.msk [vmem:[#allocation2 + $0xa8] sm:$0xff] %vm787_vm6, %v740_v47  ;;  %1479 = vrot.lane.b32.xlu1 %v7992_v43, %s6805_s3 }
 0x279   : > { %1469 = vrot.lane.b32.xlu0 %v7810_v19, %s6805_s3  ;;  %v2578_v26 = vcombine.low %v2570_v56, %v2577_v40 }
 0x27a   : > { %v915_v49 = vpop.permute.xlu1 %914 }
 0x27b   : > { %v911_v50 = vpop.permute.xlu0 %910  ;;  %990 = vst.msk [vmem:[#allocation2 + $0x80] sm:$0xff] %vm9509_vm7, %v915_v49  ;;  %6141 = vmatmul.mubr.msk.f32.gmra.mrb[20].mxu0 %vm2774_vm14, %v2578_v26  ;;  %v8109_v26 = vstv %s6023_s27  ;;  %s387_s27 = sand.u32 1, %s6753_s25  }
 0x27c   : > { %988 = vst.msk [vmem:[#allocation2 + $0x70] sm:$0x3] %vm9501_vm15, %v911_v50  ;;  %1292 = vrot.lane.b32.xlu1 %v5888_v48, %s6804_s4  ;;  %6143 = vmatprep.mubr.msk.f32.mxu0 %vm6810_vm3, %v6809_v52  ;;  %vm9559_vm15 = vcmask 64544   ;;  %v5917_v50 = vld [vmem:[%s7208_s22 + $0xd0] sm:$0x3] }
 0x27d   : > { %932 = vrot.lane.b32.xlu0 %v7884_v12, %s6803_s12 }
 0x27e   : > { %v1644_v19 = vpop.permute.xlu1 %1643 }
 0x27f   : > { %v925_v53 = vpop.permute.xlu0 %924  ;;  %1720 = vst.msk [vmem:[#allocation2 + $0x78] sm:$0xff] %vm1703_vm11, %v1644_v19 }
 0x280   : > { %995 = vst.msk [vmem:[#allocation2 + $0xa8] sm:$0xff] %vm9509_vm7, %v925_v53  ;;  %1651 = vrot.lane.b32.xlu1 %v7829_v33, %s6806_s23  ;;  %v413_v33 = vld [vmem:[%s7208_s22 + $0xa0] sm:$0x3] }
 0x281   : > { %1647 = vrot.lane.b32.xlu0 %v5944_v51, %s6806_s23  ;;  %445 = vst.msk [vmem:[#allocation2 + $0xa0] sm:$0x3] %vm9557_vm4, %v413_v33 }
 0x282   : > { %v1097_v12 = vpop.permute.xlu1 %1096 }
 0x283   : > { %v1093_v58 = vpop.permute.xlu0 %1092  ;;  %1172 = vst.msk [vmem:[#allocation2 + $0x80] sm:$0xff] %vm9508_vm8, %v1097_v12 }
 0x284   : > { %1170 = vst.msk [vmem:[#allocation2 + $0x70] sm:$0x3] %vm9500_vm2, %v1093_v58  ;;  %1114 = vrot.lane.b32.xlu1 %v7917_v45, %s6802_s7  ;;  %vm9558_vm2 = vcmask 189600  }
 0x285   : > { %1661 = vrot.lane.b32.xlu0 %v8020_v54, %s6806_s23 }
 0x286   : > { %v1826_v59 = vpop.permute.xlu1 %1825 }
 0x287   : > { %v1107_v63 = vpop.permute.xlu0 %1106  ;;  %1902 = vst.msk [vmem:[#allocation2 + $0x78] sm:$0xff] %vm9506_vm12, %v1826_v59 }
 0x288   : > { %1177 = vst.msk [vmem:[#allocation2 + $0xa8] sm:$0xff] %vm9508_vm8, %v1107_v63  ;;  %1829 = vrot.lane.b32.xlu1 %v5974_v55, %s6807_s24  ;;  %v481_v63 = vld [vmem:[%s7208_s22 + $0xd1] sm:$0x3] }
 0x289   : > { %1477 = vrot.lane.b32.xlu0 %v5920_v29, %s6805_s3 }
 0x28a   : > { %v1275_v36 = vpop.permute.xlu1 %1274 }
 0x28b   : > { %v560_v30 = vpop.permute.xlu0 %559  ;;  %1352 = vst.msk [vmem:[#allocation2 + $0x70] sm:$0x3] %vm9558_vm2, %v1275_v36 }
 0x28c   : > { %629 = vst.msk [vmem:[#allocation2 + $0xb0] sm:$0xff] %vm9559_vm15, %v560_v30  ;;  %1843 = vrot.lane.b32.xlu1 %v8037_v60, %s6807_s24  ;;  %vm9560_vm15 = vcmask 31744  }
 0x28d   : > { %1833 = vrot.lane.b32.xlu0 %v7863_v2, %s6807_s24  ;;  %452 = vst.msk [vmem:[#allocation2 + $0xd8] sm:$0xff] %vm9560_vm15, %v420_v3  ;;  %v5950_v2 = vld [vmem:[%s7208_s22 + $0xe9] sm:$0x3]  ;;  %vm9561_vm2 = vmmov %vm9560_vm15  ;;  %vm3554_vm15 = vcmp.ge.s32.totalorder %v8109_v26, 0 }
 0x28e   : > { %v1289_v0 = vpop.permute.xlu1 %1288  ;;  %453 = vst.msk [vmem:[#allocation2 + $0xe0] sm:$0xff] %vm9561_vm2, %v421_v39  ;;  %v1932_v10 = vld [vmem:[#allocation2 + $0x78] sm:$0xff]  ;;  %vm3564_vm2 = vcmp.lt.s32.totalorder %v8109_v26, 16 }
 0x28f   : > { %v1279_v1 = vpop.permute.xlu0 %1278  ;;  %1359 = vst.msk [vmem:[#allocation2 + $0xa8] sm:$0xff] %vm1336_vm9, %v1289_v0  ;;  %v2182_v51 = vcombine.high %v1932_v10, %v1932_v10  ;;  %v2189_v19 = vrot.slane %v1932_v10, %v7555_v61 }
 0x290   : > { %1354 = vst.msk [vmem:[#allocation2 + $0x80] sm:$0xff] %vm1336_vm9, %v1279_v1  ;;  %1296 = vrot.lane.b32.xlu1 %v7940_v25, %s6804_s4 }
 0x291   : > { %555 = vrot.lane.b32.xlu0 %v475_v62, %s6800_s0  ;;  %v2196_v36 = vrot.slane %v2182_v51, %v7555_v61  ;;  %v2197_v30 = vcombine.high %v2189_v19, %v2189_v19 }
 0x292   : > { %v742_v5 = vpop.permute.xlu1 %741 }
 0x293   : > { %v734_v7 = vpop.permute.xlu0 %733  ;;  %811 = vst.msk [vmem:[#allocation2 + $0xb0] sm:$0xff] %vm787_vm6, %v742_v5  ;;  %v419_v5 = vld [vmem:[%s7208_s22 + $0xd0] sm:$0x3] }
 0x294   : > { %807 = vst.msk [vmem:[#allocation2 + $0x90] sm:$0xff] %vm787_vm6, %v734_v7  ;;  %737 = vrot.lane.b32.xlu1 %v657_v6, %s6801_s13 }
 0x295   : > { %1659 = vrot.lane.b32.xlu0 %v5950_v2, %s6806_s23 }
 0x296   : > { %v1464_v13 = vpop.permute.xlu1 %1463 }
 0x297   : > { %v1460_v46 = vpop.permute.xlu0 %1459  ;;  %1539 = vst.msk [vmem:[#allocation2 + $0x80] sm:$0xff] %vm1521_vm10, %v1464_v13 }
 0x298   : > { %1537 = vst.msk [vmem:[#allocation2 + $0x70] sm:$0x3] %vm9504_vm5, %v1460_v46  ;;  %1841 = vrot.lane.b32.xlu1 %v5980_v8, %s6807_s24  ;;  %vm9564_vm5 = vcmask 64544   ;;  %v5947_v46 = vld [vmem:[%s7208_s22 + $0xd1] sm:$0x3] }
 0x299   : > { %1481 = vrot.lane.b32.xlu0 %v8061_v11, %s6805_s3 }
 0x29a   : > { %v919_v15 = vpop.permute.xlu1 %918 }
 0x29b   : > { %v1474_v16 = vpop.permute.xlu0 %1473  ;;  %992 = vst.msk [vmem:[#allocation2 + $0x90] sm:$0xff] %vm9509_vm7, %v919_v15 }
 0x29c   : > { %1544 = vst.msk [vmem:[#allocation2 + $0xa8] sm:$0xff] %vm1521_vm10, %v1474_v16  ;;  %922 = vrot.lane.b32.xlu1 %v5825_v14, %s6803_s12  ;;  %v2580_v14 = vcombine.low %v2197_v30, %v2196_v36 }
 0x29d   : > { %569 = vrot.lane.b32.xlu0 %v7818_v31, %s6800_s0 }
 0x29e   : > { %v1642_v21 = vpop.permute.xlu1 %1641 }
 0x29f   : > { %v927_v22 = vpop.permute.xlu0 %926  ;;  %1719 = vst.msk [vmem:[#allocation2 + $0x70] sm:$0x3] %vm9503_vm1, %v1642_v21  ;;  %v2891_v23 = vpop.f32.mrb[0].mxu0  ;;  %vm3584_vm1 = vcmp.ge.s32.totalorder %v7543_v57, 1 }
 0x2a0   : > { %996 = vst.msk [vmem:[#allocation2 + $0xb0] sm:$0xff] %vm9509_vm7, %v927_v22  ;;  %751 = vrot.lane.b32.xlu1 %v7846_v24, %s6801_s13  ;;  %v3012_v31 = vmul.f32 %v8077_v18, %v2891_v23  ;;  %v6112_v20 = vpop.f32.mrb[1].mxu0 }
 0x2a1   : > { %1663 = vrot.lane.b32.xlu0 %v8075_v17, %s6806_s23 }
 0x2a2   : > { %v1656_v9 = vpop.permute.xlu1 %1655  ;;  %v3042_v37 = vadd.f32 %v8081_v27, %v3012_v31 }
 0x2a3   : > { %v1646_v35 = vpop.permute.xlu0 %1645  ;;  %1726 = vst.msk [vmem:[#allocation2 + $0xa8] sm:$0xff] %vm1703_vm11, %v1656_v9  ;;  %v2198_v9 = vcombine.high %v2196_v36, %v2196_v36 }
 0x2a4   : > { %1721 = vst.msk [vmem:[#allocation2 + $0x80] sm:$0xff] %vm1703_vm11, %v1646_v35  ;;  %1845 = vrot.lane.b32.xlu1 %v8089_v28, %s6807_s24  ;;  %vm3065_vm4 = vcmp.gt.f32.partialorder %v3042_v37, 0.0  ;;  %v3088_v24 = vmul.f32 0.01, %v3042_v37 }
 0x2a5   : > { %1104 = vrot.lane.b32.xlu0 %v5855_v34, %s6802_s7 }
 0x2a6   : > { %v3111_v32 = vsel %vm3065_vm4, %v3042_v37, %v3088_v24  ;;  %v1109_v38 = vpop.permute.xlu1 %1108  ;;  %v2896_v47 = vpop.f32.mrb[2].mxu0  ;;  %v663_v24 = vld [vmem:[%s7208_s22 + $0xd2] sm:$0x3] }
 0x2a7   : > { %v1101_v42 = vpop.permute.xlu0 %1100  ;;  %v3157_v44 = vcombine.high %v3111_v32, %v3111_v32  ;;  %v3164_v4 = vrot.slane %v3111_v32, %v7555_v61  ;;  %1178 = vst.msk [vmem:[#allocation2 + $0xb0] sm:$0xff] %vm9508_vm8, %v1109_v38  ;;  %v3013_v56 = vmul.f32 %v8077_v18, %v2896_v47  ;;  %v6115_v40 = vpop.f32.mrb[3].mxu0  ;;  %v2594_v32 = vrot.slane %v2580_v14, %v7555_v61 }
 0x2a8   : > { %1174 = vst.msk [vmem:[#allocation2 + $0x90] sm:$0xff] %vm9508_vm8, %v1101_v42  ;;  %1286 = vrot.lane.b32.xlu1 %v5885_v41, %s6804_s4 }
 0x2a9   : > { %936 = vrot.lane.b32.xlu0 %v7992_v43, %s6803_s12  ;;  %v3171_v48 = vrot.slane %v3157_v44, %v7555_v61  ;;  %v3172_v49 = vcombine.high %v3164_v4, %v3164_v4  ;;  %v3043_v53 = vadd.f32 %v8081_v27, %v3013_v56 }
 0x2aa   : > { %v1828_v12 = vpop.permute.xlu1 %1827 }
 0x2ab   : > { %v1824_v58 = vpop.permute.xlu0 %1823  ;;  %v3173_v55 = vcombine.high %v3171_v48, %v3171_v48  ;;  %v3710_v29 = vcombine.low %v3164_v4, %v3172_v49  ;;  %1903 = vst.msk [vmem:[#allocation2 + $0x80] sm:$0xff] %vm9506_vm12, %v1828_v12  ;;  %vm3066_vm4 = vcmp.gt.f32.partialorder %v3043_v53, 0.0  ;;  %v3089_v43 = vmul.f32 0.01, %v3043_v53  ;;  %v5977_v49 = vld [vmem:[%s7208_s22 + $0xd2] sm:$0x3] }
 0x2ac   : > { %1901 = vst.msk [vmem:[#allocation2 + $0x70] sm:$0x3] %vm9502_vm0, %v1824_v58  ;;  %1471 = vrot.lane.b32.xlu1 %v5917_v50, %s6805_s3  ;;  %vm8125_vm0 = vmand %vm3554_vm15, %vm3564_vm2  ;;  %vm9565_vm15 = vcmask 25600   ;;  %vm9513_vm2 = vcmask 64512   ;;  %v5924_v50 = vld [vmem:[%s7208_s22 + $0x108] sm:$0xff] }
 0x2ad   : > { %1118 = vrot.lane.b32.xlu0 %v8020_v54, %s6802_s7  ;;  %v3711_v33 = vcombine.low %v3171_v48, %v3173_v55  ;;  %v3718_v59 = vrot.slane %v3710_v29, %v7555_v61  ;;  %v3112_v62 = vsel %vm3066_vm4, %v3043_v53, %v3089_v43  ;;  %451 = vst.msk [vmem:[#allocation2 + $0xd0] sm:$0x3] %vm9565_vm15, %v419_v5  ;;  %vm9568_vm4 = vcmask 64544   ;;  %v5831_v29 = vld [vmem:[%s7208_s22 + $0xe8] sm:$0x3] }
 0x2ae   : > { %v554_v0 = vpop.permute.xlu1 %553  ;;  %v3174_v6 = vcombine.high %v3112_v62, %v3112_v62  ;;  %v3181_v2 = vrot.slane %v3112_v62, %v7555_v61  ;;  %vm9569_vm15 = vcmask 124000  }
 0x2af   : > { %v1838_v1 = vpop.permute.xlu0 %1837  ;;  %v3725_v54 = vrot.slane %v3711_v33, %v7555_v61  ;;  %626 = vst.msk [vmem:[#allocation2 + $0x98] sm:$0xff] %vm9564_vm5, %v554_v0  ;;  %vm8145_vm5 = vmand %vm8125_vm0, %vm3584_vm1  ;;  %v5984_v0 = vld [vmem:[%s7208_s22 + $0x10a] sm:$0xff] }
 0x2b0   : > { %1908 = vst.msk [vmem:[#allocation2 + $0xa8] sm:$0xff] %vm9506_vm12, %v1838_v1  ;;  %571 = vrot.lane.b32.xlu1 %v7917_v45, %s6800_s0  ;;  %v3188_v8 = vrot.slane %v3174_v6, %v7555_v61  ;;  %v3189_v13 = vcombine.high %v3181_v2, %v3181_v2 }
 0x2b1   : > { %567 = vrot.lane.b32.xlu0 %v481_v63, %s6800_s0  ;;  %v3726_v7 = vcombine.low %v3718_v59, %v3725_v54  ;;  %v5861_v59 = vld [vmem:[%s7208_s22 + $0xe9] sm:$0x3] }
 0x2b2   : > { %v1283_v16 = vpop.permute.xlu1 %1282  ;;  %v1933_v22 = vld [vmem:[#allocation2 + $0x80] sm:$0xff]  ;;  %v3190_v23 = vcombine.high %v3188_v8, %v3188_v8  ;;  %v3727_v31 = vcombine.low %v3181_v2, %v3189_v13  ;;  %v5954_v63 = vld [vmem:[%s7208_s22 + $0x109] sm:$0xff] }
 0x2b3   : > { %v564_v45 = vpop.permute.xlu0 %563  ;;  %v5991_v21 = vld.sshfl [vmem:[#allocation2 + $0x70] sm:$0x3 pattern:$0x76325410]  ;;  %1356 = vst.msk [vmem:[#allocation2 + $0x90] sm:$0xff] %vm1336_vm9, %v1283_v16  ;;  %v2199_v34 = vcombine.high %v1933_v22, %v1933_v22  ;;  %v2206_v35 = vrot.slane %v1933_v22, %v7555_v61  ;;  %v4150_v37 = vsel %vm8145_vm5, %v3726_v7, 0.0 }
 0x2b4   : > { %631 = vst.msk [vmem:[#allocation2 + $0xc0] sm:$0xff] %vm9568_vm4, %v564_v45  ;;  %v2579_v20 = vcombine.low %v5991_v21, %v2189_v19  ;;  %1653 = vrot.lane.b32.xlu1 %v5947_v46, %s6806_s23  ;;  %v3728_v39 = vcombine.low %v3188_v8, %v3190_v23  ;;  %v3735_v4 = vrot.slane %v3727_v31, %v7555_v61  ;;  %vm9570_vm5 = vcmask 58400   ;;  %v5891_v54 = vld [vmem:[%s7208_s22 + $0xea] sm:$0x3]  ;;  %v5925_v13 = vld [vmem:[%s7208_s22 + $0x110] sm:$0xff] }
 0x2b5   : > { %1300 = vrot.lane.b32.xlu0 %v8037_v60, %s6804_s4  ;;  %v8161_v38 = vrot.slane %v2199_v34, %v7555_v61  ;;  %4181 = vst.msk [vmem:[#allocation3] sm:$0xff] %vm9513_vm2, %v4150_v37  ;;  %v2214_v10 = vcombine.high %v2206_v35, %v2206_v35  ;;  %v2596_v44 = vcombine.low %v2198_v9, %v2206_v35  ;;  %v8219_v46 = vadd.s32 16, %v7543_v57  ;;  %v5955_v45 = vld [vmem:[%s7208_s22 + $0x111] sm:$0xff]  ;;  %v5953_v21 = vld [vmem:[%s7208_s22 + $0x101] sm:$0x3] }
 0x2b6   : > { %v2587_v41 = vrot.slane %v2579_v20, %v7555_v61  ;;  %v732_v60 = vpop.permute.xlu1 %731  ;;  %v3742_v47 = vrot.slane %v3728_v39, %v7555_v61  ;;  %vm9571_vm4 = vcmask 156800  }
 0x2b7   : > { %v1291_v42 = vpop.permute.xlu0 %1290  ;;  %806 = vst.msk [vmem:[#allocation2 + $0x88] sm:$0x3] %vm9505_vm13, %v732_v60  ;;  %v2597_v40 = vcombine.low %v2214_v10, %v8161_v38  ;;  %v2604_v53 = vrot.slane %v2596_v44, %v7555_v61  ;;  %v1938_v35 = vld [vmem:[#allocation2 + $0xa8] sm:$0xff] }
 0x2b8   : > { %1360 = vst.msk [vmem:[#allocation2 + $0xb0] sm:$0xff] %vm1336_vm9, %v1291_v42  ;;  %v2595_v56 = vcombine.low %v2587_v41, %v2594_v32  ;;  %753 = vrot.lane.b32.xlu1 %v7940_v25, %s6801_s13  ;;  %v3743_v48 = vcombine.low %v3735_v4, %v3742_v47  ;;  %v5985_v41 = vld [vmem:[%s7208_s22 + $0x112] sm:$0xff]  ;;  %v5983_v32 = vld [vmem:[%s7208_s22 + $0x102] sm:$0x3]  ;;  %v3545_v42 = vadd.s32 1, %v8109_v26  ;;  %v2264_v4 = vcombine.high %v1938_v35, %v1938_v35 }
 0x2b9   : > { %749 = vrot.lane.b32.xlu0 %v663_v24, %s6801_s13  ;;  %v2611_v12 = vrot.slane %v2597_v40, %v7555_v61  ;;  %v8251_v47 = vrot.slane %v1938_v35, %v7555_v61 }
 0x2ba   : > { %6144 = vmatmul.mubr.msk.f32.gmra.mrb[22].mxu0 %vm2774_vm14, %v2595_v56  ;;  %v746_v51 = vpop.permute.xlu1 %745  ;;  %v4151_v25 = vsel %vm8125_vm0, %v3743_v48, 0.0 }
 0x2bb   : > { %v736_v19 = vpop.permute.xlu0 %735  ;;  %6146 = vmatprep.mubr.msk.f32.mxu0 %vm6810_vm3, %v6809_v52  ;;  %813 = vst.msk [vmem:[#allocation2 + $0xc0] sm:$0xff] %vm787_vm6, %v746_v51  ;;  %v2612_v58 = vcombine.low %v2604_v53, %v2611_v12  ;;  %v484_v51 = vld [vmem:[%s7208_s22 + $0xe9] sm:$0x3] }
 0x2bc   : > { %808 = vst.msk [vmem:[#allocation2 + $0x98] sm:$0xff] %vm787_vm6, %v736_v19  ;;  %1835 = vrot.lane.b32.xlu1 %v5977_v49, %s6807_s24  ;;  %v4212_v55 = vld [vmem:[#allocation3] sm:$0xff]  ;;  %v666_v49 = vld [vmem:[%s7208_s22 + $0xea] sm:$0x3] }
 0x2bd   : > { %1485 = vrot.lane.b32.xlu0 %v5924_v50, %s6805_s3  ;;  %4182 = vst.msk [vmem:[#allocation3 + $0x8] sm:$0xff] %vm9513_vm2, %v4151_v25  ;;  %4228 = vst.msk [vmem:[#allocation4] sm:$0xff] %vm9513_vm2, %v4212_v55  ;;  %v2278_v25 = vrot.slane %v2264_v4, %v7555_v61 }
 0x2be   : > { %6147 = vmatmul.mubr.msk.f32.gmra.mrb[24].mxu0 %vm2774_vm14, %v2612_v58  ;;  %v1476_v43 = vpop.permute.xlu1 %1475  ;;  %v2279_v58 = vcombine.high %v8251_v47, %v8251_v47 }
 0x2bf   : > { %v1468_v33 = vpop.permute.xlu0 %1467  ;;  %1545 = vst.msk [vmem:[#allocation2 + $0xb0] sm:$0xff] %vm1521_vm10, %v1476_v43  ;;  %6149 = vmatprep.mubr.msk.f32.mxu0 %vm6810_vm3, %v6809_v52 }
 0x2c0   : > { %1541 = vst.msk [vmem:[#allocation2 + $0x90] sm:$0xff] %vm1521_vm10, %v1468_v33  ;;  %938 = vrot.lane.b32.xlu1 %v8061_v11, %s6803_s12  ;;  %v5864_v33 = vld [vmem:[%s7208_s22 + $0x101] sm:$0x3] }
 0x2c1   : > { %934 = vrot.lane.b32.xlu0 %v5831_v29, %s6803_s12 }
 0x2c2   : > { %v917_v36 = vpop.permute.xlu1 %916 }
 0x2c3   : > { %v562_v30 = vpop.permute.xlu0 %561  ;;  %991 = vst.msk [vmem:[#allocation2 + $0x88] sm:$0x3] %vm9569_vm15, %v917_v36 }
 0x2c4   : > { %630 = vst.msk [vmem:[#allocation2 + $0xb8] sm:$0x3] %vm9570_vm5, %v562_v30  ;;  %v4213_v62 = vld [vmem:[#allocation3 + $0x8] sm:$0xff]  ;;  %1116 = vrot.lane.b32.xlu1 %v5861_v59, %s6802_s7  ;;  %vm9507_vm5 = vcmp.le.s32.totalorder %v8219_v46, 16  ;;  %v5834_v59 = vld [vmem:[%s7208_s22 + $0x100] sm:$0x3] }
 0x2c5   : > { %1667 = vrot.lane.b32.xlu0 %v5954_v63, %s6806_s23  ;;  %4229 = vst.msk [vmem:[#allocation4 + $0x8] sm:$0xff] %vm9513_vm2, %v4213_v62  ;;  %v422_v63 = vld [vmem:[%s7208_s22 + $0xe8] sm:$0x3]  ;;  %v4244_v35 = vld [vmem:[#allocation3 + $0x1] sm:$0xff] }
 0x2c6   : > { %v931_v11 = vpop.permute.xlu1 %930 }
 0x2c7   : > { %v921_v1 = vpop.permute.xlu0 %920  ;;  %998 = vst.msk [vmem:[#allocation2 + $0xc0] sm:$0xff] %vm9509_vm7, %v931_v11 }
 0x2c8   : > { %993 = vst.msk [vmem:[#allocation2 + $0x98] sm:$0xff] %vm9509_vm7, %v921_v1  ;;  %1849 = vrot.lane.b32.xlu1 %v5984_v0, %s6807_s24  ;;  %v2280_v1 = vcombine.high %v2278_v25, %v2278_v25 }
 0x2c9   : > { %1120 = vrot.lane.b32.xlu0 %v8075_v17, %s6802_s7  ;;  %v5923_v17 = vld [vmem:[%s7208_s22 + $0x100] sm:$0x3] }
 0x2ca   : > { %v1658_v6 = vpop.permute.xlu1 %1657 }
 0x2cb   : > { %v1650_v2 = vpop.permute.xlu0 %1649  ;;  %1727 = vst.msk [vmem:[#allocation2 + $0xb0] sm:$0xff] %vm1703_vm11, %v1658_v6  ;;  %v2664_v6 = vcombine.low %v2279_v58, %v2278_v25 }
 0x2cc   : > { %1723 = vst.msk [vmem:[#allocation2 + $0x90] sm:$0xff] %vm1703_vm11, %v1650_v2  ;;  %1302 = vrot.lane.b32.xlu1 %v8089_v28, %s6804_s4  ;;  %v2901_v5 = vpop.f32.mrb[4].mxu0 }
 0x2cd   : > { %1298 = vrot.lane.b32.xlu0 %v5891_v54, %s6804_s4  ;;  %v3014_v7 = vmul.f32 %v8077_v18, %v2901_v5  ;;  %v6118_v8 = vpop.f32.mrb[5].mxu0 }
 0x2ce   : > { %v1099_v14 = vpop.permute.xlu1 %1098  ;;  %v5894_v8 = vld [vmem:[%s7208_s22 + $0x102] sm:$0x3] }
 0x2cf   : > { %v744_v15 = vpop.permute.xlu0 %743  ;;  %v3044_v16 = vadd.f32 %v8081_v27, %v3014_v7  ;;  %1173 = vst.msk [vmem:[#allocation2 + $0x88] sm:$0x3] %vm9571_vm4, %v1099_v14  ;;  %vm8238_vm4 = vmand %vm8125_vm0, %vm9507_vm5  ;;  %vm9575_vm5 = vcmask 64544   ;;  %v5926_v7 = vld [vmem:[%s7208_s22 + $0x118] sm:$0x3] }
 0x2d0   : > { %812 = vst.msk [vmem:[#allocation2 + $0xb8] sm:$0x3] %vm9505_vm13, %v744_v15  ;;  %1487 = vrot.lane.b32.xlu1 %v5925_v13, %s6805_s3  ;;  %vm3555_vm13 = vcmp.ge.s32.totalorder %v3545_v42, 0 }
 0x2d1   : > { %1483 = vrot.lane.b32.xlu0 %v5923_v17, %s6805_s3  ;;  %vm3067_vm15 = vcmp.gt.f32.partialorder %v3044_v16, 0.0  ;;  %v3090_v28 = vmul.f32 0.01, %v3044_v16 }
 0x2d2   : > { %v1113_v22 = vpop.permute.xlu1 %1112 }
 0x2d3   : > { %v1103_v23 = vpop.permute.xlu0 %1102  ;;  %v3113_v31 = vsel %vm3067_vm15, %v3044_v16, %v3090_v28  ;;  %1180 = vst.msk [vmem:[#allocation2 + $0xc0] sm:$0xff] %vm9508_vm8, %v1113_v22  ;;  %vm4183_vm15 = vcmask 58368   ;;  %v2672_v16 = vrot.slane %v2664_v6, %v7555_v61  ;;  %v5986_v22 = vld [vmem:[%s7208_s22 + $0x11a] sm:$0x3] }
 0x2d4   : > { %1175 = vst.msk [vmem:[#allocation2 + $0x98] sm:$0xff] %vm9508_vm8, %v1103_v23  ;;  %v3191_v20 = vcombine.high %v3113_v31, %v3113_v31  ;;  %v3198_v34 = vrot.slane %v3113_v31, %v7555_v61  ;;  %1669 = vrot.lane.b32.xlu1 %v5955_v45, %s6806_s23  ;;  %v5956_v23 = vld [vmem:[%s7208_s22 + $0x119] sm:$0x3]  ;;  %s6815_s22 = smov 64  }
 0x2d5   : > { %1665 = vrot.lane.b32.xlu0 %v5953_v21, %s6806_s23  ;;  %v2906_v9 = vpop.f32.mrb[6].mxu0 }
 0x2d6   : > { %v3015_v39 = vmul.f32 %v8077_v18, %v2906_v9  ;;  %v6121_v24 = vpop.f32.mrb[7].mxu0  ;;  %v3750_v60 = vrot.slane %v3198_v34, %v7555_v61  ;;  %v1840_v10 = vpop.permute.xlu1 %1839  ;;  %v3205_v56 = vrot.slane %v3191_v20, %v7555_v61  ;;  %v3206_v40 = vcombine.high %v3198_v34, %v3198_v34 }
 0x2d7   : > { %v1832_v44 = vpop.permute.xlu0 %1831  ;;  %1909 = vst.msk [vmem:[#allocation2 + $0xb0] sm:$0xff] %vm9506_vm12, %v1840_v10 }
 0x2d8   : > { %v3045_v3 = vadd.f32 %v8081_v27, %v3015_v39  ;;  %1905 = vst.msk [vmem:[#allocation2 + $0x90] sm:$0xff] %vm9506_vm12, %v1832_v44  ;;  %v4152_v48 = vsel %vm8238_vm4, %v3750_v60, 0.0  ;;  %1851 = vrot.lane.b32.xlu1 %v5985_v41, %s6807_s24  ;;  %vm3565_vm12 = vcmp.lt.s32.totalorder %v3545_v42, 16  ;;  %vm9574_vm4 = vcmask 124000  }
 0x2d9   : > { %1847 = vrot.lane.b32.xlu0 %v5983_v32, %s6807_s24  ;;  %4184 = vst.msk [vmem:[#allocation3 + $0x10] sm:$0x3] %vm4183_vm15, %v4152_v48  ;;  %v3751_v55 = vcombine.low %v3206_v40, %v3205_v56  ;;  %v3207_v29 = vcombine.high %v3205_v56, %v3205_v56  ;;  %v4341_v32 = vld [vmem:[#allocation3 + $0x2] sm:$0xff] }
 0x2da   : > { %vm3068_vm0 = vcmp.gt.f32.partialorder %v3045_v3, 0.0  ;;  %v3091_v50 = vmul.f32 0.01, %v3045_v3  ;;  %v929_v19 = vpop.permute.xlu1 %928 }
 0x2db   : > { %v566_v53 = vpop.permute.xlu0 %565  ;;  %997 = vst.msk [vmem:[#allocation2 + $0xb8] sm:$0x3] %vm9574_vm4, %v929_v19  ;;  %vm9579_vm4 = vcmask 189600   ;;  %v3759_v2 = vrot.slane %v3751_v55, %v7555_v61 }
 0x2dc   : > { %v8261_v12 = vsel %vm3068_vm0, %v3045_v3, %v3091_v50  ;;  %632 = vst.msk [vmem:[#allocation2 + $0xc8] sm:$0xff] %vm9575_vm5, %v566_v53  ;;  %755 = vrot.lane.b32.xlu1 %v666_v49, %s6801_s13  ;;  %vm8278_vm5 = vmand %vm3555_vm13, %vm3565_vm12  ;;  %vm9578_vm0 = vcmask 25600   ;;  %vm9580_vm13 = vcmask 222400  }
 0x2dd   : > { %v8270_v43 = vrot.slane %v8261_v12, %v7555_v61  ;;  %573 = vrot.lane.b32.xlu0 %v484_v51, %s6800_s0  ;;  %454 = vst.msk [vmem:[#allocation2 + $0xe8] sm:$0x3] %vm9578_vm0, %v422_v63  ;;  %vm3590_vm12 = vmand %vm8278_vm5, %vm3584_vm1  ;;  %vm9581_vm0 = vcmask 156800   ;;  %v3208_v44 = vcombine.high %v8261_v12, %v8261_v12  ;;  %s6816_s0 = smov 104  }
 0x2de   : > { %v1285_v62 = vpop.permute.xlu1 %1284  ;;  %v8283_v11 = vld [vmem:[#allocation2 + $0xb0] sm:$0xff] }
 0x2df   : > { %v3752_v30 = vcombine.low %v3207_v29, %v8270_v43  ;;  %v1281_v0 = vpop.permute.xlu0 %1280  ;;  %1357 = vst.msk [vmem:[#allocation2 + $0x98] sm:$0xff] %vm1336_vm9, %v1285_v62  ;;  %v8290_v54 = vrot.slane %v8283_v11, %v7555_v61  ;;  %v1935_v49 = vld [vmem:[#allocation2 + $0x90] sm:$0xff]  ;;  %v3222_v51 = vrot.slane %v3208_v44, %v7555_v61  ;;  %v3223_v19 = vcombine.high %v8270_v43, %v8270_v43 }
 0x2e0   : > { %1355 = vst.msk [vmem:[#allocation2 + $0x88] sm:$0x3] %vm9579_vm4, %v1281_v0  ;;  %1122 = vrot.lane.b32.xlu1 %v5864_v33, %s6802_s7  ;;  %v4245_v37 = vld [vmem:[#allocation3 + $0x9] sm:$0xff]  ;;  %v2230_v55 = vrot.slane %v1935_v49, %v7555_v61 }
 0x2e1   : > { %v3766_v5 = vrot.slane %v3752_v30, %v7555_v61  ;;  %940 = vrot.lane.b32.xlu0 %v5834_v59, %s6803_s12  ;;  %v2665_v13 = vcombine.low %v2280_v1, %v8290_v54  ;;  %v4342_v60 = vld [vmem:[#allocation3 + $0xa] sm:$0xff]  ;;  %v3546_v30 = vadd.s32 2, %v8109_v26  ;;  %v3768_v43 = vcombine.low %v3223_v19, %v3222_v51  ;;  %s6817_s12 = smov 96  }
 0x2e2   : > { %v748_v14 = vpop.permute.xlu1 %747  ;;  %v3224_v62 = vcombine.high %v3222_v51, %v3222_v51 }
 0x2e3   : > { %v3767_v17 = vcombine.low %v3759_v2, %v3766_v5  ;;  %v1295_v15 = vpop.permute.xlu0 %1294  ;;  %814 = vst.msk [vmem:[#allocation2 + $0xc8] sm:$0xff] %vm787_vm6, %v748_v14  ;;  %v2679_v28 = vrot.slane %v2665_v13, %v7555_v61  ;;  %v2238_v2 = vcombine.high %v2230_v55, %v2230_v55  ;;  %v2223_v5 = vcombine.high %v1935_v49, %v1935_v49 }
 0x2e4   : > { %1362 = vst.msk [vmem:[#allocation2 + $0xc0] sm:$0xff] %vm1336_vm9, %v1295_v15  ;;  %1489 = vrot.lane.b32.xlu1 %v5926_v7, %s6805_s3 }
 0x2e5   : > { %v4153_v45 = vsel %vm3590_vm12, %v3767_v17, 0.0  ;;  %1304 = vrot.lane.b32.xlu0 %v5894_v8, %s6804_s4  ;;  %v2680_v21 = vcombine.low %v2672_v16, %v2679_v28  ;;  %vm9582_vm12 = vcmask 255200   ;;  %v3776_v28 = vrot.slane %v3768_v43, %v7555_v61  ;;  %s6818_s4 = smov 88  }
 0x2e6   : > { %4185 = vst.msk [vmem:[#allocation3 + $0x18] sm:$0xff] %vm9513_vm2, %v4153_v45  ;;  %v1466_v31 = vpop.permute.xlu1 %1465 }
 0x2e7   : > { %v1111_v20 = vpop.permute.xlu0 %1110  ;;  %1540 = vst.msk [vmem:[#allocation2 + $0x88] sm:$0x3] %vm9580_vm13, %v1466_v31  ;;  %6159 = vmatmul.mubr.msk.f32.vlgmr.msra.gmra.mrb[0].mxu1 %vm2774_vm14, %v2680_v21  ;;  %v2215_v31 = vcombine.high %v8161_v38, %v8161_v38 }
 0x2e8   : > { %1179 = vst.msk [vmem:[#allocation2 + $0xb8] sm:$0x3] %vm9581_vm0, %v1111_v20  ;;  %1853 = vrot.lane.b32.xlu1 %v5986_v22, %s6807_s24  ;;  %6161 = vmatprep.mubr.msk.f32.mxu1 %vm6810_vm3, %v6809_v52  ;;  %vm9583_vm0 = vcmask 288000   ;;  %v2614_v20 = vcombine.low %v2230_v55, %v2238_v2 }
 0x2e9   : > { %1671 = vrot.lane.b32.xlu0 %v5956_v23, %s6806_s23  ;;  %s6819_s23 = smov 80  }
 0x2ea   : > { %v1480_v34 = vpop.permute.xlu1 %1479 }
 0x2eb   : > { %v1470_v9 = vpop.permute.xlu0 %1469  ;;  %1547 = vst.msk [vmem:[#allocation2 + $0xc0] sm:$0xff] %vm1521_vm10, %v1480_v34  ;;  %v2237_v34 = vrot.slane %v2223_v5, %v7555_v61 }
 0x2ec   : > { %1542 = vst.msk [vmem:[#allocation2 + $0x98] sm:$0xff] %vm1521_vm10, %v1470_v9  ;;  %4278 = vrot.lane.b32.xlu1 %v4245_v37, %s6801_s13 }
 0x2ed   : > { %4276 = vrot.lane.b32.xlu0 %v4244_v35, %s6801_s13  ;;  %v4439_v39 = vld [vmem:[#allocation3 + $0x18] sm:$0xff] }
 0x2ee   : > { %4230 = vst.msk [vmem:[#allocation4 + $0x10] sm:$0xff] %vm9513_vm2, %v4439_v39  ;;  %v1293_v24 = vpop.permute.xlu1 %1292 }
 0x2ef   : > { %v933_v41 = vpop.permute.xlu0 %932  ;;  %1361 = vst.msk [vmem:[#allocation2 + $0xb8] sm:$0x3] %vm9579_vm4, %v1293_v24  ;;  %vm9584_vm4 = vcmask 222400  }
 0x2f0   : > { %999 = vst.msk [vmem:[#allocation2 + $0xc8] sm:$0xff] %vm9509_vm7, %v933_v41  ;;  %4375 = vrot.lane.b32.xlu1 %v4342_v60, %s6802_s7 }
 0x2f1   : > { %4373 = vrot.lane.b32.xlu0 %v4341_v32, %s6802_s7 }
 0x2f2   : > { %v1652_v42 = vpop.permute.xlu1 %1651 }
 0x2f3   : > { %v1648_v10 = vpop.permute.xlu0 %1647  ;;  %1724 = vst.msk [vmem:[#allocation2 + $0x98] sm:$0xff] %vm1703_vm11, %v1652_v42 }
 0x2f4   : > { %1722 = vst.msk [vmem:[#allocation2 + $0x88] sm:$0x3] %vm9582_vm12, %v1648_v10 }
 0x2f5   : > { %4471 = vrot.lane.b32.xlu0 %v4439_v39, %s6805_s3  ;;  %v2911_v3 = vpop.f32.mrb[8].mxu0 }
 0x2f6   : > { %v3016_v4 = vmul.f32 %v8077_v18, %v2911_v3  ;;  %v6124_v56 = vpop.f32.mrb[9].mxu0  ;;  %v1115_v40 = vpop.permute.xlu1 %1114  ;;  %v2628_v3 = vrot.slane %v2614_v20, %v7555_v61 }
 0x2f7   : > { %v1662_v48 = vpop.permute.xlu0 %1661  ;;  %1181 = vst.msk [vmem:[#allocation2 + $0xc8] sm:$0xff] %vm9508_vm8, %v1115_v40  ;;  %vm9588_vm8 = vcmask 294144  }
 0x2f8   : > { %v3046_v50 = vadd.f32 %v8081_v27, %v3016_v4  ;;  %1729 = vst.msk [vmem:[#allocation2 + $0xc0] sm:$0xff] %vm1703_vm11, %v1662_v48  ;;  %vm9589_vm7 = vmmov %vm9588_vm8  ;;  %v2239_v4 = vcombine.high %v2237_v34, %v2237_v34 }
 0x2f9   : > { %v2916_v53 = vpop.f32.mrb[10].mxu0 }
 0x2fa   : > { %vm3069_vm13 = vcmp.gt.f32.partialorder %v3046_v50, 0.0  ;;  %v3092_v12 = vmul.f32 0.01, %v3046_v50  ;;  %v3017_v25 = vmul.f32 %v8077_v18, %v2916_v53  ;;  %v6127_v58 = vpop.f32.mrb[11].mxu0  ;;  %v1830_v29 = vpop.permute.xlu1 %1829  ;;  %v2630_v55 = vcombine.low %v2237_v34, %v2239_v4 }
 0x2fb   : > { %v1478_v33 = vpop.permute.xlu0 %1477  ;;  %1904 = vst.msk [vmem:[#allocation2 + $0x88] sm:$0x3] %vm9583_vm0, %v1830_v29 }
 0x2fc   : > { %v3115_v59 = vsel %vm3069_vm13, %v3046_v50, %v3092_v12  ;;  %v3047_v63 = vadd.f32 %v8081_v27, %v3017_v25  ;;  %1546 = vst.msk [vmem:[#allocation2 + $0xb8] sm:$0x3] %vm9584_vm4, %v1478_v33  ;;  %vm9585_vm13 = vcmp.le.s32.totalorder %v8219_v46, 16  ;;  %vm3556_vm4 = vcmp.ge.s32.totalorder %v3546_v30, 0 }
 0x2fd   : > { %v3225_v0 = vcombine.high %v3115_v59, %v3115_v59  ;;  %v3232_v1 = vrot.slane %v3115_v59, %v7555_v61  ;;  %vm8352_vm0 = vmand %vm8278_vm5, %vm9585_vm13  ;;  %vm9594_vm13 = vcmask 255200   ;;  %v2281_v12 = vcombine.high %v8283_v11, %v8283_v11 }
 0x2fe   : > { %vm3070_vm12 = vcmp.gt.f32.partialorder %v3047_v63, 0.0  ;;  %v3093_v6 = vmul.f32 0.01, %v3047_v63  ;;  %v1844_v17 = vpop.permute.xlu1 %1843 }
 0x2ff   : > { %v3239_v7 = vrot.slane %v3225_v0, %v7555_v61  ;;  %v3240_v8 = vcombine.high %v3232_v1, %v3232_v1  ;;  %v3769_v13 = vcombine.low %v3224_v62, %v3232_v1  ;;  %v1834_v14 = vpop.permute.xlu0 %1833  ;;  %1911 = vst.msk [vmem:[#allocation2 + $0xc0] sm:$0xff] %vm9588_vm8, %v1844_v17  ;;  %vm9590_vm8 = vcmask 58400  }
 0x300   : > { %v8356_v16 = vsel %vm3070_vm12, %v3047_v63, %v3093_v6  ;;  %1906 = vst.msk [vmem:[#allocation2 + $0x98] sm:$0xff] %vm9589_vm7, %v1834_v14  ;;  %vm3566_vm7 = vcmp.lt.s32.totalorder %v3546_v30, 16  ;;  %v2295_v62 = vrot.slane %v2281_v12, %v7555_v61  ;;  %v2296_v0 = vcombine.high %v8290_v54, %v8290_v54 }
 0x301   : > { %v3241_v45 = vcombine.high %v3239_v7, %v3239_v7  ;;  %v3783_v21 = vrot.slane %v3769_v13, %v7555_v61  ;;  %v3791_v22 = vrot.slane %v3240_v8, %v7555_v61  ;;  %v3249_v23 = vrot.slane %v8356_v16, %v7555_v61  ;;  %vm8377_vm12 = vmand %vm3556_vm4, %vm3566_vm7 }
 0x302   : > { %v1297_v39 = vpop.permute.xlu1 %1296  ;;  %v5992_v41 = vld.sshfl [vmem:[#allocation2 + $0x88] sm:$0x3 pattern:$0x76325410]  ;;  %vm9595_vm4 = vcmask 288000   ;;  %v2638_v1 = vrot.slane %v2630_v55, %v7555_v61  ;;  %vm9596_vm7 = vcmask 124000   ;;  %v2297_v17 = vcombine.high %v2295_v62, %v2295_v62 }
 0x303   : > { %v3784_v9 = vcombine.low %v3776_v28, %v3783_v21  ;;  %v3792_v35 = vcombine.low %v3239_v7, %v3241_v45  ;;  %v4155_v37 = vsel %vm8352_vm0, %v3791_v22, 0.0  ;;  %v556_v24 = vpop.permute.xlu0 %555  ;;  %v3257_v32 = vcombine.high %v3249_v23, %v3249_v23  ;;  %1363 = vst.msk [vmem:[#allocation2 + $0xc8] sm:$0xff] %vm1336_vm9, %v1297_v39  ;;  %vm3593_vm0 = vmand %vm8377_vm12, %vm3584_vm1 }
 0x304   : > { %4187 = vst.msk [vmem:[#allocation3 + $0x28] sm:$0x3] %vm4183_vm15, %v4155_v37  ;;  %v2613_v38 = vcombine.low %v2215_v31, %v5992_v41  ;;  %v2681_v14 = vcombine.low %v2296_v0, %v2295_v62 }
 0x305   : > { %627 = vst.msk [vmem:[#allocation2 + $0xa0] sm:$0x3] %vm9590_vm8, %v556_v24  ;;  %v4154_v60 = vsel %vm8278_vm5, %v3784_v9, 0.0  ;;  %v3793_v10 = vcombine.low %v3249_v23, %v3257_v32  ;;  %v3800_v56 = vrot.slane %v3792_v35, %v7555_v61  ;;  %vm9593_vm5 = vcmask 91200  }
 0x306   : > { %4186 = vst.msk [vmem:[#allocation3 + $0x20] sm:$0xff] %vm9513_vm2, %v4154_v60  ;;  %v2621_v44 = vrot.slane %v2613_v38, %v7555_v61  ;;  %v738_v40 = vpop.permute.xlu1 %737  ;;  %v1941_v36 = vld [vmem:[#allocation2 + $0xc0] sm:$0xff]  ;;  %vm9597_vm8 = vcmask 64544   ;;  %v2689_v34 = vrot.slane %v2681_v14, %v7555_v61  ;;  %v3242_v60 = vcombine.high %v8356_v16, %v8356_v16 }
 0x307   : > { %v1660_v48 = vpop.permute.xlu0 %1659  ;;  %v8384_v49 = vld [vmem:[#allocation2 + $0x98] sm:$0xff]  ;;  %v3807_v50 = vrot.slane %v3793_v10, %v7555_v61  ;;  %809 = vst.msk [vmem:[#allocation2 + $0xa0] sm:$0x3] %vm9593_vm5, %v738_v40  ;;  %v2305_v53 = vcombine.high %v1941_v36, %v1941_v36  ;;  %v2312_v2 = vrot.slane %v1941_v36, %v7555_v61  ;;  %vm9598_vm5 = vcmask 294144  }
 0x308   : > { %1728 = vst.msk [vmem:[#allocation2 + $0xb8] sm:$0x3] %vm9594_vm13, %v1660_v48  ;;  %v2629_v51 = vcombine.low %v2621_v44, %v2628_v3  ;;  %v2247_v19 = vrot.slane %v8384_v49, %v7555_v61  ;;  %vm9599_vm13 = vcmask 156800   ;;  %v3256_v40 = vrot.slane %v3242_v60, %v7555_v61 }
 0x309   : > { %v3808_v25 = vcombine.low %v3800_v56, %v3807_v50  ;;  %v2319_v30 = vrot.slane %v2305_v53, %v7555_v61  ;;  %v2320_v15 = vcombine.high %v2312_v2, %v2312_v2 }
 0x30a   : > { %6150 = vmatmul.mubr.msk.f32.gmra.mrb[26].mxu0 %vm2774_vm14, %v2629_v51  ;;  %v2255_v58 = vcombine.high %v2247_v19, %v2247_v19  ;;  %v1842_v29 = vpop.permute.xlu1 %1841  ;;  %v3258_v55 = vcombine.high %v3256_v40, %v3256_v40 }
 0x30b   : > { %v1482_v33 = vpop.permute.xlu0 %1481  ;;  %6152 = vmatprep.mubr.msk.f32.mxu0 %vm6810_vm3, %v6809_v52  ;;  %v4156_v59 = vsel %vm3593_vm0, %v3808_v25, 0.0  ;;  %1910 = vst.msk [vmem:[#allocation2 + $0xb8] sm:$0x3] %vm9595_vm4, %v1842_v29  ;;  %v2321_v54 = vcombine.high %v2319_v30, %v2319_v30  ;;  %v2698_v35 = vcombine.low %v2312_v2, %v2320_v15  ;;  %vm9600_vm0 = vcmask 189600  }
 0x30c   : > { %1548 = vst.msk [vmem:[#allocation2 + $0xc8] sm:$0xff] %vm1521_vm10, %v1482_v33  ;;  %v2631_v63 = vcombine.low %v2247_v19, %v2255_v58  ;;  %vm9601_vm4 = vcmask 130144   ;;  %v3809_v0 = vcombine.low %v3256_v40, %v3258_v55 }
 0x30d   : > { %4188 = vst.msk [vmem:[#allocation3 + $0x30] sm:$0xff] %vm9513_vm2, %v4156_v59  ;;  %v4536_v11 = vld [vmem:[#allocation3 + $0x19] sm:$0xff]  ;;  %v4537_v13 = vld [vmem:[#allocation3 + $0x21] sm:$0xff]  ;;  %v2699_v23 = vcombine.low %v2319_v30, %v2321_v54  ;;  %v2706_v38 = vrot.slane %v2698_v35, %v7555_v61 }
 0x30e   : > { %v4440_v43 = vld [vmem:[#allocation3 + $0x20] sm:$0xff]  ;;  %4568 = vrot.lane.b32.xlu0 %v4536_v11, %s6807_s24  ;;  %v2645_v6 = vrot.slane %v2631_v63, %v7555_v61  ;;  %v923_v5 = vpop.permute.xlu1 %922 }
 0x30f   : > { %4473 = vrot.lane.b32.xlu1 %v4440_v43, %s6805_s3  ;;  %4231 = vst.msk [vmem:[#allocation4 + $0x18] sm:$0xff] %vm9513_vm2, %v4440_v43  ;;  %v570_v7 = vpop.permute.xlu0 %569  ;;  %v4633_v20 = vld [vmem:[#allocation3 + $0x1a] sm:$0xff]  ;;  %v2713_v41 = vrot.slane %v2699_v23, %v7555_v61  ;;  %v4634_v32 = vld [vmem:[#allocation3 + $0x22] sm:$0xff] }
 0x310   : > { %994 = vst.msk [vmem:[#allocation2 + $0xa0] sm:$0x3] %vm9596_vm7, %v923_v5  ;;  %v2646_v8 = vcombine.low %v2638_v1, %v2645_v6  ;;  %vm9602_vm7 = vcmask 222400  }
 0x311   : > { %634 = vst.msk [vmem:[#allocation2 + $0xd8] sm:$0xff] %vm9597_vm8, %v570_v7  ;;  %v2714_v3 = vcombine.low %v2706_v38, %v2713_v41  ;;  %vm9603_vm8 = vcmask 162944   ;;  %v5038_v41 = vld [vmem:[#allocation13] sm:$0xff] }
 0x312   : > { %6153 = vmatmul.mubr.msk.f32.gmra.mrb[28].mxu0 %vm2774_vm14, %v2646_v8  ;;  %4570 = vrot.lane.b32.xlu0 %v4537_v13, %s6807_s24  ;;  %v752_v28 = vpop.permute.xlu1 %751  ;;  %v5994_v21 = vld.sshfl [vmem:[#allocation2 + $0xb8] sm:$0x3 pattern:$0x76325410] }
 0x313   : > { %4280 = vrot.lane.b32.xlu1 %v4536_v11, %s6801_s13  ;;  %v1664_v45 = vpop.permute.xlu0 %1663  ;;  %6155 = vmatprep.mubr.msk.f32.mxu0 %vm6810_vm3, %v6809_v52  ;;  %816 = vst.msk [vmem:[#allocation2 + $0xd8] sm:$0xff] %vm787_vm6, %v752_v28  ;;  %v2682_v22 = vcombine.low %v2297_v17, %v5994_v21  ;;  %v3547_v28 = vadd.s32 3, %v8109_v26  ;;  %v2240_v21 = vcombine.high %v8384_v49, %v8384_v49 }
 0x314   : > { %1730 = vst.msk [vmem:[#allocation2 + $0xc8] sm:$0xff] %vm1703_vm11, %v1664_v45  ;;  %v4731_v31 = vld [vmem:[#allocation3 + $0x30] sm:$0xff] }
 0x315   : > { %4232 = vst.msk [vmem:[#allocation4 + $0x20] sm:$0xff] %vm9513_vm2, %v4731_v31  ;;  %v2696_v9 = vrot.slane %v2682_v22, %v7555_v61  ;;  %v3817_v22 = vrot.slane %v3809_v0, %v7555_v61  ;;  %v2254_v35 = vrot.slane %v2240_v21, %v7555_v61  ;;  %v5046_v21 = vld [vmem:[#allocation13 + $0x40] sm:$0xff] }
 0x316   : > { %4282 = vrot.lane.b32.xlu0 %v4537_v13, %s6801_s13  ;;  %v1846_v37 = vpop.permute.xlu1 %1845 }
 0x317   : > { %4665 = vrot.lane.b32.xlu1 %v4633_v20, %s6812_s17  ;;  %v1105_v39 = vpop.permute.xlu0 %1104  ;;  %1912 = vst.msk [vmem:[#allocation2 + $0xc8] sm:$0xff] %vm9598_vm5, %v1846_v37  ;;  %v2697_v24 = vcombine.low %v2689_v34, %v2696_v9 }
 0x318   : > { %1176 = vst.msk [vmem:[#allocation2 + $0xa0] sm:$0x3] %vm9599_vm13, %v1105_v39  ;;  %vm9604_vm13 = vcmask 64544  }
 0x319   : > { %6162 = vmatmul.mubr.msk.f32.gmra.mrb[2].mxu1 %vm2774_vm14, %v2697_v24 }
 0x31a   : > { %4667 = vrot.lane.b32.xlu0 %v4634_v32, %s6812_s17  ;;  %v1287_v10 = vpop.permute.xlu1 %1286  ;;  %6164 = vmatprep.mubr.msk.f32.mxu1 %vm6810_vm3, %v6809_v52 }
 0x31b   : > { %4377 = vrot.lane.b32.xlu1 %v4633_v20, %s6802_s7  ;;  %v937_v44 = vpop.permute.xlu0 %936  ;;  %1358 = vst.msk [vmem:[#allocation2 + $0xa0] sm:$0x3] %vm9600_vm0, %v1287_v10  ;;  %vm9605_vm0 = vcmask 58400  }
 0x31c   : > { %1001 = vst.msk [vmem:[#allocation2 + $0xd8] sm:$0xff] %vm9601_vm4, %v937_v44  ;;  %vm9606_vm4 = vcmp.le.s32.totalorder %v8219_v46, 16 }
 0x31d   : > { %v2921_v4 = vpop.f32.mrb[12].mxu0  ;;  %6165 = vmatmul.mubr.msk.f32.gmra.mrb[4].mxu1 %vm2774_vm14, %v2714_v3 }
 0x31e   : > { %v3018_v56 = vmul.f32 %v8077_v18, %v2921_v4  ;;  %v6130_v16 = vpop.f32.mrb[13].mxu0  ;;  %4379 = vrot.lane.b32.xlu0 %v4634_v32, %s6802_s7  ;;  %v1472_v48 = vpop.permute.xlu1 %1471  ;;  %6167 = vmatprep.mubr.msk.f32.mxu1 %vm6810_vm3, %v6809_v52  ;;  %v1942_v50 = vld [vmem:[#allocation2 + $0xc8] sm:$0xff]  ;;  %v5039_v32 = vld [vmem:[#allocation13 + $0x8] sm:$0xff] }
 0x31f   : > { %4763 = vrot.lane.b32.xlu1 %v4731_v31, %s6813_s30  ;;  %v1119_v36 = vpop.permute.xlu0 %1118  ;;  %1543 = vst.msk [vmem:[#allocation2 + $0xa0] sm:$0x3] %vm9602_vm7, %v1472_v48  ;;  %v2322_v19 = vcombine.high %v1942_v50, %v1942_v50  ;;  %v2329_v53 = vrot.slane %v1942_v50, %v7555_v61  ;;  %vm3628_vm7 = vmand %vm8377_vm12, %vm9606_vm4  ;;  %vm3567_vm4 = vcmp.lt.s32.totalorder %v3547_v28, 16  ;;  %v6227_v44 = vpack.c.bf16 %v5039_v32, %v5038_v41  ;;  %v5041_v50 = vld [vmem:[#allocation13 + $0x18] sm:$0xff] }
 0x320   : > { %v3048_v51 = vadd.f32 %v8081_v27, %v3018_v56  ;;  %1183 = vst.msk [vmem:[#allocation2 + $0xd8] sm:$0xff] %vm9603_vm8, %v1119_v36  ;;  %vm9607_vm8 = vcmask 255200   ;;  %v2256_v56 = vcombine.high %v2254_v35, %v2254_v35  ;;  %v5040_v36 = vld [vmem:[#allocation13 + $0x10] sm:$0xff] }
 0x321   : > { %v2336_v25 = vrot.slane %v2322_v19, %v7555_v61  ;;  %v2337_v58 = vcombine.high %v2329_v53, %v2329_v53  ;;  %6228 = vmatprep.subr.bf16.mxu1 %v6227_v44  ;;  %v6231_v19 = vpack.c.bf16 %v5041_v50, %v5040_v36 }
 0x322   : > { %vm3071_vm5 = vcmp.gt.f32.partialorder %v3048_v51, 0.0  ;;  %v3094_v12 = vmul.f32 0.01, %v3048_v51  ;;  %v572_v29 = vpop.permute.xlu1 %571  ;;  %6230 = vmatpush3.bf16.msra.mxu1 %v6227_v44 }
 0x323   : > { %4475 = vrot.lane.b32.xlu1 %v4731_v31, %s6805_s3  ;;  %v568_v33 = vpop.permute.xlu0 %567  ;;  %635 = vst.msk [vmem:[#allocation2 + $0xe0] sm:$0xff] %vm9604_vm13, %v572_v29  ;;  %v2338_v63 = vcombine.high %v2336_v25, %v2336_v25  ;;  %v2715_v30 = vcombine.low %v2329_v53, %v2337_v58  ;;  %v2647_v58 = vcombine.low %v2254_v35, %v2256_v56 }
 0x324   : > { %v3117_v59 = vsel %vm3071_vm5, %v3048_v51, %v3094_v12  ;;  %633 = vst.msk [vmem:[#allocation2 + $0xd0] sm:$0x3] %vm9605_vm0, %v568_v33  ;;  %vm9608_vm5 = vcmask 91200   ;;  %vm3557_vm0 = vcmp.ge.s32.totalorder %v3547_v28, 0  ;;  %6232 = vmatprep.subr.bf16.mxu1 %v6231_v19 }
 0x325   : > { %v3259_v11 = vcombine.high %v3117_v59, %v3117_v59  ;;  %v3266_v43 = vrot.slane %v3117_v59, %v7555_v61  ;;  %v2716_v62 = vcombine.low %v2336_v25, %v2338_v63  ;;  %v2723_v8 = vrot.slane %v2715_v30, %v7555_v61 }
 0x326   : > { %v1654_v2 = vpop.permute.xlu1 %1653  ;;  %v2926_v7 = vpop.f32.mrb[14].mxu0  ;;  %6234 = vmatpush3.bf16.msra.mxu1 %v6231_v19  ;;  %v3548_v19 = vadd.s32 4, %v8109_v26 }
 0x327   : > { %v3273_v1 = vrot.slane %v3259_v11, %v7555_v61  ;;  %v3274_v6 = vcombine.high %v3266_v43, %v3266_v43  ;;  %v1301_v5 = vpop.permute.xlu0 %1300  ;;  %1725 = vst.msk [vmem:[#allocation2 + $0xa0] sm:$0x3] %vm9607_vm8, %v1654_v2  ;;  %v2730_v54 = vrot.slane %v2716_v62, %v7555_v61  ;;  %v3019_v14 = vmul.f32 %v8077_v18, %v2926_v7  ;;  %v6133_v15 = vpop.f32.mrb[15].mxu0  ;;  %v5043_v62 = vld [vmem:[#allocation13 + $0x28] sm:$0xff] }
 0x328   : > { %1365 = vst.msk [vmem:[#allocation2 + $0xd8] sm:$0xff] %vm1336_vm9, %v1301_v5  ;;  %vm9613_vm8 = vcmask 124000  }
 0x329   : > { %v3810_v13 = vcombine.low %v3266_v43, %v3274_v6  ;;  %v3832_v17 = vrot.slane %v3273_v1, %v7555_v61  ;;  %v2731_v45 = vcombine.low %v2723_v8, %v2730_v54  ;;  %v3049_v20 = vadd.f32 %v8081_v27, %v3019_v14  ;;  %v5042_v43 = vld [vmem:[#allocation13 + $0x20] sm:$0xff]  ;;  %v5044_v8 = vld [vmem:[#allocation13 + $0x30] sm:$0xff]  ;;  %v5045_v54 = vld [vmem:[#allocation13 + $0x38] sm:$0xff] }
 0x32a   : > { %v754_v34 = vpop.permute.xlu1 %753  ;;  %v3275_v38 = vcombine.high %v3273_v1, %v3273_v1  ;;  %v2655_v1 = vrot.slane %v2647_v58, %v7555_v61  ;;  %v6235_v2 = vpack.c.bf16 %v5043_v62, %v5042_v43 }
 0x32b   : > { %v3824_v23 = vrot.slane %v3810_v13, %v7555_v61  ;;  %v4158_v31 = vsel %vm3628_vm7, %v3832_v17, 0.0  ;;  %v750_v9 = vpop.permute.xlu0 %749  ;;  %817 = vst.msk [vmem:[#allocation2 + $0xe0] sm:$0xff] %vm787_vm6, %v754_v34  ;;  %6168 = vmatmul.mubr.msk.f32.gmra.mrb[6].mxu1 %vm2774_vm14, %v2731_v45  ;;  %vm3072_vm13 = vcmp.gt.f32.partialorder %v3049_v20, 0.0  ;;  %v3095_v49 = vmul.f32 0.01, %v3049_v20 }
 0x32c   : > { %4190 = vst.msk [vmem:[#allocation3 + $0x40] sm:$0x3] %vm4183_vm15, %v4158_v31  ;;  %6170 = vmatprep.mubr.msk.f32.mxu1 %vm6810_vm3, %v6809_v52  ;;  %vm9609_vm6 = vcmask 288000   ;;  %vm9612_vm7 = vcmask 130144   ;;  %6236 = vmatprep.subr.bf16.mxu1 %v6235_v2  ;;  %v6239_v13 = vpack.c.bf16 %v5045_v54, %v5044_v8 }
 0x32d   : > { %815 = vst.msk [vmem:[#allocation2 + $0xd0] sm:$0x3] %vm9608_vm5, %v750_v9  ;;  %v3825_v18 = vcombine.low %v3817_v22, %v3824_v23  ;;  %v3118_v37 = vsel %vm3072_vm13, %v3049_v20, %v3095_v49  ;;  %vm9616_vm13 = vcmask 156800   ;;  %6238 = vmatpush3.bf16.msra.mxu1 %v6235_v2  ;;  %v8536_v9 = vld [vmem:[#allocation10] ss:$0 sm:$0xff] }
 0x32e   : > { %v1836_v39 = vpop.permute.xlu1 %1835  ;;  %v3276_v60 = vcombine.high %v3118_v37, %v3118_v37  ;;  %v3283_v10 = vrot.slane %v3118_v37, %v7555_v61  ;;  %6240 = vmatprep.subr.bf16.mxu1 %v6239_v13 }
 0x32f   : > { %v4157_v27 = vsel %vm8377_vm12, %v3825_v18, 0.0  ;;  %v1486_v24 = vpop.permute.xlu0 %1485  ;;  %1907 = vst.msk [vmem:[#allocation2 + $0xa0] sm:$0x3] %vm9609_vm6, %v1836_v39  ;;  %vm8491_vm12 = vmand %vm3557_vm0, %vm3567_vm4  ;;  %vm9617_vm0 = vcmask 294144   ;;  %vm9618_vm4 = vcmask 162944   ;;  %vm9619_vm6 = vcmask 189600  }
 0x330   : > { %4189 = vst.msk [vmem:[#allocation3 + $0x38] sm:$0xff] %vm9513_vm2, %v4157_v27  ;;  %v8487_v42 = vrot.slane %v3276_v60, %v7555_v61  ;;  %v3291_v3 = vcombine.high %v3283_v10, %v3283_v10  ;;  %v3833_v4 = vcombine.low %v3275_v38, %v3283_v10  ;;  %vm8502_vm5 = vmand %vm8491_vm12, %vm3584_vm1 }
 0x331   : > { %1550 = vst.msk [vmem:[#allocation2 + $0xd8] sm:$0xff] %vm1521_vm10, %v1486_v24  ;;  %6242 = vmatpush3.bf16.msra.mxu1 %v6239_v13  ;;  %v8542_v24 = vld [vmem:[#allocation11] ss:$0 sm:$0xff] }
 0x332   : > { %v939_v40 = vpop.permute.xlu1 %938  ;;  %v3834_v51 = vcombine.low %v3291_v3, %v8487_v42  ;;  %v3841_v12 = vrot.slane %v3833_v4, %v7555_v61  ;;  %6195 = vmatprep.subr.mxu1 %v5046_v21  ;;  %v3292_v36 = vcombine.high %v8487_v42, %v8487_v42 }
 0x333   : > { %v935_v48 = vpop.permute.xlu0 %934  ;;  %1002 = vst.msk [vmem:[#allocation2 + $0xe0] sm:$0xff] %vm9612_vm7, %v939_v40 }
 0x334   : > { %1000 = vst.msk [vmem:[#allocation2 + $0xd0] sm:$0x3] %vm9613_vm8, %v935_v48  ;;  %v3848_v25 = vrot.slane %v3834_v51, %v7555_v61  ;;  %vm9623_vm8 = vcmask 288000  }
 0x335   : > { %6196 = vmatpush3.msra.mxu1 %v5046_v21 }
 0x336   : > { %v1117_v55 = vpop.permute.xlu1 %1116  ;;  %v5993_v63 = vld.sshfl [vmem:[#allocation2 + $0xa0] sm:$0x3 pattern:$0x76325410]  ;;  %v3849_v30 = vcombine.low %v3841_v12, %v3848_v25 }
 0x337   : > { %v1668_v29 = vpop.permute.xlu0 %1667  ;;  %v4828_v33 = vld [vmem:[#allocation3 + $0x31] sm:$0xff]  ;;  %1182 = vst.msk [vmem:[#allocation2 + $0xd0] sm:$0x3] %vm9616_vm13, %v1117_v55  ;;  %v2648_v11 = vcombine.low %v5993_v63, %v8251_v47  ;;  %v4829_v28 = vld [vmem:[#allocation3 + $0x39] sm:$0xff]  ;;  %vm9624_vm13 = vcmask 58400  }
 0x338   : > { %v4732_v59 = vld [vmem:[#allocation3 + $0x38] sm:$0xff]  ;;  %1732 = vst.msk [vmem:[#allocation2 + $0xd8] sm:$0xff] %vm1703_vm11, %v1668_v29  ;;  %4860 = vrot.lane.b32.xlu1 %v4828_v33, %s9514_s14  ;;  %v4159_v0 = vsel %vm8502_vm5, %v3849_v30, 0.0 }
 0x339   : > { %4765 = vrot.lane.b32.xlu0 %v4732_v59, %s6813_s30  ;;  %4233 = vst.msk [vmem:[#allocation4 + $0x28] sm:$0xff] %vm9513_vm2, %v4732_v59  ;;  %v2662_v6 = vrot.slane %v2648_v11, %v7555_v61  ;;  %4191 = vst.msk [vmem:[#allocation3 + $0x48] sm:$0xff] %vm9513_vm2, %v4159_v0  ;;  %v4925_v15 = vld [vmem:[#allocation3 + $0x32] sm:$0xff]  ;;  %v4926_v39 = vld [vmem:[#allocation3 + $0x3a] sm:$0xff] }
 0x33a   : > { %v1850_v5 = vpop.permute.xlu1 %1849 }
 0x33b   : > { %v1121_v7 = vpop.permute.xlu0 %1120  ;;  %1914 = vst.msk [vmem:[#allocation2 + $0xd8] sm:$0xff] %vm9617_vm0, %v1850_v5  ;;  %v2663_v47 = vcombine.low %v2655_v1, %v2662_v6 }
 0x33c   : > { %1184 = vst.msk [vmem:[#allocation2 + $0xe0] sm:$0xff] %vm9618_vm4, %v1121_v7  ;;  %4572 = vrot.lane.b32.xlu1 %v4828_v33, %s6807_s24  ;;  %vm9625_vm4 = vcmask 91200  }
 0x33d   : > { %4477 = vrot.lane.b32.xlu0 %v4732_v59, %s6805_s3  ;;  %6156 = vmatmul.mubr.msk.f32.gmra.mrb[30].mxu0 %vm2774_vm14, %v2663_v47 }
 0x33e   : > { %v1303_v17 = vpop.permute.xlu1 %1302 }
 0x33f   : > { %v1299_v14 = vpop.permute.xlu0 %1298  ;;  %1366 = vst.msk [vmem:[#allocation2 + $0xe0] sm:$0xff] %vm1336_vm9, %v1303_v17  ;;  %vm9620_vm9 = vcmask 222400  }
 0x340   : > { %1364 = vst.msk [vmem:[#allocation2 + $0xd0] sm:$0x3] %vm9619_vm6, %v1299_v14  ;;  %4957 = vrot.lane.b32.xlu1 %v4925_v15, %s6815_s22  ;;  %v8528_v45 = vld [vmem:[#allocation3 + $0x48] sm:$0xff]  ;;  %vm9626_vm6 = vcmp.le.s32.totalorder %v8219_v46, 16 }
 0x341   : > { %4862 = vrot.lane.b32.xlu0 %v4829_v28, %s9514_s14  ;;  %4234 = vst.msk [vmem:[#allocation4 + $0x30] sm:$0xff] %vm9513_vm2, %v8528_v45 }
 0x342   : > { %v1488_v22 = vpop.permute.xlu1 %1487  ;;  %v1944_v31 = vld [vmem:[#allocation2 + $0xd8] sm:$0xff] }
 0x343   : > { %v1484_v23 = vpop.permute.xlu0 %1483  ;;  %1551 = vst.msk [vmem:[#allocation2 + $0xe0] sm:$0xff] %vm1521_vm10, %v1488_v22  ;;  %v2346_v34 = vcombine.high %v1944_v31, %v1944_v31  ;;  %v8540_v35 = vrot.slane %v1944_v31, %v7555_v61  ;;  %vm9621_vm10 = vcmask 255200  }
 0x344   : > { %1549 = vst.msk [vmem:[#allocation2 + $0xd0] sm:$0x3] %vm9620_vm9, %v1484_v23  ;;  %4574 = vrot.lane.b32.xlu1 %v4829_v28, %s6807_s24  ;;  %vm8575_vm9 = vmand %vm8491_vm12, %vm9626_vm6  ;;  %vm9510_vm6 = vcmask 130112  }
 0x345   : > { %4284 = vrot.lane.b32.xlu0 %v4828_v33, %s6801_s13  ;;  %v2931_v20 = vpop.f32.mrb[16].mxu0  ;;  %v8550_v38 = vrot.slane %v2346_v34, %v7555_v61  ;;  %v2361_v3 = vcombine.high %v8540_v35, %v8540_v35 }
 0x346   : > { %v3020_v18 = vmul.f32 %v8536_v9, %v2931_v20  ;;  %v6136_v49 = vpop.f32.mrb[17].mxu0  ;;  %v1670_v27 = vpop.permute.xlu1 %1669 }
 0x347   : > { %v1666_v37 = vpop.permute.xlu0 %1665  ;;  %1733 = vst.msk [vmem:[#allocation2 + $0xe0] sm:$0xff] %vm1703_vm11, %v1670_v27  ;;  %vm9622_vm11 = vmmov %vm9617_vm0  ;;  %v2733_v12 = vcombine.low %v2361_v3, %v8550_v38  ;;  %vm3558_vm0 = vcmp.ge.s32.totalorder %v3548_v19, 0  ;;  %v2362_v2 = vcombine.high %v8550_v38, %v8550_v38 }
 0x348   : > { %v3050_v41 = vadd.f32 %v8542_v24, %v3020_v18  ;;  %1731 = vst.msk [vmem:[#allocation2 + $0xd0] sm:$0x3] %vm9621_vm10, %v1666_v37  ;;  %4959 = vrot.lane.b32.xlu1 %v4926_v39, %s6815_s22  ;;  %vm3568_vm10 = vcmp.lt.s32.totalorder %v3548_v19, 16 }
 0x349   : > { %4669 = vrot.lane.b32.xlu0 %v4925_v15, %s6812_s17  ;;  %v2936_v32 = vpop.f32.mrb[18].mxu0  ;;  %v2747_v6 = vrot.slane %v2733_v12, %v7555_v61 }
 0x34a   : > { %vm3073_vm7 = vcmp.gt.f32.partialorder %v3050_v41, 0.0  ;;  %v3096_v60 = vmul.f32 0.01, %v3050_v41  ;;  %v3021_v10 = vmul.f32 %v8536_v9, %v2936_v32  ;;  %v6139_v44 = vpop.f32.mrb[19].mxu0  ;;  %v1852_v4 = vpop.permute.xlu1 %1851 }
 0x34b   : > { %v1848_v56 = vpop.permute.xlu0 %1847  ;;  %1915 = vst.msk [vmem:[#allocation2 + $0xe0] sm:$0xff] %vm9622_vm11, %v1852_v4  ;;  %vm9630_vm11 = vcmask 156800  }
 0x34c   : > { %v3119_v40 = vsel %vm3073_vm7, %v3050_v41, %v3096_v60  ;;  %1913 = vst.msk [vmem:[#allocation2 + $0xd0] sm:$0x3] %vm9623_vm8, %v1848_v56  ;;  %4381 = vrot.lane.b32.xlu1 %v4925_v15, %s6802_s7  ;;  %v3051_v48 = vadd.f32 %v8542_v24, %v3021_v10  ;;  %vm9629_vm7 = vcmask 124000  }
 0x34d   : > { %4286 = vrot.lane.b32.xlu0 %v4829_v28, %s6801_s13  ;;  %v3293_v50 = vcombine.high %v3119_v40, %v3119_v40  ;;  %v3300_v51 = vrot.slane %v3119_v40, %v7555_v61 }
 0x34e   : > { %vm3074_vm5 = vcmp.gt.f32.partialorder %v3051_v48, 0.0  ;;  %v3097_v53 = vmul.f32 0.01, %v3051_v48  ;;  %v756_v29 = vpop.permute.xlu1 %755  ;;  %v2941_v63 = vpop.f32.mrb[20].mxu0 }
 0x34f   : > { %v3307_v25 = vrot.slane %v3293_v50, %v7555_v61  ;;  %v3308_v58 = vcombine.high %v3300_v51, %v3300_v51  ;;  %v3850_v55 = vcombine.low %v3292_v36, %v3300_v51  ;;  %v574_v33 = vpop.permute.xlu0 %573  ;;  %v6142_v43 = vpop.f32.mrb[21].mxu0  ;;  %v3022_v1 = vmul.f32 %v8536_v9, %v2941_v63 }
 0x350   : > { %v3120_v59 = vsel %vm3074_vm5, %v3051_v48, %v3097_v53  ;;  %636 = vst.msk [vmem:[#allocation2 + $0xe8] sm:$0x3] %vm9624_vm13, %v574_v33  ;;  %4767 = vrot.lane.b32.xlu1 %v8528_v45, %s6813_s30  ;;  %vm8603_vm5 = vmand %vm3558_vm0, %vm3568_vm10  ;;  %vm9633_vm13 = vcmask 189600   ;;  %vm4421_vm10 = vcmask 195712  }
 0x351   : > { %4671 = vrot.lane.b32.xlu0 %v4926_v39, %s6812_s17  ;;  %v3309_v42 = vcombine.high %v3307_v25, %v3307_v25  ;;  %v3851_v30 = vcombine.low %v3308_v58, %v3307_v25  ;;  %v3310_v11 = vcombine.high %v3120_v59, %v3120_v59  ;;  %818 = vst.msk [vmem:[#allocation2 + $0xe8] sm:$0x3] %vm9625_vm4, %v756_v29  ;;  %vm8619_vm0 = vmand %vm8603_vm5, %vm3584_vm1  ;;  %vm9637_vm4 = vcmask 255200  }
 0x352   : > { %v3317_v0 = vrot.slane %v3120_v59, %v7555_v61  ;;  %v3858_v5 = vrot.slane %v3850_v55, %v7555_v61  ;;  %v1123_v54 = vpop.permute.xlu1 %1122  ;;  %v1945_v14 = vld [vmem:[#allocation2 + $0xe0] sm:$0xff]  ;;  %v3052_v28 = vadd.f32 %v8542_v24, %v3022_v1 }
 0x353   : > { %v3865_v7 = vrot.slane %v3851_v30, %v7555_v61  ;;  %v3873_v47 = vrot.slane %v3309_v42, %v7555_v61  ;;  %v3324_v8 = vrot.slane %v3310_v11, %v7555_v61  ;;  %v941_v13 = vpop.permute.xlu0 %940  ;;  %v5995_v17 = vld.sshfl [vmem:[#allocation2 + $0xd0] sm:$0x3 pattern:$0x76325410]  ;;  %v2363_v20 = vcombine.high %v1945_v14, %v1945_v14 }
 0x354   : > { %v3325_v15 = vcombine.high %v3317_v0, %v3317_v0  ;;  %1003 = vst.msk [vmem:[#allocation2 + $0xe8] sm:$0x3] %vm9629_vm7, %v941_v13  ;;  %4479 = vrot.lane.b32.xlu1 %v8528_v45, %s6805_s3  ;;  %v2732_v21 = vcombine.low %v5995_v17, %v8540_v35  ;;  %vm3075_vm8 = vcmp.gt.f32.partialorder %v3052_v28, 0.0  ;;  %v3098_v18 = vmul.f32 0.01, %v3052_v28 }
 0x355   : > { %4383 = vrot.lane.b32.xlu0 %v4926_v39, %s6802_s7  ;;  %v3866_v22 = vcombine.low %v3858_v5, %v3865_v7  ;;  %v4161_v23 = vsel %vm8575_vm9, %v3873_v47, 0.0  ;;  %v3326_v31 = vcombine.high %v3324_v8, %v3324_v8  ;;  %1185 = vst.msk [vmem:[#allocation2 + $0xe8] sm:$0x3] %vm9630_vm11, %v1123_v54  ;;  %v2370_v41 = vrot.slane %v1945_v14, %v7555_v61 }
 0x356   : > { %4193 = vst.msk [vmem:[#allocation3 + $0x58] sm:$0x3] %vm4183_vm15, %v4161_v23  ;;  %v3874_v34 = vcombine.low %v3317_v0, %v3325_v15  ;;  %v2740_v49 = vrot.slane %v2732_v21, %v7555_v61  ;;  %v1490_v37 = vpop.permute.xlu1 %1489  ;;  %v2377_v32 = vrot.slane %v2363_v20, %v7555_v61  ;;  %v3121_v60 = vsel %vm3075_vm8, %v3052_v28, %v3098_v18 }
 0x357   : > { %v4160_v45 = vsel %vm8491_vm12, %v3866_v22, 0.0  ;;  %v3875_v27 = vcombine.low %v3324_v8, %v3326_v31  ;;  %v1305_v39 = vpop.permute.xlu0 %1304  ;;  %v3327_v44 = vcombine.high %v3121_v60, %v3121_v60  ;;  %v3334_v3 = vrot.slane %v3121_v60, %v7555_v61 }
 0x358   : > { %4192 = vst.msk [vmem:[#allocation3 + $0x50] sm:$0xff] %vm9513_vm2, %v4160_v45  ;;  %v3882_v38 = vrot.slane %v3874_v34, %v7555_v61  ;;  %v2748_v16 = vcombine.low %v2740_v49, %v2747_v6  ;;  %vm9634_vm12 = vcmask 222400   ;;  %v2378_v4 = vcombine.high %v2370_v41, %v2370_v41 }
 0x359   : > { %1367 = vst.msk [vmem:[#allocation2 + $0xe8] sm:$0x3] %vm9633_vm13, %v1305_v39  ;;  %v3889_v10 = vrot.slane %v3875_v27, %v7555_v61  ;;  %v2749_v40 = vcombine.low %v2362_v2, %v2370_v41  ;;  %v3341_v36 = vrot.slane %v3327_v44, %v7555_v61  ;;  %v3342_v50 = vcombine.high %v3334_v3, %v3334_v3 }
 0x35a   : > { %1552 = vst.msk [vmem:[#allocation2 + $0xe8] sm:$0x3] %vm9634_vm12, %v1490_v37  ;;  %6171 = vmatmul.mubr.msk.f32.gmra.mrb[8].mxu1 %vm2774_vm14, %v2748_v16  ;;  %v1854_v51 = vpop.permute.xlu1 %1853  ;;  %v2750_v53 = vcombine.low %v2378_v4, %v2377_v32  ;;  %vm9638_vm9 = vcmask 288000   ;;  %v2379_v0 = vcombine.high %v2377_v32, %v2377_v32  ;;  %vm4519_vm7 = vcmask 261312  }
 0x35b   : > { %v3890_v48 = vcombine.low %v3882_v38, %v3889_v10  ;;  %v1672_v19 = vpop.permute.xlu0 %1671  ;;  %6173 = vmatprep.mubr.msk.f32.mxu1 %vm6810_vm3, %v6809_v52  ;;  %v2757_v12 = vrot.slane %v2749_v40, %v7555_v61  ;;  %v3343_v58 = vcombine.high %v3341_v36, %v3341_v36  ;;  %v3891_v55 = vcombine.low %v3334_v3, %v3342_v50 }
 0x35c   : > { %1734 = vst.msk [vmem:[#allocation2 + $0xe8] sm:$0x3] %vm9637_vm4, %v1672_v19  ;;  %v2764_v29 = vrot.slane %v2750_v53, %v7555_v61  ;;  %vm9511_vm11 = vcmask 458112   ;;  %vm9639_vm13 = vcmp.le.s32.totalorder %v8219_v46, 16 }
 0x35d   : > { %v4162_v25 = vsel %vm8619_vm0, %v3890_v48, 0.0  ;;  %1916 = vst.msk [vmem:[#allocation2 + $0xe8] sm:$0x3] %vm9638_vm9, %v1854_v51  ;;  %v3892_v33 = vcombine.low %v3341_v36, %v3343_v58  ;;  %v3899_v43 = vrot.slane %v3891_v55, %v7555_v61  ;;  %vm3634_vm12 = vmand %vm8603_vm5, %vm9639_vm13  ;;  %v3549_v36 = vadd.s32 5, %v8109_v26 }
 0x35e   : > { %4194 = vst.msk [vmem:[#allocation3 + $0x60] sm:$0xff] %vm9513_vm2, %v4162_v25  ;;  %v4279_v63 = vpop.permute.xlu1 %4278  ;;  %v2765_v11 = vcombine.low %v2757_v12, %v2764_v29  ;;  %vm4908_vm13 = vcmask 523712  }
 0x35f   : > { %v4277_v59 = vpop.permute.xlu0 %4276  ;;  %v4830_v42 = vld [vmem:[#allocation3 + $0x49] sm:$0xff]  ;;  %4326 = vst.msk [vmem:[#allocation4 + $0x8] sm:$0xff] %vm9510_vm6, %v4279_v63  ;;  %v3906_v62 = vrot.slane %v3892_v33, %v7555_v61  ;;  %v4831_v13 = vld [vmem:[#allocation3 + $0x51] sm:$0xff]  ;;  %vm3559_vm4 = vcmp.ge.s32.totalorder %v3549_v36, 0  ;;  %vm3569_vm9 = vcmp.lt.s32.totalorder %v3549_v36, 16 }
 0x360   : > { %v4734_v30 = vld [vmem:[#allocation3 + $0x50] sm:$0xff]  ;;  %4325 = vst.msk [vmem:[#allocation4] sm:$0xff] %vm9510_vm6, %v4277_v59  ;;  %4864 = vrot.lane.b32.xlu1 %v4830_v42, %s9514_s14  ;;  %6174 = vmatmul.mubr.msk.f32.gmra.mrb[10].mxu1 %vm2774_vm14, %v2765_v11 }
 0x361   : > { %4769 = vrot.lane.b32.xlu0 %v4734_v30, %s6813_s30  ;;  %4235 = vst.msk [vmem:[#allocation4 + $0x38] sm:$0xff] %vm9513_vm2, %v4734_v30  ;;  %6176 = vmatprep.mubr.msk.f32.mxu1 %vm6810_vm3, %v6809_v52  ;;  %v3907_v1 = vcombine.low %v3899_v43, %v3906_v62  ;;  %v4927_v54 = vld [vmem:[#allocation3 + $0x4a] sm:$0xff]  ;;  %v4928_v15 = vld [vmem:[#allocation3 + $0x52] sm:$0xff]  ;;  %vm9512_vm3 = vcmask 326912  }
 0x362   : > { %v4376_v2 = vpop.permute.xlu1 %4375 }
 0x363   : > { %v4374_v6 = vpop.permute.xlu0 %4373  ;;  %4423 = vst.msk [vmem:[#allocation4 + $0x8] sm:$0xff] %vm4421_vm10, %v4376_v2  ;;  %v4163_v7 = vsel %vm8603_vm5, %v3907_v1, 0.0  ;;  %vm8708_vm5 = vmand %vm3559_vm4, %vm3569_vm9 }
 0x364   : > { %4422 = vst.msk [vmem:[#allocation4] sm:$0xff] %vm4421_vm10, %v4374_v6  ;;  %4576 = vrot.lane.b32.xlu1 %v4830_v42, %s6807_s24  ;;  %v5996_v5 = vld.sshfl [vmem:[#allocation2 + $0xe8] sm:$0x3 pattern:$0x76325410] }
 0x365   : > { %4481 = vrot.lane.b32.xlu0 %v4734_v30, %s6805_s3  ;;  %v4735_v47 = vld [vmem:[#allocation3 + $0x60] sm:$0xff]  ;;  %v2766_v8 = vcombine.low %v2379_v0, %v5996_v5  ;;  %4195 = vst.msk [vmem:[#allocation3 + $0x68] sm:$0xff] %vm9513_vm2, %v4163_v7 }
 0x366   : > { %4236 = vst.msk [vmem:[#allocation4 + $0x40] sm:$0xff] %vm9513_vm2, %v4735_v47 }
 0x367   : > { %v4472_v52 = vpop.permute.xlu0 %4471  ;;  %v2773_v17 = vrot.slane %v2766_v8, %v7555_v61 }
 0x368   : > { %4520 = vst.msk [vmem:[#allocation4] sm:$0xff] %vm4519_vm7, %v4472_v52  ;;  %4961 = vrot.lane.b32.xlu1 %v4927_v54, %s6815_s22 }
 0x369   : > { %4866 = vrot.lane.b32.xlu0 %v4831_v13, %s9514_s14  ;;  %6177 = vmatmul.mubr.msk.f32.gmra.mrb[12].mxu1 %vm2774_vm14, %v2773_v17  ;;  %vm4713_vm14 = vcmask 392512  }
 0x36c   : > { %4578 = vrot.lane.b32.xlu1 %v4831_v13, %s6807_s24  ;;  %v4736_v14 = vld [vmem:[#allocation3 + $0x68] sm:$0xff] }
 0x36d   : > { %4288 = vrot.lane.b32.xlu0 %v4830_v42, %s6801_s13  ;;  %4237 = vst.msk [vmem:[#allocation4 + $0x48] sm:$0xff] %vm9513_vm2, %v4736_v14  ;;  %v8668_v28 = vld [vmem:[#allocation3 + $0x61] sm:$0xff] }
 0x36e   : > { %v8680_v20 = vld [vmem:[#allocation3 + $0x62] sm:$0xff] }
 0x370   : > { %4963 = vrot.lane.b32.xlu1 %v4928_v15, %s6815_s22 }
 0x371   : > { %4673 = vrot.lane.b32.xlu0 %v4927_v54, %s6812_s17 }
 0x374   : > { %4385 = vrot.lane.b32.xlu1 %v4927_v54, %s6802_s7 }
 0x375   : > { %4290 = vrot.lane.b32.xlu0 %v4831_v13, %s6801_s13 }
 0x378   : > { %4771 = vrot.lane.b32.xlu1 %v4735_v47, %s6813_s30 }
 0x379   : > { %4675 = vrot.lane.b32.xlu0 %v4928_v15, %s6812_s17 }
 0x37c   : > { %4483 = vrot.lane.b32.xlu1 %v4735_v47, %s6805_s3 }
 0x37d   : > { %4387 = vrot.lane.b32.xlu0 %v4928_v15, %s6802_s7 }
 0x380   : > { %v4569_v21 = vpop.permute.xlu0 %4568  ;;  %4868 = vrot.lane.b32.xlu1 %v8668_v28, %s9514_s14 }
 0x381   : > { %v4474_v22 = vpop.permute.xlu1 %4473  ;;  %4773 = vrot.lane.b32.xlu0 %v4736_v14, %s6813_s30  ;;  %4617 = vst.msk [vmem:[#allocation4] sm:$0xff] %vm9512_vm3, %v4569_v21 }
 0x382   : > { %4521 = vst.msk [vmem:[#allocation4 + $0x8] sm:$0xff] %vm4519_vm7, %v4474_v22 }
 0x384   : > { %4580 = vrot.lane.b32.xlu1 %v8668_v28, %s6807_s24  ;;  %v4571_v31 = vpop.permute.xlu0 %4570 }
 0x385   : > { %v4281_v23 = vpop.permute.xlu1 %4280  ;;  %4485 = vrot.lane.b32.xlu0 %v4736_v14, %s6805_s3  ;;  %4618 = vst.msk [vmem:[#allocation4 + $0x8] sm:$0xff] %vm9512_vm3, %v4571_v31 }
 0x386   : > { %4327 = vst.msk [vmem:[#allocation4 + $0x10] sm:$0xff] %vm9510_vm6, %v4281_v23 }
 0x388   : > { %4965 = vrot.lane.b32.xlu1 %v8680_v20, %s6815_s22  ;;  %v4283_v18 = vpop.permute.xlu0 %4282 }
 0x389   : > { %v4666_v34 = vpop.permute.xlu1 %4665  ;;  %4328 = vst.msk [vmem:[#allocation4 + $0x18] sm:$0xff] %vm9510_vm6, %v4283_v18 }
 0x38a   : > { %4714 = vst.msk [vmem:[#allocation4] sm:$0xff] %vm4713_vm14, %v4666_v34 }
 0x38c   : > { %v4668_v45 = vpop.permute.xlu0 %4667 }
 0x38d   : > { %v4378_v49 = vpop.permute.xlu1 %4377  ;;  %v2946_v27 = vpop.f32.mrb[22].mxu0  ;;  %4715 = vst.msk [vmem:[#allocation4 + $0x8] sm:$0xff] %vm4713_vm14, %v4668_v45 }
 0x38e   : > { %4424 = vst.msk [vmem:[#allocation4 + $0x10] sm:$0xff] %vm4421_vm10, %v4378_v49  ;;  %v3023_v37 = vmul.f32 %v8536_v9, %v2946_v27  ;;  %v6145_v39 = vpop.f32.mrb[23].mxu0 }
 0x390   : > { %v3053_v41 = vadd.f32 %v8542_v24, %v3023_v37  ;;  %v4380_v38 = vpop.permute.xlu0 %4379 }
 0x391   : > { %v4764_v32 = vpop.permute.xlu1 %4763  ;;  %4425 = vst.msk [vmem:[#allocation4 + $0x18] sm:$0xff] %vm4421_vm10, %v4380_v38  ;;  %v2951_v16 = vpop.f32.mrb[24].mxu0 }
 0x392   : > { %4812 = vst.msk [vmem:[#allocation4] sm:$0xff] %vm9511_vm11, %v4764_v32  ;;  %vm3076_vm8 = vcmp.gt.f32.partialorder %v3053_v41, 0.0  ;;  %v3099_v60 = vmul.f32 0.01, %v3053_v41  ;;  %v3024_v10 = vmul.f32 %v8536_v9, %v2951_v16  ;;  %v6148_v44 = vpop.f32.mrb[25].mxu0 }
 0x394   : > { %v3122_v3 = vsel %vm3076_vm8, %v3053_v41, %v3099_v60  ;;  %v3054_v48 = vadd.f32 %v8542_v24, %v3024_v10  ;;  %vm3602_vm8 = vmand %vm8708_vm5, %vm3584_vm1 }
 0x395   : > { %v4476_v4 = vpop.permute.xlu1 %4475  ;;  %v3344_v56 = vcombine.high %v3122_v3, %v3122_v3  ;;  %v3351_v40 = vrot.slane %v3122_v3, %v7555_v61 }
 0x396   : > { %4522 = vst.msk [vmem:[#allocation4 + $0x10] sm:$0xff] %vm4519_vm7, %v4476_v4  ;;  %vm3077_vm0 = vcmp.gt.f32.partialorder %v3054_v48, 0.0  ;;  %v3100_v53 = vmul.f32 0.01, %v3054_v48 }
 0x397   : > { %v3358_v50 = vrot.slane %v3344_v56, %v7555_v61  ;;  %v3359_v51 = vcombine.high %v3351_v40, %v3351_v40  ;;  %v3914_v19 = vrot.slane %v3351_v40, %v7555_v61 }
 0x398   : > { %v3123_v58 = vsel %vm3077_vm0, %v3054_v48, %v3100_v53  ;;  %vm5047_vm0 = vcmask 588800  }
 0x399   : > { %v4164_v12 = vsel %vm3634_vm12, %v3914_v19, 0.0  ;;  %v3360_v25 = vcombine.high %v3358_v50, %v3358_v50  ;;  %v3915_v55 = vcombine.low %v3359_v51, %v3358_v50  ;;  %v3361_v29 = vcombine.high %v3123_v58, %v3123_v58 }
 0x39a   : > { %4196 = vst.msk [vmem:[#allocation3 + $0x70] sm:$0x3] %vm4183_vm15, %v4164_v12  ;;  %v3368_v35 = vrot.slane %v3123_v58, %v7555_v61  ;;  %vm5005_vm12 = vcmask 589312  }
 0x39b   : > { %v8706_v33 = vrot.slane %v3361_v29, %v7555_v61  ;;  %v3923_v30 = vrot.slane %v3915_v55, %v7555_v61 }
 0x39c   : > { %v3376_v59 = vcombine.high %v3368_v35, %v3368_v35  ;;  %v3916_v42 = vcombine.low %v3360_v25, %v3368_v35 }
 0x39d   : > { %v3377_v53 = vcombine.high %v8706_v33, %v8706_v33 }
 0x39e   : > { %v3930_v11 = vrot.slane %v3916_v42, %v7555_v61  ;;  %v8715_v43 = vcombine.low %v3376_v59, %v8706_v33 }
 0x3a0   : > { %v3931_v62 = vcombine.low %v3923_v30, %v3930_v11 }
 0x3a1   : > { %v4833_v0 = vld [vmem:[#allocation3 + $0x69] sm:$0xff] }
 0x3a2   : > { %4870 = vrot.lane.b32.xlu0 %v4833_v0, %s9514_s14  ;;  %4582 = vrot.lane.b32.xlu1 %v4833_v0, %s6807_s24  ;;  %v4165_v1 = vsel %vm3602_vm8, %v3931_v62, 0.0  ;;  %v4930_v6 = vld [vmem:[#allocation3 + $0x6a] sm:$0xff]  ;;  %vm9642_vm8 = vcmp.le.s32.totalorder %v8219_v46, 16 }
 0x3a3   : > { %4197 = vst.msk [vmem:[#allocation3 + $0x78] sm:$0xff] %vm9513_vm2, %v4165_v1  ;;  %v3940_v1 = vrot.slane %v8715_v43, %v7555_v61 }
 0x3a6   : > { %4292 = vrot.lane.b32.xlu0 %v8668_v28, %s6801_s13  ;;  %4967 = vrot.lane.b32.xlu1 %v4930_v6, %s6815_s22 }
 0x3aa   : > { %v4861_v2 = vpop.permute.xlu1 %4860  ;;  %4677 = vrot.lane.b32.xlu0 %v8680_v20, %s6812_s17  ;;  %4389 = vrot.lane.b32.xlu1 %v8680_v20, %s6802_s7  ;;  %v4737_v7 = vld [vmem:[#allocation3 + $0x78] sm:$0xff] }
 0x3ab   : > { %v4766_v5 = vpop.permute.xlu0 %4765  ;;  %4909 = vst.msk [vmem:[#allocation4] sm:$0xff] %vm4908_vm13, %v4861_v2 }
 0x3ac   : > { %4813 = vst.msk [vmem:[#allocation4 + $0x8] sm:$0xff] %vm9511_vm11, %v4766_v5 }
 0x3ad   : > { %4238 = vst.msk [vmem:[#allocation4 + $0x50] sm:$0xff] %vm9513_vm2, %v4737_v7 }
 0x3ae   : > { %v4573_v47 = vpop.permute.xlu1 %4572  ;;  %4294 = vrot.lane.b32.xlu0 %v4833_v0, %s6801_s13  ;;  %4775 = vrot.lane.b32.xlu1 %v4737_v7, %s6813_s30 }
 0x3af   : > { %v4478_v8 = vpop.permute.xlu0 %4477  ;;  %4619 = vst.msk [vmem:[#allocation4 + $0x10] sm:$0xff] %vm9512_vm3, %v4573_v47  ;;  %v3550_v47 = vadd.s32 6, %v8109_v26 }
 0x3b0   : > { %4523 = vst.msk [vmem:[#allocation4 + $0x18] sm:$0xff] %vm4519_vm7, %v4478_v8 }
 0x3b2   : > { %v4958_v52 = vpop.permute.xlu1 %4957  ;;  %4679 = vrot.lane.b32.xlu0 %v4930_v6, %s6812_s17  ;;  %4487 = vrot.lane.b32.xlu1 %v4737_v7, %s6805_s3 }
 0x3b3   : > { %v4863_v54 = vpop.permute.xlu0 %4862  ;;  %5006 = vst.msk [vmem:[#allocation4] sm:$0xff] %vm5005_vm12, %v4958_v52 }
 0x3b4   : > { %4910 = vst.msk [vmem:[#allocation4 + $0x8] sm:$0xff] %vm4908_vm13, %v4863_v54 }
 0x3b6   : > { %v4575_v17 = vpop.permute.xlu1 %4574  ;;  %4391 = vrot.lane.b32.xlu0 %v4930_v6, %s6802_s7 }
 0x3b7   : > { %v4285_v13 = vpop.permute.xlu0 %4284  ;;  %4620 = vst.msk [vmem:[#allocation4 + $0x18] sm:$0xff] %vm9512_vm3, %v4575_v17 }
 0x3b8   : > { %4329 = vst.msk [vmem:[#allocation4 + $0x20] sm:$0xff] %vm9510_vm6, %v4285_v13 }
 0x3ba   : > { %v4960_v15 = vpop.permute.xlu1 %4959  ;;  %v5022_v28 = vld [vmem:[#allocation4] sm:$0xff]  ;;  %v2971_v21 = vpop.f32.mrb[0].mxu1 }
 0x3bb   : > { %v4670_v14 = vpop.permute.xlu0 %4669  ;;  %5007 = vst.msk [vmem:[#allocation4 + $0x8] sm:$0xff] %vm5005_vm12, %v4960_v15  ;;  %6197 = vmatprep.mubr.msk.f32.mxu1 %vm5047_vm0, %v5022_v28  ;;  %v6160_v22 = vpop.f32.mrb[1].mxu1  ;;  %v3028_v16 = vmul.f32 %v8536_v9, %v2971_v21 }
 0x3bc   : > { %4716 = vst.msk [vmem:[#allocation4 + $0x10] sm:$0xff] %vm4713_vm14, %v4670_v14 }
 0x3bd   : > { %v3058_v40 = vadd.f32 %v8542_v24, %v3028_v16 }
 0x3be   : > { %v4382_v23 = vpop.permute.xlu1 %4381 }
 0x3bf   : > { %v4287_v31 = vpop.permute.xlu0 %4286  ;;  %4426 = vst.msk [vmem:[#allocation4 + $0x20] sm:$0xff] %vm4421_vm10, %v4382_v23  ;;  %v3104_v55 = vmul.f32 0.01, %v3058_v40  ;;  %vm3081_vm9 = vcmp.gt.f32.partialorder %v3058_v40, 0.0 }
 0x3c0   : > { %4330 = vst.msk [vmem:[#allocation4 + $0x28] sm:$0xff] %vm9510_vm6, %v4287_v31 }
 0x3c1   : > { %v8790_v5 = vsel %vm3081_vm9, %v3058_v40, %v3104_v55  ;;  %vm3560_vm9 = vcmp.ge.s32.totalorder %v3550_v47, 0 }
 0x3c2   : > { %v4768_v34 = vpop.permute.xlu1 %4767  ;;  %v5023_v18 = vld [vmem:[#allocation4 + $0x8] sm:$0xff]  ;;  %v3429_v15 = vcombine.high %v8790_v5, %v8790_v5 }
 0x3c3   : > { %v4672_v20 = vpop.permute.xlu0 %4671  ;;  %4814 = vst.msk [vmem:[#allocation4 + $0x10] sm:$0xff] %vm9511_vm11, %v4768_v34  ;;  %6198 = vmatmul.mubr.msk.f32.vlgmr.msra.gmra.mrb[14].mxu1 %vm5047_vm0, %v5023_v18 }
 0x3c4   : > { %4717 = vst.msk [vmem:[#allocation4 + $0x18] sm:$0xff] %vm4713_vm14, %v4672_v20 }
 0x3c6   : > { %v4480_v45 = vpop.permute.xlu1 %4479 }
 0x3c7   : > { %v4384_v49 = vpop.permute.xlu0 %4383  ;;  %4524 = vst.msk [vmem:[#allocation4 + $0x20] sm:$0xff] %vm4519_vm7, %v4480_v45  ;;  %v3551_v45 = vadd.s32 7, %v8109_v26 }
 0x3c8   : > { %4427 = vst.msk [vmem:[#allocation4 + $0x28] sm:$0xff] %vm4421_vm10, %v4384_v49 }
 0x3d2   : > { %v4865_v27 = vpop.permute.xlu1 %4864 }
 0x3d3   : > { %v4770_v37 = vpop.permute.xlu0 %4769  ;;  %4911 = vst.msk [vmem:[#allocation4 + $0x10] sm:$0xff] %vm4908_vm13, %v4865_v27  ;;  %v8814_v27 = vrot.slane %v3429_v15, %v7555_v61 }
 0x3d4   : > { %4815 = vst.msk [vmem:[#allocation4 + $0x18] sm:$0xff] %vm9511_vm11, %v4770_v37 }
 0x3d6   : > { %v4577_v39 = vpop.permute.xlu1 %4576 }
 0x3d7   : > { %v4482_v41 = vpop.permute.xlu0 %4481  ;;  %4621 = vst.msk [vmem:[#allocation4 + $0x20] sm:$0xff] %vm9512_vm3, %v4577_v39 }
 0x3d8   : > { %4525 = vst.msk [vmem:[#allocation4 + $0x28] sm:$0xff] %vm4519_vm7, %v4482_v41 }
 0x3da   : > { %v4962_v32 = vpop.permute.xlu1 %4961 }
 0x3db   : > { %v4867_v38 = vpop.permute.xlu0 %4866  ;;  %5008 = vst.msk [vmem:[#allocation4 + $0x10] sm:$0xff] %vm5005_vm12, %v4962_v32 }
 0x3dc   : > { %4912 = vst.msk [vmem:[#allocation4 + $0x18] sm:$0xff] %vm4908_vm13, %v4867_v38 }
 0x3dd   : > { %v2956_v60 = vpop.f32.mrb[26].mxu0 }
 0x3de   : > { %v3025_v10 = vmul.f32 %v8536_v9, %v2956_v60  ;;  %v4579_v3 = vpop.permute.xlu1 %4578  ;;  %v6151_v4 = vpop.f32.mrb[27].mxu0 }
 0x3df   : > { %v4289_v44 = vpop.permute.xlu0 %4288  ;;  %4622 = vst.msk [vmem:[#allocation4 + $0x28] sm:$0xff] %vm9512_vm3, %v4579_v3 }
 0x3e0   : > { %4331 = vst.msk [vmem:[#allocation4 + $0x30] sm:$0xff] %vm9510_vm6, %v4289_v44  ;;  %v3055_v56 = vadd.f32 %v8542_v24, %v3025_v10 }
 0x3e2   : > { %vm3078_vm4 = vcmp.gt.f32.partialorder %v3055_v56, 0.0  ;;  %v3101_v48 = vmul.f32 0.01, %v3055_v56  ;;  %v4964_v50 = vpop.permute.xlu1 %4963  ;;  %v5024_v51 = vld [vmem:[#allocation4 + $0x10] sm:$0xff] }
 0x3e3   : > { %v4674_v36 = vpop.permute.xlu0 %4673  ;;  %5009 = vst.msk [vmem:[#allocation4 + $0x18] sm:$0xff] %vm5005_vm12, %v4964_v50  ;;  %6200 = vmatprep.mubr.msk.f32.mxu1 %vm5047_vm0, %v5024_v51 }
 0x3e4   : > { %4718 = vst.msk [vmem:[#allocation4 + $0x20] sm:$0xff] %vm4713_vm14, %v4674_v36  ;;  %v3124_v19 = vsel %vm3078_vm4, %v3055_v56, %v3101_v48  ;;  %vm8781_vm4 = vmand %vm8708_vm5, %vm9642_vm8  ;;  %vm3570_vm8 = vcmp.lt.s32.totalorder %v3550_v47, 16  ;;  %v3445_v36 = vcombine.high %v8814_v27, %v8814_v27 }
 0x3e5   : > { %v3378_v12 = vcombine.high %v3124_v19, %v3124_v19  ;;  %v3385_v25 = vrot.slane %v3124_v19, %v7555_v61  ;;  %v2961_v58 = vpop.f32.mrb[28].mxu0 }
 0x3e6   : > { %v3026_v29 = vmul.f32 %v8536_v9, %v2961_v58  ;;  %v4386_v35 = vpop.permute.xlu1 %4385  ;;  %v6154_v62 = vpop.f32.mrb[29].mxu0 }
 0x3e7   : > { %v4291_v59 = vpop.permute.xlu0 %4290  ;;  %v3392_v42 = vrot.slane %v3378_v12, %v7555_v61  ;;  %v3393_v30 = vcombine.high %v3385_v25, %v3385_v25  ;;  %v3933_v11 = vcombine.low %v3377_v53, %v3385_v25  ;;  %4428 = vst.msk [vmem:[#allocation4 + $0x30] sm:$0xff] %vm4421_vm10, %v4386_v35 }
 0x3e8   : > { %4332 = vst.msk [vmem:[#allocation4 + $0x38] sm:$0xff] %vm9510_vm6, %v4291_v59  ;;  %v3056_v0 = vadd.f32 %v8542_v24, %v3026_v29 }
 0x3e9   : > { %v3947_v6 = vrot.slane %v3933_v11, %v7555_v61  ;;  %v3955_v2 = vrot.slane %v3393_v30, %v7555_v61  ;;  %v3394_v13 = vcombine.high %v3392_v42, %v3392_v42  ;;  %v3552_v11 = vadd.s32 8, %v8109_v26 }
 0x3ea   : > { %vm3079_vm6 = vcmp.gt.f32.partialorder %v3056_v0, 0.0  ;;  %v3102_v7 = vmul.f32 0.01, %v3056_v0  ;;  %v4772_v52 = vpop.permute.xlu1 %4771  ;;  %v5025_v54 = vld [vmem:[#allocation4 + $0x18] sm:$0xff] }
 0x3eb   : > { %v4676_v8 = vpop.permute.xlu0 %4675  ;;  %v3948_v17 = vcombine.low %v3940_v1, %v3947_v6  ;;  %v4167_v14 = vsel %vm8781_vm4, %v3955_v2, 0.0  ;;  %4816 = vst.msk [vmem:[#allocation4 + $0x20] sm:$0xff] %vm9511_vm11, %v4772_v52  ;;  %6201 = vmatmul.mubr.msk.f32.gmra.mrb[16].mxu1 %vm5047_vm0, %v5025_v54  ;;  %v3956_v34 = vcombine.low %v3392_v42, %v3394_v13 }
 0x3ec   : > { %4719 = vst.msk [vmem:[#allocation4 + $0x28] sm:$0xff] %vm4713_vm14, %v4676_v8  ;;  %v8799_v43 = vsel %vm3079_vm6, %v3056_v0, %v3102_v7  ;;  %v2976_v22 = vpop.f32.mrb[2].mxu1  ;;  %vm8816_vm6 = vmand %vm3560_vm9, %vm3570_vm8  ;;  %vm3561_vm9 = vcmp.ge.s32.totalorder %v3551_v45, 0  ;;  %vm3571_vm8 = vcmp.lt.s32.totalorder %v3551_v45, 16 }
 0x3ed   : > { %4199 = vst.msk [vmem:[#allocation3 + $0x88] sm:$0x3] %vm4183_vm15, %v4167_v14  ;;  %v4166_v28 = vsel %vm8708_vm5, %v3948_v17, 0.0  ;;  %v3402_v21 = vrot.slane %v8799_v43, %v7555_v61  ;;  %v3029_v23 = vmul.f32 %v8536_v9, %v2976_v22  ;;  %v6163_v31 = vpop.f32.mrb[3].mxu1  ;;  %v3964_v10 = vrot.slane %v3956_v34, %v7555_v61  ;;  %vm8828_vm4 = vmand %vm8816_vm6, %vm3584_vm1 }
 0x3ee   : > { %4198 = vst.msk [vmem:[#allocation3 + $0x80] sm:$0xff] %vm9513_vm2, %v4166_v28  ;;  %v4484_v49 = vpop.permute.xlu1 %4483 }
 0x3ef   : > { %v4388_v20 = vpop.permute.xlu0 %4387  ;;  %v3410_v18 = vcombine.high %v3402_v21, %v3402_v21  ;;  %v3059_v63 = vadd.f32 %v8542_v24, %v3029_v23  ;;  %4526 = vst.msk [vmem:[#allocation4 + $0x30] sm:$0xff] %vm4519_vm7, %v4484_v49 }
 0x3f0   : > { %4429 = vst.msk [vmem:[#allocation4 + $0x38] sm:$0xff] %vm4421_vm10, %v4388_v20  ;;  %v2981_v41 = vpop.f32.mrb[4].mxu1 }
 0x3f1   : > { %v3957_v39 = vcombine.low %v3402_v21, %v3410_v18  ;;  %vm3082_vm5 = vcmp.gt.f32.partialorder %v3059_v63, 0.0  ;;  %v3105_v32 = vmul.f32 0.01, %v3059_v63  ;;  %v3030_v38 = vmul.f32 %v8536_v9, %v2981_v41  ;;  %v6166_v60 = vpop.f32.mrb[5].mxu1 }
 0x3f2   : > { %v4869_v3 = vpop.permute.xlu1 %4868 }
 0x3f3   : > { %v4774_v16 = vpop.permute.xlu0 %4773  ;;  %v3971_v44 = vrot.slane %v3957_v39, %v7555_v61  ;;  %v3128_v56 = vsel %vm3082_vm5, %v3059_v63, %v3105_v32  ;;  %v3060_v40 = vadd.f32 %v8542_v24, %v3030_v38  ;;  %4913 = vst.msk [vmem:[#allocation4 + $0x20] sm:$0xff] %vm4908_vm13, %v4869_v3  ;;  %vm8845_vm5 = vmand %vm3561_vm9, %vm3571_vm8  ;;  %vm3572_vm8 = vcmp.lt.s32.totalorder %v3552_v11, 16 }
 0x3f4   : > { %4817 = vst.msk [vmem:[#allocation4 + $0x28] sm:$0xff] %vm9511_vm11, %v4774_v16  ;;  %v3446_v50 = vcombine.high %v3128_v56, %v3128_v56  ;;  %v3453_v51 = vrot.slane %v3128_v56, %v7555_v61 }
 0x3f5   : > { %v3972_v48 = vcombine.low %v3964_v10, %v3971_v44  ;;  %v4834_v19 = vld [vmem:[#allocation3 + $0x79] sm:$0xff]  ;;  %vm3083_vm11 = vcmp.gt.f32.partialorder %v3060_v40, 0.0  ;;  %v3106_v12 = vmul.f32 0.01, %v3060_v40  ;;  %v4835_v28 = vld [vmem:[#allocation3 + $0x81] sm:$0xff] }
 0x3f6   : > { %v4738_v53 = vld [vmem:[#allocation3 + $0x80] sm:$0xff]  ;;  %4872 = vrot.lane.b32.xlu1 %v4834_v19, %s9514_s14  ;;  %v3460_v55 = vrot.slane %v3446_v50, %v7555_v61  ;;  %v3461_v29 = vcombine.high %v3453_v51, %v3453_v51  ;;  %v4014_v59 = vcombine.low %v3445_v36, %v3453_v51  ;;  %v4581_v42 = vpop.permute.xlu1 %4580  ;;  %v3395_v51 = vcombine.high %v8799_v43, %v8799_v43 }
 0x3f7   : > { %v4486_v25 = vpop.permute.xlu0 %4485  ;;  %4777 = vrot.lane.b32.xlu0 %v4738_v53, %s6813_s30  ;;  %4239 = vst.msk [vmem:[#allocation4 + $0x58] sm:$0xff] %vm9513_vm2, %v4738_v53  ;;  %v4168_v58 = vsel %vm8828_vm4, %v3972_v48, 0.0  ;;  %v3129_v30 = vsel %vm3083_vm11, %v3060_v40, %v3106_v12  ;;  %vm9651_vm4 = vcmp.le.s32.totalorder %v8219_v46, 16  ;;  %vm3562_vm11 = vcmp.ge.s32.totalorder %v3552_v11, 0  ;;  %v4931_v15 = vld [vmem:[#allocation3 + $0x7a] sm:$0xff]  ;;  %v4932_v60 = vld [vmem:[#allocation3 + $0x82] sm:$0xff] }
 0x3f8   : > { %4527 = vst.msk [vmem:[#allocation4 + $0x38] sm:$0xff] %vm4519_vm7, %v4486_v25  ;;  %v3462_v62 = vcombine.high %v3460_v55, %v3460_v55  ;;  %v4015_v33 = vcombine.low %v3461_v29, %v3460_v55  ;;  %v3463_v0 = vcombine.high %v3129_v30, %v3129_v30  ;;  %vm8857_vm9 = vmand %vm8845_vm5, %vm9651_vm4  ;;  %v3470_v6 = vrot.slane %v3129_v30, %v7555_v61 }
 0x3f9   : > { %4200 = vst.msk [vmem:[#allocation3 + $0x90] sm:$0xff] %vm9513_vm2, %v4168_v58  ;;  %v4022_v2 = vrot.slane %v4014_v59, %v7555_v61  ;;  %vm8877_vm4 = vmand %vm3562_vm11, %vm3572_vm8  ;;  %v3409_v29 = vrot.slane %v3395_v51, %v7555_v61  ;;  %v3436_v11 = vrot.slane %v8790_v5, %v7555_v61 }
 0x3fa   : > { %4623 = vst.msk [vmem:[#allocation4 + $0x30] sm:$0xff] %vm9512_vm3, %v4581_v42  ;;  %4584 = vrot.lane.b32.xlu1 %v4834_v19, %s6807_s24  ;;  %v4029_v7 = vrot.slane %v4015_v33, %v7555_v61  ;;  %v4037_v47 = vrot.slane %v3462_v62, %v7555_v61  ;;  %v3477_v8 = vrot.slane %v3463_v0, %v7555_v61  ;;  %v4966_v52 = vpop.permute.xlu1 %4965 }
 0x3fb   : > { %4489 = vrot.lane.b32.xlu0 %v4738_v53, %s6805_s3  ;;  %v3478_v54 = vcombine.high %v3470_v6, %v3470_v6  ;;  %5010 = vst.msk [vmem:[#allocation4 + $0x20] sm:$0xff] %vm5005_vm12, %v4966_v52  ;;  %v3411_v62 = vcombine.high %v3409_v29, %v3409_v29 }
 0x3fc   : > { %v4030_v13 = vcombine.low %v4022_v2, %v4029_v7  ;;  %v4173_v17 = vsel %vm8857_vm9, %v4037_v47, 0.0  ;;  %v3479_v14 = vcombine.high %v3477_v8, %v3477_v8  ;;  %vm3611_vm9 = vmand %vm8877_vm4, %vm3584_vm1 }
 0x3fd   : > { %4205 = vst.msk [vmem:[#allocation3 + $0xb8] sm:$0x3] %vm4183_vm15, %v4173_v17  ;;  %v4038_v21 = vcombine.low %v3470_v6, %v3478_v54  ;;  %v3444_v6 = vcombine.high %v3436_v11, %v3436_v11  ;;  %v3973_v7 = vcombine.low %v3409_v29, %v3411_v62 }
 0x3fe   : > { %4969 = vrot.lane.b32.xlu1 %v4931_v15, %s6815_s22  ;;  %v4172_v22 = vsel %vm8845_vm5, %v4030_v13, 0.0  ;;  %v4039_v23 = vcombine.low %v3477_v8, %v3479_v14  ;;  %v2986_v31 = vpop.f32.mrb[6].mxu1 }
 0x3ff   : > { %4874 = vrot.lane.b32.xlu0 %v4835_v28, %s9514_s14  ;;  %4204 = vst.msk [vmem:[#allocation3 + $0xb0] sm:$0xff] %vm9513_vm2, %v4172_v22  ;;  %v3031_v18 = vmul.f32 %v8536_v9, %v2986_v31  ;;  %v6169_v49 = vpop.f32.mrb[7].mxu1  ;;  %v4046_v63 = vrot.slane %v4038_v21, %v7555_v61  ;;  %v3998_v54 = vcombine.low %v3444_v6, %v8814_v27 }
 0x400   : > { %v4739_v20 = vld [vmem:[#allocation3 + $0x90] sm:$0xff]  ;;  %v4053_v45 = vrot.slane %v4039_v23, %v7555_v61 }
 0x401   : > { %4240 = vst.msk [vmem:[#allocation4 + $0x60] sm:$0xff] %vm9513_vm2, %v4739_v20  ;;  %v3061_v39 = vadd.f32 %v8542_v24, %v3031_v18  ;;  %v4012_v27 = vrot.slane %v3998_v54, %v7555_v61 }
 0x402   : > { %4586 = vrot.lane.b32.xlu1 %v4835_v28, %s6807_s24  ;;  %v4054_v41 = vcombine.low %v4046_v63, %v4053_v45  ;;  %v5026_v32 = vld [vmem:[#allocation4 + $0x20] sm:$0xff] }
 0x403   : > { %4296 = vrot.lane.b32.xlu0 %v4834_v19, %s6801_s13  ;;  %vm3084_vm11 = vcmp.gt.f32.partialorder %v3061_v39, 0.0  ;;  %v3107_v38 = vmul.f32 0.01, %v3061_v39  ;;  %6203 = vmatprep.mubr.msk.f32.mxu1 %vm5047_vm0, %v5026_v32 }
 0x404   : > { %v4174_v16 = vsel %vm3611_vm9, %v4054_v41, 0.0  ;;  %vm9656_vm9 = vcmask 130112  }
 0x405   : > { %v3130_v10 = vsel %vm3084_vm11, %v3061_v39, %v3107_v38  ;;  %4206 = vst.msk [vmem:[#allocation3 + $0xc0] sm:$0xff] %vm9513_vm2, %v4174_v16  ;;  %vm9657_vm11 = vcmp.le.s32.totalorder %v8219_v46, 16 }
 0x406   : > { %4971 = vrot.lane.b32.xlu1 %v4932_v60, %s6815_s22  ;;  %v3480_v44 = vcombine.high %v3130_v10, %v3130_v10  ;;  %v3487_v3 = vrot.slane %v3130_v10, %v7555_v61  ;;  %v8898_v4 = vld [vmem:[#allocation3 + $0xb0] sm:$0xff]  ;;  %v6455_v10 = vld [vmem:[#allocation10] ss:$0 sm:$0xff] }
 0x407   : > { %4681 = vrot.lane.b32.xlu0 %v4931_v15, %s6812_s17  ;;  %4243 = vst.msk [vmem:[#allocation4 + $0x78] sm:$0xff] %vm9513_vm2, %v8898_v4 }
 0x408   : > { %v3494_v56 = vrot.slane %v3480_v44, %v7555_v61  ;;  %v3495_v40 = vcombine.high %v3487_v3, %v3487_v3 }
 0x40a   : > { %4393 = vrot.lane.b32.xlu1 %v4931_v15, %s6802_s7  ;;  %v3496_v48 = vcombine.high %v3494_v56, %v3494_v56  ;;  %v4055_v36 = vcombine.low %v3487_v3, %v3495_v40  ;;  %v3981_v15 = vrot.slane %v3973_v7, %v7555_v61 }
 0x40b   : > { %4298 = vrot.lane.b32.xlu0 %v4835_v28, %s6801_s13 }
 0x40c   : > { %v4056_v50 = vcombine.low %v3494_v56, %v3496_v48  ;;  %v4063_v19 = vrot.slane %v4055_v36, %v7555_v61  ;;  %v6456_v56 = vld [vmem:[#allocation11] ss:$0 sm:$0xff] }
 0x40e   : > { %4779 = vrot.lane.b32.xlu1 %v4739_v20, %s6813_s30  ;;  %v4070_v53 = vrot.slane %v4056_v50, %v7555_v61 }
 0x40f   : > { %4683 = vrot.lane.b32.xlu0 %v4932_v60, %s6812_s17 }
 0x410   : > { %v4071_v12 = vcombine.low %v4063_v19, %v4070_v53  ;;  %v2966_v25 = vpop.f32.mrb[30].mxu0 }
 0x411   : > { %v3027_v58 = vmul.f32 %v8536_v9, %v2966_v25  ;;  %v6157_v55 = vpop.f32.mrb[31].mxu0 }
 0x412   : > { %4491 = vrot.lane.b32.xlu1 %v4739_v20, %s6805_s3  ;;  %v4175_v59 = vsel %vm8877_vm4, %v4071_v12, 0.0  ;;  %v3553_v55 = vadd.s32 9, %v8109_v26 }
 0x413   : > { %4395 = vrot.lane.b32.xlu0 %v4932_v60, %s6802_s7  ;;  %v3057_v43 = vadd.f32 %v8542_v24, %v3027_v58  ;;  %4207 = vst.msk [vmem:[#allocation3 + $0xc8] sm:$0xff] %vm9513_vm2, %v4175_v59 }
 0x414   : > { %v4871_v42 = vpop.permute.xlu0 %4870  ;;  %v4583_v30 = vpop.permute.xlu1 %4582 }
 0x415   : > { %4914 = vst.msk [vmem:[#allocation4 + $0x28] sm:$0xff] %vm4908_vm13, %v4871_v42  ;;  %vm3080_vm8 = vcmp.gt.f32.partialorder %v3057_v43, 0.0  ;;  %v3103_v9 = vmul.f32 0.01, %v3057_v43 }
 0x416   : > { %4624 = vst.msk [vmem:[#allocation4 + $0x38] sm:$0xff] %vm9512_vm3, %v4583_v30  ;;  %vm3640_vm3 = vmand %vm8816_vm6, %vm9657_vm11 }
 0x417   : > { %v3126_v33 = vsel %vm3080_vm8, %v3057_v43, %v3103_v9  ;;  %vm9658_vm8 = vmmov %vm9656_vm9 }
 0x418   : > { %v4293_v0 = vpop.permute.xlu0 %4292  ;;  %v4968_v1 = vpop.permute.xlu1 %4967  ;;  %v3412_v2 = vcombine.high %v3126_v33, %v3126_v33  ;;  %v3419_v24 = vrot.slane %v3126_v33, %v7555_v61 }
 0x419   : > { %4333 = vst.msk [vmem:[#allocation4 + $0x40] sm:$0xff] %vm9656_vm9, %v4293_v0  ;;  %vm9659_vm9 = vcmask 458112  }
 0x41a   : > { %5011 = vst.msk [vmem:[#allocation4 + $0x28] sm:$0xff] %vm5005_vm12, %v4968_v1  ;;  %v3426_v5 = vrot.slane %v3412_v2, %v7555_v61  ;;  %v3427_v47 = vcombine.high %v3419_v24, %v3419_v24 }
 0x41c   : > { %v4678_v8 = vpop.permute.xlu0 %4677  ;;  %v4390_v52 = vpop.permute.xlu1 %4389  ;;  %v3428_v13 = vcombine.high %v3426_v5, %v3426_v5  ;;  %v3974_v17 = vcombine.low %v3419_v24, %v3427_v47  ;;  %v3996_v14 = vrot.slane %v3426_v5, %v7555_v61 }
 0x41d   : > { %4720 = vst.msk [vmem:[#allocation4 + $0x30] sm:$0xff] %vm4713_vm14, %v4678_v8 }
 0x41e   : > { %4430 = vst.msk [vmem:[#allocation4 + $0x40] sm:$0xff] %vm4421_vm10, %v4390_v52  ;;  %v3988_v28 = vrot.slane %v3974_v17, %v7555_v61  ;;  %v3997_v21 = vcombine.low %v3428_v13, %v3436_v11  ;;  %v4170_v22 = vsel %vm3640_vm3, %v3996_v14, 0.0  ;;  %vm3608_vm3 = vmand %vm8845_vm5, %vm3584_vm1 }
 0x41f   : > { %4202 = vst.msk [vmem:[#allocation3 + $0xa0] sm:$0x3] %vm4183_vm15, %v4170_v22  ;;  %vm9660_vm5 = vmmov %vm9657_vm11 }
 0x420   : > { %v4295_v23 = vpop.permute.xlu0 %4294  ;;  %v4776_v31 = vpop.permute.xlu1 %4775  ;;  %v3989_v18 = vcombine.low %v3981_v15, %v3988_v28  ;;  %v4005_v49 = vrot.slane %v3997_v21, %v7555_v61  ;;  %vm3646_vm11 = vmand %vm8877_vm4, %vm9660_vm5  ;;  %vm3563_vm4 = vcmp.ge.s32.totalorder %v3553_v55, 0 }
 0x421   : > { %v5027_v20 = vld [vmem:[#allocation4 + $0x28] sm:$0xff]  ;;  %4334 = vst.msk [vmem:[#allocation4 + $0x48] sm:$0xff] %vm9658_vm8, %v4295_v23 }
 0x422   : > { %4818 = vst.msk [vmem:[#allocation4 + $0x30] sm:$0xff] %vm9659_vm9, %v4776_v31  ;;  %6204 = vmatmul.mubr.msk.f32.gmra.mrb[18].mxu1 %vm5047_vm0, %v5027_v20  ;;  %v4013_v63 = vcombine.low %v4005_v49, %v4012_v27  ;;  %v4169_v45 = vsel %vm8816_vm6, %v3989_v18, 0.0  ;;  %vm3573_vm9 = vcmp.lt.s32.totalorder %v3553_v55, 16 }
 0x423   : > { %4201 = vst.msk [vmem:[#allocation3 + $0x98] sm:$0xff] %vm9513_vm2, %v4169_v45 }
 0x424   : > { %v4680_v39 = vpop.permute.xlu0 %4679  ;;  %v4488_v41 = vpop.permute.xlu1 %4487  ;;  %v4171_v32 = vsel %vm3608_vm3, %v4013_v63, 0.0  ;;  %vm8981_vm3 = vmand %vm3563_vm4, %vm3573_vm9  ;;  %vm9666_vm4 = vcmask 130112  }
 0x425   : > { %4721 = vst.msk [vmem:[#allocation4 + $0x38] sm:$0xff] %vm4713_vm14, %v4680_v39  ;;  %v4936_v39 = vld [vmem:[#allocation3 + $0xb2] sm:$0xff] }
 0x426   : > { %4528 = vst.msk [vmem:[#allocation4 + $0x40] sm:$0xff] %vm4519_vm7, %v4488_v41 }
 0x427   : > { %4203 = vst.msk [vmem:[#allocation3 + $0xa8] sm:$0xff] %vm9513_vm2, %v4171_v32 }
 0x428   : > { %v4392_v38 = vpop.permute.xlu0 %4391 }
 0x429   : > { %4431 = vst.msk [vmem:[#allocation4 + $0x48] sm:$0xff] %vm4421_vm10, %v4392_v38  ;;  %v4840_v38 = vld [vmem:[#allocation3 + $0xc1] sm:$0xff] }
 0x42a   : > { %v4836_v35 = vld [vmem:[#allocation3 + $0x91] sm:$0xff]  ;;  %v4837_v50 = vld [vmem:[#allocation3 + $0x99] sm:$0xff] }
 0x42b   : > { %v4740_v60 = vld [vmem:[#allocation3 + $0x98] sm:$0xff]  ;;  %4876 = vrot.lane.b32.xlu1 %v4836_v35, %s9514_s14 }
 0x42c   : > { %4781 = vrot.lane.b32.xlu0 %v4740_v60, %s6813_s30  ;;  %4241 = vst.msk [vmem:[#allocation4 + $0x68] sm:$0xff] %vm9513_vm2, %v4740_v60  ;;  %v4933_v36 = vld [vmem:[#allocation3 + $0x92] sm:$0xff]  ;;  %v4934_v62 = vld [vmem:[#allocation3 + $0x9a] sm:$0xff] }
 0x42d   : > { %v2991_v37 = vpop.f32.mrb[8].mxu1 }
 0x42e   : > { %v8957_v16 = vld [vmem:[#allocation3 + $0xa8] sm:$0xff]  ;;  %v3032_v44 = vmul.f32 %v6455_v10, %v2991_v37  ;;  %v6172_v3 = vpop.f32.mrb[9].mxu1 }
 0x42f   : > { %4242 = vst.msk [vmem:[#allocation4 + $0x70] sm:$0xff] %vm9513_vm2, %v8957_v16  ;;  %4588 = vrot.lane.b32.xlu1 %v4836_v35, %s6807_s24  ;;  %v4838_v63 = vld [vmem:[#allocation3 + $0xa9] sm:$0xff] }
 0x430   : > { %v3062_v40 = vadd.f32 %v6456_v56, %v3032_v44  ;;  %4493 = vrot.lane.b32.xlu0 %v4740_v60, %s6805_s3  ;;  %v4935_v45 = vld [vmem:[#allocation3 + $0xaa] sm:$0xff]  ;;  %v4937_v44 = vld [vmem:[#allocation3 + $0xc2] sm:$0xff] }
 0x432   : > { %vm3085_vm6 = vcmp.gt.f32.partialorder %v3062_v40, 0.0  ;;  %v3108_v48 = vmul.f32 0.01, %v3062_v40 }
 0x433   : > { %4973 = vrot.lane.b32.xlu1 %v4933_v36, %s6815_s22  ;;  %v2996_v19 = vpop.f32.mrb[10].mxu1 }
 0x434   : > { %v3131_v51 = vsel %vm3085_vm6, %v3062_v40, %v3108_v48  ;;  %4878 = vrot.lane.b32.xlu0 %v4837_v50, %s9514_s14  ;;  %v3033_v25 = vmul.f32 %v6455_v10, %v2996_v19  ;;  %v6175_v58 = vpop.f32.mrb[11].mxu1  ;;  %vm3614_vm6 = vmand %vm8981_vm3, %vm3584_vm1  ;;  %vm9663_vm1 = vcmp.le.s32.totalorder %v8219_v46, 16 }
 0x435   : > { %v3497_v53 = vcombine.high %v3131_v51, %v3131_v51  ;;  %v3504_v12 = vrot.slane %v3131_v51, %v7555_v61 }
 0x436   : > { %v3063_v42 = vadd.f32 %v6456_v56, %v3033_v25 }
 0x437   : > { %v3511_v29 = vrot.slane %v3497_v53, %v7555_v61  ;;  %v3512_v59 = vcombine.high %v3504_v12, %v3504_v12  ;;  %v4078_v43 = vrot.slane %v3504_v12, %v7555_v61  ;;  %4590 = vrot.lane.b32.xlu1 %v4837_v50, %s6807_s24 }
 0x438   : > { %4300 = vrot.lane.b32.xlu0 %v4836_v35, %s6801_s13  ;;  %vm3086_vm8 = vcmp.gt.f32.partialorder %v3063_v42, 0.0  ;;  %v3109_v11 = vmul.f32 0.01, %v3063_v42  ;;  %v4744_v35 = vld [vmem:[#allocation3 + $0xc8] sm:$0xff] }
 0x439   : > { %v4176_v30 = vsel %vm3646_vm11, %v4078_v43, 0.0  ;;  %v4079_v9 = vcombine.low %v3512_v59, %v3511_v29  ;;  %v3513_v34 = vcombine.high %v3511_v29, %v3511_v29  ;;  %vm3649_vm11 = vmand %vm8981_vm3, %vm9663_vm1 }
 0x43a   : > { %4208 = vst.msk [vmem:[#allocation3 + $0xd0] sm:$0x3] %vm4183_vm15, %v4176_v30  ;;  %v3132_v33 = vsel %vm3086_vm8, %v3063_v42, %v3109_v11  ;;  %vm9665_vm8 = vcmask 326912  }
 0x43b   : > { %4975 = vrot.lane.b32.xlu1 %v4934_v62, %s6815_s22  ;;  %v3514_v26 = vcombine.high %v3132_v33, %v3132_v33  ;;  %v3521_v0 = vrot.slane %v3132_v33, %v7555_v61  ;;  %v4087_v24 = vrot.slane %v4079_v9, %v7555_v61  ;;  %vm9667_vm9 = vmmov %vm9665_vm8  ;;  %v9067_v33 = vld [vmem:[#allocation16] ss:$0 sm:$0xff] }
 0x43c   : > { %4685 = vrot.lane.b32.xlu0 %v4933_v36, %s6812_s17  ;;  %v3001_v1 = vpop.f32.mrb[12].mxu1 }
 0x43d   : > { %v3034_v6 = vmul.f32 %v6455_v10, %v3001_v1  ;;  %v6178_v2 = vpop.f32.mrb[13].mxu1  ;;  %v3528_v7 = vrot.slane %v3514_v26, %v7555_v61  ;;  %v3529_v5 = vcombine.high %v3521_v0, %v3521_v0  ;;  %v4080_v8 = vcombine.low %v3513_v34, %v3521_v0  ;;  %v9063_v34 = vld [vmem:[#allocation14] ss:$0 sm:$0xff] }
 0x43f   : > { %v3064_v52 = vadd.f32 %v6456_v56, %v3034_v6  ;;  %4397 = vrot.lane.b32.xlu1 %v4933_v36, %s6802_s7  ;;  %v4094_v54 = vrot.slane %v4080_v8, %v7555_v61  ;;  %v4096_v14 = vcombine.low %v3529_v5, %v3528_v7  ;;  %v3530_v15 = vcombine.high %v3528_v7, %v3528_v7 }
 0x440   : > { %4302 = vrot.lane.b32.xlu0 %v4837_v50, %s6801_s13 }
 0x441   : > { %vm3087_vm5 = vcmp.gt.f32.partialorder %v3064_v52, 0.0  ;;  %v3110_v13 = vmul.f32 0.01, %v3064_v52  ;;  %v4095_v17 = vcombine.low %v4087_v24, %v4094_v54  ;;  %v4104_v57 = vrot.slane %v4096_v14, %v7555_v61  ;;  %v4841_v3 = vld [vmem:[#allocation3 + $0xc9] sm:$0xff] }
 0x442   : > { %v4648_v51 = vld [vmem:[#allocation3 + $0xca] sm:$0xff] }
 0x443   : > { %v3133_v28 = vsel %vm3087_vm5, %v3064_v52, %v3110_v13  ;;  %4783 = vrot.lane.b32.xlu1 %v8957_v16, %s6813_s30  ;;  %v4177_v21 = vsel %vm3614_vm6, %v4095_v17, 0.0 }
 0x444   : > { %4687 = vrot.lane.b32.xlu0 %v4934_v62, %s6812_s17  ;;  %v3537_v22 = vrot.slane %v3133_v28, %v7555_v61  ;;  %4209 = vst.msk [vmem:[#allocation3 + $0xd8] sm:$0xff] %vm9513_vm2, %v4177_v21 }
 0x446   : > { %v3538_v23 = vcombine.high %v3537_v22, %v3537_v22  ;;  %v4097_v31 = vcombine.low %v3530_v15, %v3537_v22 }
 0x447   : > { %4495 = vrot.lane.b32.xlu1 %v8957_v16, %s6805_s3 }
 0x448   : > { %4399 = vrot.lane.b32.xlu0 %v4934_v62, %s6802_s7  ;;  %v4111_v20 = vrot.slane %v4097_v31, %v7555_v61  ;;  %v4119_v27 = vrot.slane %v3538_v23, %v7555_v61  ;;  %v4839_v61 = vld [vmem:[#allocation3 + $0xb1] sm:$0xff] }
 0x44a   : > { %v4112_v18 = vcombine.low %v4104_v57, %v4111_v20  ;;  %v4179_v49 = vsel %vm3649_vm11, %v4119_v27, 0.0  ;;  %vm9671_vm11 = vmmov %vm9665_vm8 }
 0x44b   : > { %4211 = vst.msk [vmem:[#allocation3 + $0xe8] sm:$0x3] %vm4183_vm15, %v4179_v49  ;;  %4880 = vrot.lane.b32.xlu1 %v4838_v63, %s9514_s14  ;;  %vm9664_vm15 = vcmask 458112   ;;  %v4745_v25 = vld [vmem:[#allocation3 + $0xd8] sm:$0xff] }
 0x44c   : > { %v4178_v46 = vsel %vm8981_vm3, %v4112_v18, 0.0  ;;  %4785 = vrot.lane.b32.xlu0 %v8898_v4, %s6813_s30  ;;  %vm9668_vm3 = vmmov %vm9666_vm4 }
 0x44d   : > { %4210 = vst.msk [vmem:[#allocation3 + $0xe0] sm:$0xff] %vm9513_vm2, %v4178_v46  ;;  %vm9669_vm6 = vmmov %vm9664_vm15 }
 0x44e   : > { %vm9670_vm1 = vmmov %vm9669_vm6 }
 0x44f   : > { %4592 = vrot.lane.b32.xlu1 %v4838_v63, %s6807_s24 }
 0x450   : > { %4497 = vrot.lane.b32.xlu0 %v8898_v4, %s6805_s3  ;;  %v4743_v4 = vld [vmem:[#allocation3 + $0xc0] sm:$0xff] }
 0x453   : > { %4977 = vrot.lane.b32.xlu1 %v4935_v45, %s6815_s22 }
 0x454   : > { %4882 = vrot.lane.b32.xlu0 %v4839_v61, %s9514_s14  ;;  %v4746_v12 = vld [vmem:[#allocation3 + $0xe0] sm:$0xff] }
 0x455   : > { %v4843_v59 = vld [vmem:[#allocation3 + $0xe1] sm:$0xff]  ;;  %v4842_v43 = vld [vmem:[#allocation3 + $0xd9] sm:$0xff] }
 0x456   : > { %v4940_v11 = vld [vmem:[#allocation3 + $0xe2] sm:$0xff]  ;;  %v4939_v9 = vld [vmem:[#allocation3 + $0xda] sm:$0xff] }
 0x457   : > { %4594 = vrot.lane.b32.xlu1 %v4839_v61, %s6807_s24 }
 0x458   : > { %4304 = vrot.lane.b32.xlu0 %v4838_v63, %s6801_s13 }
 0x45b   : > { %4979 = vrot.lane.b32.xlu1 %v4936_v39, %s6815_s22 }
 0x45c   : > { %4689 = vrot.lane.b32.xlu0 %v4935_v45, %s6812_s17 }
 0x45f   : > { %4401 = vrot.lane.b32.xlu1 %v4935_v45, %s6802_s7 }
 0x460   : > { %4306 = vrot.lane.b32.xlu0 %v4839_v61, %s6801_s13 }
 0x463   : > { %4787 = vrot.lane.b32.xlu1 %v4743_v4, %s6813_s30 }
 0x464   : > { %4691 = vrot.lane.b32.xlu0 %v4936_v39, %s6812_s17 }
 0x467   : > { %4499 = vrot.lane.b32.xlu1 %v4743_v4, %s6805_s3 }
 0x468   : > { %v4873_v41 = vpop.permute.xlu1 %4872  ;;  %4403 = vrot.lane.b32.xlu0 %v4936_v39, %s6802_s7 }
 0x469   : > { %v4778_v32 = vpop.permute.xlu0 %4777  ;;  %4915 = vst.msk [vmem:[#allocation4 + $0x30] sm:$0xff] %vm4908_vm13, %v4873_v41 }
 0x46a   : > { %4819 = vst.msk [vmem:[#allocation4 + $0x38] sm:$0xff] %vm9664_vm15, %v4778_v32  ;;  %vm9672_vm15 = vmmov %vm9668_vm3 }
 0x46b   : > { %4884 = vrot.lane.b32.xlu1 %v4840_v38, %s9514_s14 }
 0x46c   : > { %v4585_v60 = vpop.permute.xlu1 %4584  ;;  %4789 = vrot.lane.b32.xlu0 %v4744_v35, %s6813_s30 }
 0x46d   : > { %v4490_v37 = vpop.permute.xlu0 %4489  ;;  %4625 = vst.msk [vmem:[#allocation4 + $0x40] sm:$0xff] %vm9665_vm8, %v4585_v60 }
 0x46e   : > { %4529 = vst.msk [vmem:[#allocation4 + $0x48] sm:$0xff] %vm4519_vm7, %v4490_v37 }
 0x46f   : > { %4596 = vrot.lane.b32.xlu1 %v4840_v38, %s6807_s24 }
 0x470   : > { %v4970_v16 = vpop.permute.xlu1 %4969  ;;  %4501 = vrot.lane.b32.xlu0 %v4744_v35, %s6805_s3 }
 0x471   : > { %v4875_v10 = vpop.permute.xlu0 %4874  ;;  %5012 = vst.msk [vmem:[#allocation4 + $0x30] sm:$0xff] %vm5005_vm12, %v4970_v16 }
 0x472   : > { %4916 = vst.msk [vmem:[#allocation4 + $0x38] sm:$0xff] %vm4908_vm13, %v4875_v10 }
 0x473   : > { %4981 = vrot.lane.b32.xlu1 %v4937_v44, %s6815_s22 }
 0x474   : > { %v4587_v40 = vpop.permute.xlu1 %4586  ;;  %4886 = vrot.lane.b32.xlu0 %v4841_v3, %s9514_s14 }
 0x475   : > { %v4297_v56 = vpop.permute.xlu0 %4296  ;;  %4626 = vst.msk [vmem:[#allocation4 + $0x48] sm:$0xff] %vm9667_vm9, %v4587_v40  ;;  %vm9674_vm9 = vmmov %vm9670_vm1 }
 0x476   : > { %4335 = vst.msk [vmem:[#allocation4 + $0x50] sm:$0xff] %vm9666_vm4, %v4297_v56  ;;  %vm9673_vm4 = vmmov %vm9668_vm3 }
 0x477   : > { %4693 = vrot.lane.b32.xlu1 %v4937_v44, %s6812_s17 }
 0x478   : > { %v4972_v36 = vpop.permute.xlu1 %4971  ;;  %4598 = vrot.lane.b32.xlu0 %v4841_v3, %s6807_s24  ;;  %v5028_v50 = vld [vmem:[#allocation4 + $0x30] sm:$0xff] }
 0x479   : > { %v4682_v48 = vpop.permute.xlu0 %4681  ;;  %5013 = vst.msk [vmem:[#allocation4 + $0x38] sm:$0xff] %vm5005_vm12, %v4972_v36  ;;  %6206 = vmatprep.mubr.msk.f32.mxu1 %vm5047_vm0, %v5028_v50 }
 0x47a   : > { %4722 = vst.msk [vmem:[#allocation4 + $0x40] sm:$0xff] %vm4713_vm14, %v4682_v48 }
 0x47b   : > { %4695 = vrot.lane.b32.xlu1 %v4648_v51, %s6812_s17 }
 0x47c   : > { %v4394_v19 = vpop.permute.xlu1 %4393  ;;  %4983 = vrot.lane.b32.xlu0 %v4648_v51, %s6815_s22 }
 0x47d   : > { %v4299_v53 = vpop.permute.xlu0 %4298  ;;  %4432 = vst.msk [vmem:[#allocation4 + $0x50] sm:$0xff] %vm4421_vm10, %v4394_v19 }
 0x47e   : > { %4336 = vst.msk [vmem:[#allocation4 + $0x58] sm:$0xff] %vm9668_vm3, %v4299_v53  ;;  %vm9675_vm3 = vmmov %vm9670_vm1 }
 0x47f   : > { %4793 = vrot.lane.b32.xlu1 %v4746_v12, %s6813_s30 }
 0x480   : > { %v4780_v55 = vpop.permute.xlu1 %4779  ;;  %4791 = vrot.lane.b32.xlu0 %v4745_v25, %s6813_s30  ;;  %v5029_v29 = vld [vmem:[#allocation4 + $0x38] sm:$0xff] }
 0x481   : > { %v4684_v58 = vpop.permute.xlu0 %4683  ;;  %4820 = vst.msk [vmem:[#allocation4 + $0x40] sm:$0xff] %vm9669_vm6, %v4780_v55  ;;  %6207 = vmatmul.mubr.msk.f32.gmra.mrb[20].mxu1 %vm5047_vm0, %v5029_v29 }
 0x482   : > { %4723 = vst.msk [vmem:[#allocation4 + $0x48] sm:$0xff] %vm4713_vm14, %v4684_v58 }
 0x483   : > { %4890 = vrot.lane.b32.xlu1 %v4843_v59, %s9514_s14 }
 0x484   : > { %v4492_v30 = vpop.permute.xlu1 %4491  ;;  %4888 = vrot.lane.b32.xlu0 %v4842_v43, %s9514_s14 }
 0x485   : > { %v4396_v42 = vpop.permute.xlu0 %4395  ;;  %4530 = vst.msk [vmem:[#allocation4 + $0x50] sm:$0xff] %vm4519_vm7, %v4492_v30 }
 0x486   : > { %4433 = vst.msk [vmem:[#allocation4 + $0x58] sm:$0xff] %vm4421_vm10, %v4396_v42 }
 0x487   : > { %4987 = vrot.lane.b32.xlu1 %v4940_v11, %s6815_s22 }
 0x488   : > { %4985 = vrot.lane.b32.xlu0 %v4939_v9, %s6815_s22 }
 0x496   : > { %v9065_v62 = vpop.f32.mrb[14].mxu1 }
 0x497   : > { %v5162_v26 = vpop.f32.mrb[15].mxu1 }
 0x498   : > { %v5248_v0 = vmul.f32 %v9063_v34, %v5162_v26 }
 0x49a   : > { %v5271_v1 = vadd.f32 %v9067_v33, %v5248_v0 }
 0x49c   : > { %vm5287_vm5 = vcmp.gt.f32.partialorder %v5271_v1, 0.0  ;;  %v5303_v6 = vmul.f32 0.01, %v5271_v1 }
 0x49d   : > { %v4877_v24 = vpop.permute.xlu1 %4876 }
 0x49e   : > { %v9071_v2 = vsel %vm5287_vm5, %v5271_v1, %v5303_v6  ;;  %v4782_v7 = vpop.permute.xlu0 %4781  ;;  %4917 = vst.msk [vmem:[#allocation4 + $0x40] sm:$0xff] %vm4908_vm13, %v4877_v24  ;;  %vm9676_vm5 = vmmov %vm9665_vm8 }
 0x49f   : > { %4821 = vst.msk [vmem:[#allocation4 + $0x48] sm:$0xff] %vm9670_vm1, %v4782_v7  ;;  %5468 = vrot.lane.b32.xlu0 %v9071_v2, %s9514_s14  ;;  %vm5362_vm1 = vcmask 1047559   ;;  %s5800_s14 = sshll.u32 %s387_s27, 3 }
 0x4a1   : > { %v4589_v5 = vpop.permute.xlu1 %4588 }
 0x4a2   : > { %v4494_v47 = vpop.permute.xlu0 %4493  ;;  %4627 = vst.msk [vmem:[#allocation4 + $0x50] sm:$0xff] %vm9671_vm11, %v4589_v5  ;;  %vm5359_vm11 = vcmask 1046534   ;;  %v5249_v5 = vmul.f32 %v9065_v62, %v9063_v34 }
 0x4a3   : > { %4531 = vst.msk [vmem:[#allocation4 + $0x58] sm:$0xff] %vm4519_vm7, %v4494_v47 }
 0x4a5   : > { %v4974_v8 = vpop.permute.xlu1 %4973 }
 0x4a6   : > { %v4879_v52 = vpop.permute.xlu0 %4878  ;;  %5014 = vst.msk [vmem:[#allocation4 + $0x40] sm:$0xff] %vm5005_vm12, %v4974_v8 }
 0x4a7   : > { %4918 = vst.msk [vmem:[#allocation4 + $0x48] sm:$0xff] %vm4908_vm13, %v4879_v52 }
 0x4a9   : > { %v4591_v13 = vpop.permute.xlu1 %4590 }
 0x4aa   : > { %v4301_v54 = vpop.permute.xlu0 %4300  ;;  %4628 = vst.msk [vmem:[#allocation4 + $0x58] sm:$0xff] %vm9665_vm8, %v4591_v13  ;;  %vm5353_vm8 = vcmask 1044484  }
 0x4ab   : > { %4337 = vst.msk [vmem:[#allocation4 + $0x60] sm:$0xff] %vm9672_vm15, %v4301_v54  ;;  %vm5356_vm15 = vcmask 1045509   ;;  %v5272_v54 = vadd.f32 %v9067_v33, %v5249_v5 }
 0x4ad   : > { %v4976_v14 = vpop.permute.xlu1 %4975  ;;  %v5030_v15 = vld [vmem:[#allocation4 + $0x40] sm:$0xff] }
 0x4ae   : > { %v4686_v17 = vpop.permute.xlu0 %4685  ;;  %5015 = vst.msk [vmem:[#allocation4 + $0x48] sm:$0xff] %vm5005_vm12, %v4976_v14  ;;  %6209 = vmatprep.mubr.msk.f32.mxu1 %vm5047_vm0, %v5030_v15 }
 0x4af   : > { %4724 = vst.msk [vmem:[#allocation4 + $0x50] sm:$0xff] %vm4713_vm14, %v4686_v17 }
 0x4b1   : > { %v4398_v28 = vpop.permute.xlu1 %4397 }
 0x4b2   : > { %v4303_v21 = vpop.permute.xlu0 %4302  ;;  %4434 = vst.msk [vmem:[#allocation4 + $0x60] sm:$0xff] %vm4421_vm10, %v4398_v28 }
 0x4b3   : > { %4338 = vst.msk [vmem:[#allocation4 + $0x68] sm:$0xff] %vm9673_vm4, %v4303_v21  ;;  %vm5350_vm4 = vcmask 1043459  }
 0x4b5   : > { %v4784_v57 = vpop.permute.xlu1 %4783  ;;  %v5031_v23 = vld [vmem:[#allocation4 + $0x48] sm:$0xff] }
 0x4b6   : > { %v4688_v22 = vpop.permute.xlu0 %4687  ;;  %4822 = vst.msk [vmem:[#allocation4 + $0x50] sm:$0xff] %vm9674_vm9, %v4784_v57  ;;  %6210 = vmatmul.mubr.msk.f32.gmra.mrb[22].mxu1 %vm5047_vm0, %v5031_v23  ;;  %vm5347_vm9 = vcmask 1042434   ;;  %v5304_v23 = vmul.f32 0.01, %v5272_v54 }
 0x4b7   : > { %4725 = vst.msk [vmem:[#allocation4 + $0x58] sm:$0xff] %vm4713_vm14, %v4688_v22 }
 0x4b9   : > { %v4496_v20 = vpop.permute.xlu1 %4495 }
 0x4ba   : > { %v4400_v31 = vpop.permute.xlu0 %4399  ;;  %4532 = vst.msk [vmem:[#allocation4 + $0x60] sm:$0xff] %vm4519_vm7, %v4496_v20 }
 0x4bb   : > { %4435 = vst.msk [vmem:[#allocation4 + $0x68] sm:$0xff] %vm4421_vm10, %v4400_v31 }
 0x4bd   : > { %v4881_v49 = vpop.permute.xlu1 %4880 }
 0x4be   : > { %v9093_v27 = vpop.f32.mrb[16].mxu1  ;;  %v4786_v18 = vpop.permute.xlu0 %4785  ;;  %4919 = vst.msk [vmem:[#allocation4 + $0x50] sm:$0xff] %vm4908_vm13, %v4881_v49 }
 0x4bf   : > { %4823 = vst.msk [vmem:[#allocation4 + $0x58] sm:$0xff] %vm9675_vm3, %v4786_v18  ;;  %v5172_v63 = vpop.f32.mrb[17].mxu1  ;;  %vm5344_vm3 = vcmask 1041409   ;;  %v5251_v26 = vmul.f32 %v9093_v27, %v9063_v34 }
 0x4c0   : > { %v5250_v46 = vmul.f32 %v9063_v34, %v5172_v63 }
 0x4c1   : > { %v4593_v39 = vpop.permute.xlu1 %4592  ;;  %v5274_v6 = vadd.f32 %v9067_v33, %v5251_v26 }
 0x4c2   : > { %v5273_v61 = vadd.f32 %v9067_v33, %v5250_v46  ;;  %v4498_v45 = vpop.permute.xlu0 %4497  ;;  %4629 = vst.msk [vmem:[#allocation4 + $0x60] sm:$0xff] %vm9676_vm5, %v4593_v39 }
 0x4c3   : > { %4533 = vst.msk [vmem:[#allocation4 + $0x68] sm:$0xff] %vm4519_vm7, %v4498_v45  ;;  %v5306_v47 = vmul.f32 0.01, %v5274_v6 }
 0x4c4   : > { %vm5289_vm6 = vcmp.gt.f32.partialorder %v5273_v61, 0.0  ;;  %v5305_v4 = vmul.f32 0.01, %v5273_v61 }
 0x4c5   : > { %v4978_v35 = vpop.permute.xlu1 %4977 }
 0x4c6   : > { %v5321_v41 = vsel %vm5289_vm6, %v5273_v61, %v5305_v4  ;;  %v4883_v32 = vpop.permute.xlu0 %4882  ;;  %5016 = vst.msk [vmem:[#allocation4 + $0x50] sm:$0xff] %vm5005_vm12, %v4978_v35  ;;  %vm9677_vm6 = vcmask 130112  }
 0x4c7   : > { %v9101_v38 = vrot.slane %v5321_v41, 7  ;;  %4920 = vst.msk [vmem:[#allocation4 + $0x58] sm:$0xff] %vm4908_vm13, %v4883_v32  ;;  %vm9678_vm2 = vmmov %vm9677_vm6 }
 0x4c9   : > { %v5446_v60 = vsel %vm5362_vm1, %v9101_v38, %v9071_v2  ;;  %v9111_v37 = vsel %vm5359_vm11, %v9101_v38, %v9071_v2  ;;  %v9116_v16 = vsel %vm5356_vm15, %v9101_v38, %v9071_v2  ;;  %v9121_v10 = vsel %vm5353_vm8, %v9101_v38, %v9071_v2  ;;  %v4595_v40 = vpop.permute.xlu1 %4594 }
 0x4ca   : > { %5452 = vrot.lane.b32.xlu0 %v5446_v60, %s6813_s30  ;;  %v4305_v44 = vpop.permute.xlu0 %4304  ;;  %v9127_v3 = vsel %vm5350_vm4, %v9101_v38, %v9071_v2  ;;  %v9132_v56 = vsel %vm5347_vm9, %v9101_v38, %v9071_v2  ;;  %v9138_v48 = vsel %vm5344_vm3, %v9101_v38, %v9071_v2  ;;  %4630 = vst.msk [vmem:[#allocation4 + $0x68] sm:$0xff] %vm9676_vm5, %v4595_v40 }
 0x4cb   : > { %4339 = vst.msk [vmem:[#allocation4 + $0x70] sm:$0xff] %vm9677_vm6, %v4305_v44  ;;  %vm9679_vm6 = vcmask 458112  }
 0x4cd   : > { %v4980_v50 = vpop.permute.xlu1 %4979  ;;  %v5032_v51 = vld [vmem:[#allocation4 + $0x50] sm:$0xff] }
 0x4ce   : > { %v4690_v36 = vpop.permute.xlu0 %4689  ;;  %5017 = vst.msk [vmem:[#allocation4 + $0x58] sm:$0xff] %vm5005_vm12, %v4980_v50  ;;  %6212 = vmatprep.mubr.msk.f32.mxu1 %vm5047_vm0, %v5032_v51 }
 0x4cf   : > { %4726 = vst.msk [vmem:[#allocation4 + $0x60] sm:$0xff] %vm4713_vm14, %v4690_v36 }
 0x4d1   : > { %v4402_v53 = vpop.permute.xlu1 %4401 }
 0x4d2   : > { %v4307_v19 = vpop.permute.xlu0 %4306  ;;  %4436 = vst.msk [vmem:[#allocation4 + $0x70] sm:$0xff] %vm4421_vm10, %v4402_v53 }
 0x4d3   : > { %4340 = vst.msk [vmem:[#allocation4 + $0x78] sm:$0xff] %vm9678_vm2, %v4307_v19  ;;  %vm9680_vm2 = vmmov %vm9679_vm6 }
 0x4d5   : > { %v4788_v25 = vpop.permute.xlu1 %4787  ;;  %v5033_v58 = vld [vmem:[#allocation4 + $0x58] sm:$0xff] }
 0x4d6   : > { %v4692_v12 = vpop.permute.xlu0 %4691  ;;  %4824 = vst.msk [vmem:[#allocation4 + $0x60] sm:$0xff] %vm9679_vm6, %v4788_v25  ;;  %6213 = vmatmul.mubr.msk.f32.gmra.mrb[24].mxu1 %vm5047_vm0, %v5033_v58  ;;  %vm9682_vm6 = vmmov %vm9680_vm2 }
 0x4d7   : > { %4727 = vst.msk [vmem:[#allocation4 + $0x68] sm:$0xff] %vm4713_vm14, %v4692_v12 }
 0x4d9   : > { %v4500_v29 = vpop.permute.xlu1 %4499 }
 0x4da   : > { %v4404_v55 = vpop.permute.xlu0 %4403  ;;  %4534 = vst.msk [vmem:[#allocation4 + $0x70] sm:$0xff] %vm4519_vm7, %v4500_v29 }
 0x4db   : > { %4437 = vst.msk [vmem:[#allocation4 + $0x78] sm:$0xff] %vm4421_vm10, %v4404_v55  ;;  %vm9681_vm10 = vmmov %vm9676_vm5 }
 0x4dd   : > { %v4885_v43 = vpop.permute.xlu1 %4884 }
 0x4de   : > { %v4790_v59 = vpop.permute.xlu0 %4789  ;;  %4921 = vst.msk [vmem:[#allocation4 + $0x60] sm:$0xff] %vm4908_vm13, %v4885_v43 }
 0x4df   : > { %4825 = vst.msk [vmem:[#allocation4 + $0x68] sm:$0xff] %vm9680_vm2, %v4790_v59 }
 0x4e1   : > { %v4597_v30 = vpop.permute.xlu1 %4596 }
 0x4e2   : > { %v4502_v42 = vpop.permute.xlu0 %4501  ;;  %4631 = vst.msk [vmem:[#allocation4 + $0x70] sm:$0xff] %vm9676_vm5, %v4597_v30 }
 0x4e3   : > { %4535 = vst.msk [vmem:[#allocation4 + $0x78] sm:$0xff] %vm4519_vm7, %v4502_v42  ;;  %vm5290_vm7 = vcmp.gt.f32.partialorder %v5274_v6, 0.0 }
 0x4e4   : > { %v5322_v15 = vsel %vm5290_vm7, %v5274_v6, %v5306_v47 }
 0x4e5   : > { %v4982_v9 = vpop.permute.xlu1 %4981  ;;  %v9177_v20 = vrot.slane %v5322_v15, 7 }
 0x4e6   : > { %v4887_v11 = vpop.permute.xlu0 %4886  ;;  %5018 = vst.msk [vmem:[#allocation4 + $0x60] sm:$0xff] %vm5005_vm12, %v4982_v9 }
 0x4e7   : > { %4922 = vst.msk [vmem:[#allocation4 + $0x68] sm:$0xff] %vm4908_vm13, %v4887_v11 }
 0x4e9   : > { %v4694_v1 = vpop.permute.xlu1 %4693 }
 0x4ea   : > { %v4599_v0 = vpop.permute.xlu0 %4598  ;;  %4728 = vst.msk [vmem:[#allocation4 + $0x70] sm:$0xff] %vm4713_vm14, %v4694_v1 }
 0x4eb   : > { %4632 = vst.msk [vmem:[#allocation4 + $0x78] sm:$0xff] %vm9681_vm10, %v4599_v0 }
 0x4ed   : > { %v4696_v24 = vpop.permute.xlu1 %4695  ;;  %v5034_v7 = vld [vmem:[#allocation4 + $0x60] sm:$0xff] }
 0x4ee   : > { %v4984_v2 = vpop.permute.xlu0 %4983  ;;  %4729 = vst.msk [vmem:[#allocation4 + $0x78] sm:$0xff] %vm4713_vm14, %v4696_v24  ;;  %6215 = vmatprep.mubr.msk.f32.mxu1 %vm5047_vm0, %v5034_v7  ;;  %vm5288_vm14 = vcmp.gt.f32.partialorder %v5272_v54, 0.0 }
 0x4ef   : > { %5019 = vst.msk [vmem:[#allocation4 + $0x68] sm:$0xff] %vm5005_vm12, %v4984_v2  ;;  %v9180_v61 = vsel %vm5288_vm14, %v5272_v54, %v5304_v23 }
 0x4f0   : > { %v5568_v41 = vsel %vm5359_vm11, %v9177_v20, %v9180_v61  ;;  %v5536_v12 = vsel %vm5353_vm8, %v9177_v20, %v9180_v61  ;;  %v5520_v25 = vsel %vm5350_vm4, %v9177_v20, %v9180_v61  ;;  %v5504_v55 = vsel %vm5347_vm9, %v9177_v20, %v9180_v61 }
 0x4f1   : > { %v4794_v52 = vpop.permute.xlu1 %4793  ;;  %v5487_v29 = vsel %vm5344_vm3, %v9177_v20, %v9180_v61 }
 0x4f2   : > { %v4792_v8 = vpop.permute.xlu0 %4791  ;;  %4827 = vst.msk [vmem:[#allocation4 + $0x78] sm:$0xff] %vm9680_vm2, %v4794_v52 }
 0x4f3   : > { %4826 = vst.msk [vmem:[#allocation4 + $0x70] sm:$0xff] %vm9682_vm6, %v4792_v8 }
 0x4f5   : > { %v6205_v13 = vpop.f32.mrb[18].mxu1  ;;  %v4891_v57 = vpop.permute.xlu1 %4890 }
 0x4f6   : > { %v5253_v17 = vmul.f32 %v6205_v13, %v9063_v34  ;;  %v5182_v14 = vpop.f32.mrb[19].mxu1  ;;  %v4889_v28 = vpop.permute.xlu0 %4888  ;;  %v5035_v21 = vld [vmem:[#allocation4 + $0x68] sm:$0xff]  ;;  %4924 = vst.msk [vmem:[#allocation4 + $0x78] sm:$0xff] %vm4908_vm13, %v4891_v57 }
 0x4f7   : > { %v5252_v62 = vmul.f32 %v9063_v34, %v5182_v14  ;;  %4923 = vst.msk [vmem:[#allocation4 + $0x70] sm:$0xff] %vm4908_vm13, %v4889_v28  ;;  %6216 = vmatmul.mubr.msk.f32.gmra.mrb[26].mxu1 %vm5047_vm0, %v5035_v21 }
 0x4f8   : > { %v5276_v22 = vadd.f32 %v9067_v33, %v5253_v17 }
 0x4f9   : > { %v5275_v31 = vadd.f32 %v9067_v33, %v5252_v62  ;;  %v4988_v46 = vpop.permute.xlu1 %4987 }
 0x4fa   : > { %vm5292_vm5 = vcmp.gt.f32.partialorder %v5276_v22, 0.0  ;;  %v5308_v27 = vmul.f32 0.01, %v5276_v22  ;;  %v4986_v49 = vpop.permute.xlu0 %4985  ;;  %5021 = vst.msk [vmem:[#allocation4 + $0x78] sm:$0xff] %vm5005_vm12, %v4988_v46 }
 0x4fb   : > { %vm5291_vm10 = vcmp.gt.f32.partialorder %v5275_v31, 0.0  ;;  %v5307_v18 = vmul.f32 0.01, %v5275_v31  ;;  %5020 = vst.msk [vmem:[#allocation4 + $0x70] sm:$0xff] %vm5005_vm12, %v4986_v49 }
 0x4fc   : > { %v5324_v63 = vsel %vm5292_vm5, %v5276_v22, %v5308_v27 }
 0x4fd   : > { %v9182_v45 = vrot.slane %v5324_v63, 6  ;;  %v5323_v39 = vsel %vm5291_vm10, %v5275_v31, %v5307_v18 }
 0x4fe   : > { %v9185_v4 = vrot.slane %v5323_v39, 6 }
 0x4ff   : > { %v5569_v32 = vsel %vm5362_vm1, %v9182_v45, %v5568_v41  ;;  %v5537_v42 = vsel %vm5356_vm15, %v9182_v45, %v5536_v12  ;;  %v5521_v26 = vsel %vm5353_vm8, %v9182_v45, %v5520_v25  ;;  %v5505_v2 = vsel %vm5350_vm4, %v9182_v45, %v5504_v55 }
 0x500   : > { %5574 = vrot.lane.b32.xlu1 %v5569_v32, %s6816_s0  ;;  %v5431_v35 = vsel %vm5362_vm1, %v9185_v4, %v9111_v37  ;;  %v5552_v37 = vsel %vm5356_vm15, %v9177_v20, %v9180_v61  ;;  %v5415_v11 = vsel %vm5359_vm11, %v9185_v4, %v9116_v16  ;;  %v5399_v9 = vsel %vm5356_vm15, %v9185_v4, %v9121_v10 }
 0x501   : > { %5436 = vrot.lane.b32.xlu0 %v5431_v35, %s6812_s17  ;;  %v5037_v44 = vld [vmem:[#allocation4 + $0x78] sm:$0xff]  ;;  %v5553_v43 = vsel %vm5359_vm11, %v9182_v45, %v5552_v37  ;;  %v5383_v6 = vsel %vm5353_vm8, %v9185_v4, %v9127_v3  ;;  %v5367_v16 = vsel %vm5350_vm4, %v9185_v4, %v9132_v56  ;;  %v5489_v10 = vsel %vm5347_vm9, %v9182_v45, %v5487_v29 }
 0x502   : > { %v5036_v60 = vld [vmem:[#allocation4 + $0x70] sm:$0xff]  ;;  %v5462_v7 = vsel %vm5344_vm3, %v9185_v4, %v9101_v38  ;;  %v5600_v14 = vsel %vm5344_vm3, %v9182_v45, %v9177_v20  ;;  %v5348_v15 = vsel %vm5347_vm9, %v9185_v4, %v9138_v48 }
 0x503   : > { %6218 = vmatprep.mubr.msk.f32.mxu1 %vm5047_vm0, %v5036_v60 }
 0x504   : > { %6219 = vmatmul.mubr.msk.f32.gmra.mrb[28].mxu1 %vm5047_vm0, %v5037_v44 }
 0x554   : > { %v6208_v40 = vpop.f32.mrb[20].mxu1 }
 0x555   : > { %v5255_v36 = vmul.f32 %v6208_v40, %v9063_v34  ;;  %v5192_v50 = vpop.f32.mrb[21].mxu1 }
 0x556   : > { %v5254_v51 = vmul.f32 %v9063_v34, %v5192_v50 }
 0x557   : > { %v5278_v19 = vadd.f32 %v9067_v33, %v5255_v36 }
 0x558   : > { %v5277_v53 = vadd.f32 %v9067_v33, %v5254_v51 }
 0x559   : > { %vm5294_vm13 = vcmp.gt.f32.partialorder %v5278_v19, 0.0  ;;  %v5310_v58 = vmul.f32 0.01, %v5278_v19 }
 0x55a   : > { %vm5293_vm0 = vcmp.gt.f32.partialorder %v5277_v53, 0.0  ;;  %v5309_v59 = vmul.f32 0.01, %v5277_v53 }
 0x55b   : > { %v5326_v30 = vsel %vm5294_vm13, %v5278_v19, %v5310_v58 }
 0x55c   : > { %v5490_v0 = vrot.slane %v5326_v30, 5  ;;  %v5325_v1 = vsel %vm5293_vm0, %v5277_v53, %v5309_v59 }
 0x55d   : > { %v5349_v24 = vrot.slane %v5325_v1, 5 }
 0x55e   : > { %v5554_v5 = vsel %vm5362_vm1, %v5490_v0, %v5553_v43  ;;  %v5538_v47 = vsel %vm5359_vm11, %v5490_v0, %v5537_v42  ;;  %v5522_v3 = vsel %vm5356_vm15, %v5490_v0, %v5521_v26  ;;  %v5506_v8 = vsel %vm5353_vm8, %v5490_v0, %v5505_v2 }
 0x55f   : > { %5558 = vrot.lane.b32.xlu1 %v5554_v5, %s6817_s12  ;;  %v5416_v56 = vsel %vm5362_vm1, %v5349_v24, %v5415_v11  ;;  %v5400_v52 = vsel %vm5359_vm11, %v5349_v24, %v5399_v9  ;;  %v5384_v54 = vsel %vm5356_vm15, %v5349_v24, %v5383_v6  ;;  %v5368_v13 = vsel %vm5353_vm8, %v5349_v24, %v5367_v16 }
 0x560   : > { %5420 = vrot.lane.b32.xlu0 %v5416_v56, %s6807_s24  ;;  %v5491_v38 = vsel %vm5350_vm4, %v5490_v0, %v5489_v10  ;;  %v5463_v17 = vsel %vm5347_vm9, %v5349_v24, %v5462_v7  ;;  %v5601_v62 = vsel %vm5347_vm9, %v5490_v0, %v5600_v14  ;;  %v5351_v28 = vsel %vm5350_vm4, %v5349_v24, %v5348_v15 }
 0x561   : > { %v5447_v41 = vsel %vm5344_vm3, %v5349_v24, %v9185_v4  ;;  %v5585_v32 = vsel %vm5344_vm3, %v5490_v0, %v9182_v45 }
 0x589   : > { %v6211_v21 = vpop.f32.mrb[22].mxu1 }
 0x58a   : > { %v5257_v22 = vmul.f32 %v6211_v21, %v9063_v34  ;;  %v5202_v57 = vpop.f32.mrb[23].mxu1 }
 0x58b   : > { %v5256_v23 = vmul.f32 %v9063_v34, %v5202_v57 }
 0x58c   : > { %v5280_v31 = vadd.f32 %v9067_v33, %v5257_v22 }
 0x58d   : > { %v5279_v27 = vadd.f32 %v9067_v33, %v5256_v23 }
 0x58e   : > { %vm5296_vm7 = vcmp.gt.f32.partialorder %v5280_v31, 0.0  ;;  %v5312_v18 = vmul.f32 0.01, %v5280_v31 }
 0x58f   : > { %vm5295_vm6 = vcmp.gt.f32.partialorder %v5279_v27, 0.0  ;;  %v5311_v49 = vmul.f32 0.01, %v5279_v27 }
 0x590   : > { %v5328_v63 = vsel %vm5296_vm7, %v5280_v31, %v5312_v18  ;;  %vm5474_vm7 = vcmask 523719  }
 0x591   : > { %v5492_v48 = vrot.slane %v5328_v63, 4  ;;  %v5327_v46 = vsel %vm5295_vm6, %v5279_v27, %v5311_v49  ;;  %vm5380_vm6 = vcmask 122944  }
 0x592   : > { %v5352_v39 = vrot.slane %v5327_v46, 4 }
 0x593   : > { %v5539_v35 = vsel %vm5362_vm1, %v5492_v48, %v5538_v47  ;;  %v5523_v60 = vsel %vm5359_vm11, %v5492_v48, %v5522_v3  ;;  %v5507_v44 = vsel %vm5356_vm15, %v5492_v48, %v5506_v8  ;;  %v5493_v40 = vsel %vm5353_vm8, %v5492_v48, %v5491_v38 }
 0x594   : > { %5542 = vrot.lane.b32.xlu1 %v5539_v35, %s6818_s4  ;;  %v5401_v36 = vsel %vm5362_vm1, %v5352_v39, %v5400_v52  ;;  %v5385_v50 = vsel %vm5359_vm11, %v5352_v39, %v5384_v54  ;;  %v5369_v4 = vsel %vm5356_vm15, %v5352_v39, %v5368_v13  ;;  %v5432_v51 = vsel %vm5344_vm3, %v5352_v39, %v5349_v24 }
 0x595   : > { %5404 = vrot.lane.b32.xlu0 %v5401_v36, %s6805_s3  ;;  %v5570_v45 = vsel %vm5344_vm3, %v5492_v48, %v5490_v0  ;;  %v5448_v19 = vsel %vm5347_vm9, %v5352_v39, %v5447_v41  ;;  %v5586_v53 = vsel %vm5347_vm9, %v5492_v48, %v5585_v32  ;;  %v5464_v37 = vsel %vm5350_vm4, %v5352_v39, %v5463_v17 }
 0x596   : > { %v5602_v12 = vsel %vm5350_vm4, %v5492_v48, %v5601_v62  ;;  %v5354_v25 = vsel %vm5353_vm8, %v5352_v39, %v5351_v28 }
 0x5a9   : > { %v6214_v58 = vpop.f32.mrb[24].mxu1 }
 0x5aa   : > { %v5259_v55 = vmul.f32 %v6214_v58, %v9063_v34  ;;  %v5212_v29 = vpop.f32.mrb[25].mxu1 }
 0x5ab   : > { %v5258_v59 = vmul.f32 %v9063_v34, %v5212_v29 }
 0x5ac   : > { %v5282_v43 = vadd.f32 %v9067_v33, %v5259_v55 }
 0x5ad   : > { %v5281_v42 = vadd.f32 %v9067_v33, %v5258_v59 }
 0x5ae   : > { %vm5298_vm2 = vcmp.gt.f32.partialorder %v5282_v43, 0.0  ;;  %v5314_v30 = vmul.f32 0.01, %v5282_v43 }
 0x5af   : > { %vm5297_vm14 = vcmp.gt.f32.partialorder %v5281_v42, 0.0  ;;  %v5313_v11 = vmul.f32 0.01, %v5281_v42 }
 0x5b0   : > { %v5330_v9 = vsel %vm5298_vm2, %v5282_v43, %v5314_v30  ;;  %vm5396_vm2 = vcmask 189568  }
 0x5b1   : > { %v5494_v26 = vrot.slane %v5330_v9, 3  ;;  %v5329_v0 = vsel %vm5297_vm14, %v5281_v42, %v5313_v11  ;;  %vm5412_vm14 = vcmask 256192  }
 0x5b2   : > { %v5355_v1 = vrot.slane %v5329_v0, 3 }
 0x5b3   : > { %v5524_v6 = vsel %vm5362_vm1, %v5494_v26, %v5523_v60  ;;  %v5508_v2 = vsel %vm5359_vm11, %v5494_v26, %v5507_v44  ;;  %v5495_v24 = vsel %vm5356_vm15, %v5494_v26, %v5493_v40  ;;  %v5555_v16 = vsel %vm5344_vm3, %v5494_v26, %v5492_v48 }
 0x5b4   : > { %5526 = vrot.lane.b32.xlu1 %v5524_v6, %s6819_s23  ;;  %v5386_v10 = vsel %vm5362_vm1, %v5355_v1, %v5385_v50  ;;  %v5370_v7 = vsel %vm5359_vm11, %v5355_v1, %v5369_v4  ;;  %v5417_v5 = vsel %vm5344_vm3, %v5355_v1, %v5352_v39  ;;  %v5433_v47 = vsel %vm5347_vm9, %v5355_v1, %v5432_v51 }
 0x5b5   : > { %5388 = vrot.lane.b32.xlu0 %v5386_v10, %s6802_s7  ;;  %v5571_v3 = vsel %vm5347_vm9, %v5494_v26, %v5570_v45  ;;  %v5449_v8 = vsel %vm5350_vm4, %v5355_v1, %v5448_v19  ;;  %v5587_v56 = vsel %vm5350_vm4, %v5494_v26, %v5586_v53  ;;  %v5465_v52 = vsel %vm5353_vm8, %v5355_v1, %v5464_v37 }
 0x5b6   : > { %v5603_v54 = vsel %vm5353_vm8, %v5494_v26, %v5602_v12  ;;  %v5357_v13 = vsel %vm5356_vm15, %v5355_v1, %v5354_v25  ;;  %v5584_v10 = vsel %vm5362_vm1, %v9177_v20, %v9180_v61 }
 0x5ca   : > { %v6217_v38 = vpop.f32.mrb[26].mxu1 }
 0x5cb   : > { %v5261_v17 = vmul.f32 %v6217_v38, %v9063_v34  ;;  %v5222_v14 = vpop.f32.mrb[27].mxu1 }
 0x5cc   : > { %v5260_v15 = vmul.f32 %v9063_v34, %v5222_v14 }
 0x5cd   : > { %v5284_v62 = vadd.f32 %v9067_v33, %v5261_v17 }
 0x5ce   : > { %v5283_v28 = vadd.f32 %v9067_v33, %v5260_v15 }
 0x5cf   : > { %vm5300_vm5 = vcmp.gt.f32.partialorder %v5284_v62, 0.0  ;;  %v5316_v21 = vmul.f32 0.01, %v5284_v62 }
 0x5d0   : > { %vm5299_vm10 = vcmp.gt.f32.partialorder %v5283_v28, 0.0  ;;  %v5315_v22 = vmul.f32 0.01, %v5283_v28 }
 0x5d1   : > { %v5332_v57 = vsel %vm5300_vm5, %v5284_v62, %v5316_v21  ;;  %vm5428_vm5 = vcmask 322816  }
 0x5d2   : > { %v5496_v23 = vrot.slane %v5332_v57, 2  ;;  %v5331_v31 = vsel %vm5299_vm10, %v5283_v28, %v5315_v22  ;;  %vm5444_vm10 = vcmask 389440  }
 0x5d3   : > { %v5358_v27 = vrot.slane %v5331_v31, 2 }
 0x5d4   : > { %v5509_v18 = vsel %vm5362_vm1, %v5496_v23, %v5508_v2  ;;  %v5497_v49 = vsel %vm5359_vm11, %v5496_v23, %v5495_v24  ;;  %v5540_v63 = vsel %vm5344_vm3, %v5496_v23, %v5494_v26  ;;  %v5556_v48 = vsel %vm5347_vm9, %v5496_v23, %v5555_v16 }
 0x5d5   : > { %5510 = vrot.lane.b32.xlu1 %v5509_v18, %s6820_s19  ;;  %v5371_v46 = vsel %vm5362_vm1, %v5358_v27, %v5370_v7  ;;  %v5402_v39 = vsel %vm5344_vm3, %v5358_v27, %v5355_v1  ;;  %v5418_v41 = vsel %vm5347_vm9, %v5358_v27, %v5417_v5  ;;  %v5434_v32 = vsel %vm5350_vm4, %v5358_v27, %v5433_v47  ;;  %v5469_v7 = vpop.permute.xlu0 %5468 }
 0x5d6   : > { %5372 = vrot.lane.b32.xlu0 %v5371_v46, %s6801_s13  ;;  %v5572_v35 = vsel %vm5350_vm4, %v5496_v23, %v5571_v3  ;;  %v5450_v60 = vsel %vm5353_vm8, %v5358_v27, %v5449_v8  ;;  %v5588_v44 = vsel %vm5353_vm8, %v5496_v23, %v5587_v56  ;;  %v5466_v40 = vsel %vm5356_vm15, %v5358_v27, %v5465_v52  ;;  %v9367_v8 = vpop.permute.xlu1 %5574 }
 0x5d7   : > { %v6220_v36 = vpop.f32.mrb[28].mxu1  ;;  %v5604_v50 = vsel %vm5356_vm15, %v5496_v23, %v5603_v54  ;;  %v5360_v4 = vsel %vm5359_vm11, %v5358_v27, %v5357_v13 }
 0x5d8   : > { %v5263_v51 = vmul.f32 %v6220_v36, %v9063_v34  ;;  %v5232_v45 = vpop.f32.mrb[29].mxu1 }
 0x5d9   : > { %v5262_v19 = vmul.f32 %v9063_v34, %v5232_v45  ;;  %v5453_v5 = vpop.permute.xlu0 %5452 }
 0x5da   : > { %v5286_v53 = vadd.f32 %v9067_v33, %v5263_v51  ;;  %v9369_v52 = vpop.permute.xlu1 %5558 }
 0x5db   : > { %v5285_v37 = vadd.f32 %v9067_v33, %v5262_v19 }
 0x5dc   : > { %vm5302_vm13 = vcmp.gt.f32.partialorder %v5286_v53, 0.0  ;;  %v5318_v12 = vmul.f32 0.01, %v5286_v53 }
 0x5dd   : > { %vm5301_vm0 = vcmp.gt.f32.partialorder %v5285_v37, 0.0  ;;  %v5317_v25 = vmul.f32 0.01, %v5285_v37  ;;  %v5437_v47 = vpop.permute.xlu0 %5436 }
 0x5de   : > { %v5334_v58 = vsel %vm5302_vm13, %v5286_v53, %v5318_v12  ;;  %vm5460_vm13 = vcmask 456064  }
 0x5df   : > { %v5498_v55 = vrot.slane %v5334_v58, 1  ;;  %v5333_v29 = vsel %vm5301_vm0, %v5285_v37, %v5317_v25  ;;  %vm5476_vm0 = vcmask 522688  }
 0x5e0   : > { %v5361_v59 = vrot.slane %v5333_v29, 1 }
 0x5e1   : > { %5512 = vrot.lane.b32.xlu0 %v5498_v55, %s6820_s19  ;;  %v5499_v43 = vsel %vm5362_vm1, %v5498_v55, %v5497_v49  ;;  %v5525_v34 = vsel %vm5344_vm3, %v5498_v55, %v5496_v23  ;;  %v5541_v42 = vsel %vm5347_vm9, %v5498_v55, %v5540_v63  ;;  %v5557_v33 = vsel %vm5350_vm4, %v5498_v55, %v5556_v48  ;;  %v5421_v3 = vpop.permute.xlu0 %5420  ;;  %s5617_s19 = scalar_lea.sflag [#allocation7], %s387_s27 }
 0x5e2   : > { %5374 = vrot.lane.b32.xlu1 %v5361_v59, %s6801_s13  ;;  %v5387_v30 = vsel %vm5344_vm3, %v5361_v59, %v5358_v27  ;;  %v5403_v11 = vsel %vm5347_vm9, %v5361_v59, %v5402_v39  ;;  %v5419_v9 = vsel %vm5350_vm4, %v5361_v59, %v5418_v41  ;;  %v5435_v26 = vsel %vm5353_vm8, %v5361_v59, %v5434_v32  ;;  %s9349_s13 = scalar_lea.vmem [#allocation17], %s5800_s14  ;;  %s6821_s14 = smov 112  }
 0x5e3   : > { %v5573_v0 = vsel %vm5353_vm8, %v5498_v55, %v5572_v35  ;;  %v5451_v1 = vsel %vm5356_vm15, %v5361_v59, %v5450_v60  ;;  %v5589_v6 = vsel %vm5356_vm15, %v5498_v55, %v5588_v44  ;;  %v5467_v2 = vsel %vm5359_vm11, %v5361_v59, %v5466_v40 }
 0x5e4   : > { %v5605_v24 = vsel %vm5359_vm11, %v5498_v55, %v5604_v50  ;;  %v5363_v16 = vsel %vm5362_vm1, %v5361_v59, %v5360_v4  ;;  %vm9683_vm9 = vcmask 64512   ;;  %vm5378_vm1 = vcmask 130113  }
 0x5e5   : > { %5500 = vrot.lane.b32.xlu0 %v5499_v43, %s6815_s22  ;;  %5365 = vst.msk [vmem:[%s9349_s13] sm:$0xff] %vm9683_vm9, %v5363_v16  ;;  %s9684_s22 = smov 56   ;;  %vm5394_vm11 = vcmask 195714   ;;  %vm5410_vm15 = vcmask 261315   ;;  %vm5426_vm8 = vcmask 326916   ;;  %vm5442_vm4 = vcmask 392517  }
 0x5e6   : > { %5390 = vrot.lane.b32.xlu1 %v5387_v30, %s6802_s7  ;;  %s6822_s7 = smov 120   ;;  %vm5458_vm3 = vcmask 458118   ;;  %vm5516_vm9 = vcmask 654913  }
 0x5e9   : > { %5528 = vrot.lane.b32.xlu0 %v5525_v34, %s6819_s23 }
 0x5ea   : > { %5406 = vrot.lane.b32.xlu1 %v5403_v11, %s6805_s3  ;;  %s9685_s3 = sld [smem:[#allocation25_spill]] }
 0x5ed   : > { %5544 = vrot.lane.b32.xlu0 %v5541_v42, %s6818_s4  ;;  %s9686_s4 = sld [smem:[#allocation33_spill]] }
 0x5ee   : > { %5422 = vrot.lane.b32.xlu1 %v5419_v9, %s6807_s24 }
 0x5f0   : > { %s6043_s24 = sshll.u32 %s9685_s3, 1 }
 0x5f1   : > { %5560 = vrot.lane.b32.xlu0 %v5557_v33, %s6817_s12 }
 0x5f2   : > { %5438 = vrot.lane.b32.xlu1 %v5435_v26, %s6812_s17  ;;  %s5628_s17 = sadd.s32 %s9551_s2, %s6043_s24 }
 0x5f3   : > { %s6044_s2 = sshll.u32 %s5628_s17, 7 }
 0x5f4   : > { %s9408_s23 = scalar_lea.hbm %s9686_s4, %s6044_s2 }
 0x5f5   : > { %5576 = vrot.lane.b32.xlu0 %v5573_v0, %s6816_s0 }
 0x5f6   : > { %5454 = vrot.lane.b32.xlu1 %v5451_v1, %s6813_s30  ;;  %s5632_s30 = sshll.u32 %s9349_s13, 4  ;;  %s9410_s30 = int_to_ptr.vmem [resolvable:$true] %s5632_s30 }
 0x5f9   : > { %5592 = vrot.lane.b32.xlu0 %v5589_v6, %s6821_s14 }
 0x5fa   : > { %5470 = vrot.lane.b32.xlu1 %v5467_v2, %s9684_s22  ;;  %s6823_s22 = smov [#allocation17]  }
 0x5fd   : > { %5608 = vrot.lane.b32.xlu0 %v5605_v24, %s6822_s7 }
 0x5fe   : > { %5590 = vrot.lane.b32.xlu1 %v5584_v10, %s6821_s14  ;;  %s6655_s14 = scalar_lea.vmem %s9410_s30, 128 }
 0x5ff   : > { %p6656_p5 = scmp.ne.s32.totalorder %s9410_s30, %s6655_s14 }
 0x601   : > { %p6657_p6 = pnand %p6656_p5, %p9687_p13 }
 0x602   : > { %5606 = vrot.lane.b32.xlu1 %v9180_v61, %s6822_s7  ;;  %s6659_s7 = sshll.u32 %s6823_s22, 4  ;;  %s6660_s7 = int_to_ptr.vmem [resolvable:$false] %s6659_s7 }
 0x603   : > { %p6658_p7 = pneg %p6657_p6  ;;  %s6661_s3 = scalar_lea.vmem %s6660_s7, 256 }
 0x604   : > { %p6662_p11 = scmp.lt.s32.totalorder %s9410_s30, %s6660_s7  ;;  %p6663_p12 = scmp.lt.s32.totalorder %s6661_s3, %s6655_s14 }
 0x606   : > { %v9371_v20 = vpop.permute.xlu1 %5542  ;;  %p6664_p0 = por %p6663_p12, %p6662_p11 }
 0x607   : > { %v5405_v56 = vpop.permute.xlu0 %5404 }
 0x608   : > { %p6665_p3 = pnand %p6664_p0, %p6658_p7 }
 0x626   : > { %v5527_v13 = vpop.permute.xlu1 %5526 }
 0x627   : > { %v5389_v54 = vpop.permute.xlu0 %5388 }
 0x647   : > { %v5511_v38 = vpop.permute.xlu1 %5510 }
 0x648   : > { %v5373_v61 = vpop.permute.xlu0 %5372 }
 0x649   : > { %5379 = vst.msk [vmem:[%s9349_s13 - $0x1] sm:$0xfe] %vm5378_vm1, %v5373_v61  ;;  %vm5518_vm1 = vcmask 647744  }
 0x64a   : > { %5395 = vst.msk [vmem:[%s9349_s13 - $0x2] sm:$0xfc] %vm5394_vm11, %v5389_v54  ;;  %vm5532_vm11 = vcmask 720514  }
 0x64b   : > { %5411 = vst.msk [vmem:[%s9349_s13 - $0x3] sm:$0xf8] %vm5410_vm15, %v5405_v56  ;;  %vm5534_vm15 = vcmask 714368  }
 0x64c   : > { %5427 = vst.msk [vmem:[%s9349_s13 - $0x4] sm:$0xf0] %vm5426_vm8, %v5421_v3  ;;  %vm5550_vm8 = vcmask 780992  }
 0x64d   : > { %5443 = vst.msk [vmem:[%s9349_s13 - $0x5] sm:$0xe0] %vm5442_vm4, %v5437_v47  ;;  %vm5548_vm4 = vcmask 786115  }
 0x64e   : > { %5459 = vst.msk [vmem:[%s9349_s13 - $0x6] sm:$0xc0] %vm5458_vm3, %v5453_v5  ;;  %vm5564_vm3 = vcmask 851716  }
 0x64f   : > { %5475 = vst.msk [vmem:[%s9349_s13 - $0x7] sm:$0x80] %vm5474_vm7, %v5469_v7  ;;  %vm5566_vm7 = vcmask 847616  }
 0x653   : > { %v5513_v17 = vpop.permute.xlu0 %5512 }
 0x654   : > { %v5375_v14 = vpop.permute.xlu1 %5374 }
 0x655   : > { %5381 = vst.msk [vmem:[%s9349_s13 + $0x7] sm:$0x1] %vm5380_vm6, %v5375_v14  ;;  %vm5580_vm6 = vcmask 917317  }
 0x657   : > { %v5501_v15 = vpop.permute.xlu0 %5500 }
 0x658   : > { %v5391_v62 = vpop.permute.xlu1 %5390 }
 0x659   : > { %5397 = vst.msk [vmem:[%s9349_s13 + $0x6] sm:$0x3] %vm5396_vm2, %v5391_v62  ;;  %vm5582_vm2 = vcmask 914240  }
 0x65b   : > { %v5529_v28 = vpop.permute.xlu0 %5528 }
 0x65c   : > { %v5407_v21 = vpop.permute.xlu1 %5406 }
 0x65d   : > { %5413 = vst.msk [vmem:[%s9349_s13 + $0x5] sm:$0x7] %vm5412_vm14, %v5407_v21  ;;  %vm5598_vm14 = vcmask 980864  }
 0x65f   : > { %v5545_v22 = vpop.permute.xlu0 %5544 }
 0x660   : > { %v5423_v57 = vpop.permute.xlu1 %5422 }
 0x661   : > { %5429 = vst.msk [vmem:[%s9349_s13 + $0x4] sm:$0xf] %vm5428_vm5, %v5423_v57  ;;  %vm5612_vm5 = vcmask 1048519  }
 0x663   : > { %v5561_v23 = vpop.permute.xlu0 %5560 }
 0x664   : > { %v5439_v31 = vpop.permute.xlu1 %5438 }
 0x665   : > { %5445 = vst.msk [vmem:[%s9349_s13 + $0x3] sm:$0x1f] %vm5444_vm10, %v5439_v31  ;;  %vm5614_vm10 = vcmask 1047488  }
 0x667   : > { %v5577_v27 = vpop.permute.xlu0 %5576 }
 0x668   : > { %v5455_v18 = vpop.permute.xlu1 %5454 }
 0x669   : > { %5461 = vst.msk [vmem:[%s9349_s13 + $0x2] sm:$0x3f] %vm5460_vm13, %v5455_v18 }
 0x66b   : > { %v5593_v63 = vpop.permute.xlu0 %5592 }
 0x66c   : > { %v5471_v49 = vpop.permute.xlu1 %5470 }
 0x66d   : > { %5477 = vst.msk [vmem:[%s9349_s13 + $0x1] sm:$0x7f] %vm5476_vm0, %v5471_v49 }
 0x66e   : > { %5503 = vst.msk [vmem:[%s9349_s13] sm:$0xff] %vm5005_vm12, %v5501_v15  ;;  %vm5596_vm12 = vcmask 982918  }
 0x66f   : > { %5517 = vst.msk [vmem:[%s9349_s13 - $0x1] sm:$0xfe] %vm5516_vm9, %v5511_v38  ;;  %v5609_v46 = vpop.permute.xlu0 %5608 }
 0x670   : > { %5519 = vst.msk [vmem:[%s9349_s13 + $0x7] sm:$0x1] %vm5518_vm1, %v5513_v17  ;;  %v5591_v48 = vpop.permute.xlu1 %5590 }
 0x671   : > { %5533 = vst.msk [vmem:[%s9349_s13 - $0x2] sm:$0xfc] %vm5532_vm11, %v5527_v13 }
 0x672   : > { %5535 = vst.msk [vmem:[%s9349_s13 + $0x6] sm:$0x3] %vm5534_vm15, %v5529_v28 }
 0x673   : > { %5551 = vst.msk [vmem:[%s9349_s13 + $0x5] sm:$0x7] %vm5550_vm8, %v5545_v22 }
 0x674   : > { %5549 = vst.msk [vmem:[%s9349_s13 - $0x3] sm:$0xf8] %vm5548_vm4, %v9371_v20  ;;  %v5607_v39 = vpop.permute.xlu1 %5606 }
 0x675   : > { %5565 = vst.msk [vmem:[%s9349_s13 - $0x4] sm:$0xf0] %vm5564_vm3, %v9369_v52 }
 0x676   : > { %5567 = vst.msk [vmem:[%s9349_s13 + $0x4] sm:$0xf] %vm5566_vm7, %v5561_v23 }
 0x677   : > { %5581 = vst.msk [vmem:[%s9349_s13 - $0x5] sm:$0xe0] %vm5580_vm6, %v9367_v8 }
 0x678   : > { %5583 = vst.msk [vmem:[%s9349_s13 + $0x3] sm:$0x1f] %vm5582_vm2, %v5577_v27 }
 0x679   : > { %5597 = vst.msk [vmem:[%s9349_s13 - $0x6] sm:$0xc0] %vm5596_vm12, %v5591_v48 }
 0x67a   : > { %5599 = vst.msk [vmem:[%s9349_s13 + $0x2] sm:$0x3f] %vm5598_vm14, %v5593_v63 }
 0x67b   : > { %5613 = vst.msk [vmem:[%s9349_s13 - $0x7] sm:$0x80] %vm5612_vm5, %v5607_v39 }
 0x67c   : > { %5615 = vst.msk [vmem:[%s9349_s13 + $0x1] sm:$0x7f] %vm5614_vm10, %v5609_v46 }
 0x67d   : > { %6668 = shalt.err (!%p6665_p3)
}
 0x67e   : > { %s6669_s27 = scalar_lea.hbm %s9408_s23, 128  ;;  %s6673_s17 = scalar_lea.hbm %s9686_s4, 512 }
 0x67f   : > { %p6670_p2 = scmp.ne.s32.totalorder %s9408_s23, %s6669_s27  ;;  %p6674_p10 = scmp.lt.u32.totalorder %s9408_s23, %s9686_s4 }
 0x680   : > { %p6675_p1 = scmp.lt.u32.totalorder %s6673_s17, %s6669_s27  ;;  %p6677_p5 = scmp.lt.u32.totalorder %s6669_s27, %s9408_s23 }
 0x681   : > { %p6671_p9 = pnand %p6670_p2, %p9687_p13 }
 0x682   : > { %p6676_p8 = por %p6675_p1, %p6674_p10 }
 0x683   : > { %p6672_p4 = pneg %p6671_p9 }
 0x684   : > { %p6678_p6 = por %p6677_p5, %p6676_p8 }
 0x686   : > { %p6679_p7 = pnand %p6678_p6, %p6672_p4 }
 0x688   : > { %6682 = shalt.err (!%p6679_p7)
}
 0x689   : > { %6278 = dma.vmem_to_hbm [thread:$0]  (%p9687_p13), %s9410_s30, 128, %s9408_s23, %s5617_s19  }
 0x68a PF: > { %s9688_s12 = sld [smem:[#allocation23_spill]]  ;;  %p6320_p11 = scmp.ge.s32.totalorder %s6789_s11, 2 }
 0x68b   : > { %p9689_p12 = scmp.ne.s32.totalorder %s9542_s8, 0 }
 0x68d   : > { %p6304_p0 = pnand %p6320_p11, %p9689_p12 }
 0x690   : > { %s5644_s14 = sand.u32 1, %s9688_s12  }
 0x691   : > { %s5645_s22 = scalar_lea.sflag [#allocation7], %s5644_s14 }
 0x692   : > { %6744 = dma.done.wait (!%p6304_p0), %s5645_s22, 128  }
 0x693   : > { %6746 = vsyncadd (!%p6304_p0), %s5645_s22, 4294967168  ;;  %s26_s11 = sadd.s32 1, %s6789_s11   ;;  %s9690_s24 = smov %s6753_s25 }
 0x694   : > { %p23_p3 = scmp.ge.s32.totalorder %s26_s11, 6   ;;  %s9691_s25 = smov %s6757_s26 }
 0x695   : > { %s9692_s26 = smov %s7135_s21  ;;  %s9693_s27 = smov %s6765_s28 }
 0x696   : > { %s9694_s28 = smov %s6769_s29  ;;  %s9695_s29 = smov %s7132_s16 }
 0x697   : > { %s9696_s30 = smov %s6781_s9  ;;  %s9697_s8 = smov %s6785_s10 }
 0x698   : > { %s9698_s9 = smov %s9701_s18  ;;  %s9699_s10 = smov %s9705_s20 }
 0x699   :  { %25 = sbr.rel (!%p23_p3) target bundleno = 19 (0x13), region = 122 }
 0x6a0   :  { %5650 = vsyncpa [#allocation6], 1 }
 0x6a1   :  { %5652 = vsyncpa [#allocation6 + $0x1], 1 }
 0x6a2   :  { %5653 = vsyncpa [#allocation9], 1 }
 0x6a3   :  { %5654 = vsyncpa [#allocation12], 1 }
 0x6a4   :  { %5655 = vsyncpa [#allocation15], 1 }
 0x6a5   :  { %5656 = vsyncpa [#allocation7], 1 }
 0x6a6   :  { %5658 = vsyncpa [#allocation7 + $0x1], 1 }

</bundles_post_ra>
